<compile_context>
chip_gen: v6e
topology: v6e:2x2x1
jax: 0.10.0
libtpu: 0.0.40
codegen_flags: <defaults>
</compile_context>

<pallas_src>
import jax
import jax.numpy as jnp
from jax import lax
from jax.experimental import pallas as pl
from jax.experimental.pallas import tpu as pltpu


_HALO = 2       # rows of extra input context above/below each row tile
_SUBLANE = 8    # TPU sublane granularity (second-minor dim)


def _round_up(x, m):
    return (x + m - 1) // m * m


def _pick_tile_h(h, cap):
    """Largest even divisor of h that is <= cap; falls back to h (odd h)."""
    best = None
    for t in range(2, min(cap, h) + 1, 2):
        if h % t == 0:
            best = t
    return best if best is not None else h


def basic_block_forward_nhwc(x_nhwc, w1_hwio, w2_hwio, *, tile_h=32,
                             compute_dtype=jnp.float32):
    """BasicBlock forward, NHWC activations / HWIO weights (native layout).

    x_nhwc : (N, H, W, Cin)
    w1_hwio: (3, 3, Cin, Cmid)
    w2_hwio: (3, 3, Cmid, Cmid)
    returns: (N, H, W, Cmid), dtype of x
    """
    N, H, W, Cin = x_nhwc.shape
    Cmid = w1_hwio.shape[-1]
    assert w1_hwio.shape == (3, 3, Cin, Cmid)
    assert w2_hwio.shape == (3, 3, Cmid, Cmid)
    # identity residual requires matching shapes when downsample is None
    assert Cin == Cmid, "identity path requires inplanes == planes"
    assert H >= 2, "need at least 2 rows"
    # TODO(synk): stride>1 / downsample / add_batch_norm branches not
    # implemented (module defaults: stride=1, downsample=None, BN off).

    # ---- row tiling: largest even divisor of H <= tile_h --------------------
    TH = _pick_tile_h(H, tile_h)
    n_tiles = H // TH
    half = TH // 2                    # halo block-index unit (_HALO rows/block)
    out_dtype = x_nhwc.dtype

    # ---- pad W to a sublane multiple so in-kernel reshapes are free views ---
    Wk = _round_up(W, _SUBLANE)
    if Wk != W:
        x_nhwc = jnp.pad(x_nhwc, ((0, 0), (0, 0), (0, Wk - W), (0, 0)))

    # Weights stored in compute_dtype (bf16 halves HBM/VMEM footprint).
    w1c = w1_hwio.astype(compute_dtype)
    w2c = w2_hwio.astype(compute_dtype)

    # Fold dx into the contraction dim only when the lane concat is free.
    fold_dx = (Cin % 128 == 0)

    def kernel(xm_ref, xt_ref, xb_ref, w1_ref, w2_ref, out_ref):
        j = pl.program_id(1)
        top_valid = j > 0
        bot_valid = j < n_tiles - 1

        xm = xm_ref[0]                                     # (TH, Wk, Cin)
        # 2-row halos above/below, zeroed where they fall outside the image
        # (== conv1's zero padding in H at the image edges).
        top = xt_ref[0] * top_valid.astype(xm.dtype)
        bot = xb_ref[0] * bot_valid.astype(xm.dtype)
        xrows = jnp.concatenate([top, xm, bot], axis=0)    # (TH+4, Wk, Cin)

        # Column-edge masks built once per tile, reused by both convs
        # (conv zero padding in W; broadcast against (rows, Wk, C)).
        colw = lax.broadcasted_iota(jnp.int32, (Wk, 1), 0)
        lmask = (colw != 0).astype(compute_dtype)          # kill wrapped col 0
        rmask = (colw != Wk - 1).astype(compute_dtype)     # kill wrapped col Wk-1

        def conv3x3(v, w_ref, out_rows):
            # v: (R, Wk, C) -> (out_rows*Wk, Co) f32 accumulator.
            r, wd, c = v.shape
            co = w_ref.shape[-1]
            vc = v.astype(compute_dtype)                   # cast just before MXU
            left = pltpu.roll(vc, 1, 1) * lmask            # x[:, w-1] (0 at w=0)
            right = pltpu.roll(vc, wd - 1, 1) * rmask      # x[:, w+1] (0 at edge)
            acc = None
            if fold_dx:
                # dx folded into K: 3 MXU calls of K=3C on one im2col slab.
                slab = jnp.concatenate([left, vc, right], axis=-1)
                slab = slab.reshape(r * wd, 3 * c)
                for dy in range(3):
                    wmat = w_ref[dy].reshape(3 * c, co)
                    d = jnp.dot(slab[dy * wd:(dy + out_rows) * wd, :], wmat,
                                preferred_element_type=jnp.float32)
                    acc = d if acc is None else acc + d
            else:
                # small / non-lane-aligned C: 9 MXU calls of K=C, no lane concat.
                taps = [t.reshape(r * wd, c) for t in (left, vc, right)]
                for dy in range(3):
                    lo, hi = dy * wd, (dy + out_rows) * wd
                    for dx in range(3):
                        d = jnp.dot(taps[dx][lo:hi, :], w_ref[dy, dx],
                                    preferred_element_type=jnp.float32)
                        acc = d if acc is None else acc + d
            return acc

        # ---- conv1 + ReLU over TH+2 rows (1-row halo each side for conv2) ---
        acc1 = conv3x3(xrows, w1_ref, TH + 2)
        mid = jnp.maximum(acc1, 0.0).reshape(TH + 2, Wk, Cmid)       # f32

        # conv2's zero padding in H: only rows 0 and TH+1 of `mid` can lie
        # outside the image (first/last tile) -> scale just those rows.
        rowi = lax.broadcasted_iota(jnp.int32, (TH + 2, 1, 1), 0)
        keep = jnp.where(rowi == 0, top_valid.astype(jnp.float32),
                         jnp.where(rowi == TH + 1,
                                   bot_valid.astype(jnp.float32), 1.0))
        mid = mid * keep
        if Wk != W:
            # conv2's zero padding in W: zero the padded columns of `mid`.
            mid = mid * (colw < W).astype(jnp.float32)

        # ---- conv2 + residual add + ReLU (fused f32 epilogue, un-cast x) ----
        acc2 = conv3x3(mid, w2_ref, TH)                    # (TH*Wk, Cmid) f32
        res = acc2 + xm.reshape(TH * Wk, Cin).astype(jnp.float32)
        out = jnp.maximum(res, 0.0).astype(out_ref.dtype)
        out_ref[0] = out.reshape(TH, Wk, Cmid)

    out = pl.pallas_call(
        kernel,
        out_shape=jax.ShapeDtypeStruct((N, H, Wk, Cmid), out_dtype),
        grid=(N, n_tiles),
        in_specs=[
            # main TH rows — also reused as the identity path (single DMA of x)
            pl.BlockSpec((1, TH, Wk, Cin), lambda n, j: (n, j, 0, 0)),
            # 2-row halo above: rows [j*TH-2, j*TH-1] -> block j*half-1,
            # clamped at the top edge and masked in-kernel.
            pl.BlockSpec((1, _HALO, Wk, Cin),
                         lambda n, j: (n, jnp.maximum(j * half - 1, 0), 0, 0)),
            # 2-row halo below: rows [(j+1)*TH, (j+1)*TH+1] -> block
            # j*half+half, clamped at the bottom edge and masked in-kernel.
            pl.BlockSpec((1, _HALO, Wk, Cin),
                         lambda n, j: (n, jnp.minimum(j * half + half,
                                                      max(H // 2 - 1, 0)),
                                       0, 0)),
            # grid-invariant weights (pipeline fetches them once).
            pl.BlockSpec((3, 3, Cin, Cmid), lambda n, j: (0, 0, 0, 0)),
            pl.BlockSpec((3, 3, Cmid, Cmid), lambda n, j: (0, 0, 0, 0)),
        ],
        out_specs=pl.BlockSpec((1, TH, Wk, Cmid), lambda n, j: (n, j, 0, 0)),
        compiler_params=pltpu.CompilerParams(
            dimension_semantics=("parallel", "parallel"),
            vmem_limit_bytes=64 * 1024 * 1024),
    )(x_nhwc, x_nhwc, x_nhwc, w1c, w2c)

    if Wk != W:
        out = out[:, :, :W, :]
    return out


def basic_block_forward(x_nchw, w1_oihw, w2_oihw, **kwargs):
    """Torch-layout wrapper: NCHW activations, OIHW weights.

    In a full network keep activations NHWC across blocks and call
    basic_block_forward_nhwc directly — the two transposes here are pure
    layout traffic outside the kernel.
    """
    x_nhwc = jnp.transpose(x_nchw, (0, 2, 3, 1))
    w1 = jnp.transpose(w1_oihw, (2, 3, 1, 0))          # OIHW -> HWIO
    w2 = jnp.transpose(w2_oihw, (2, 3, 1, 0))
    out = basic_block_forward_nhwc(x_nhwc, w1, w2, **kwargs)
    return jnp.transpose(out, (0, 3, 1, 2))


def _reference_forward(x_nchw, w1_oihw, w2_oihw):
    """Pure-JAX reference (lax conv) matching torch semantics."""
    dn = lax.conv_dimension_numbers(x_nchw.shape, w1_oihw.shape,
                                    ("NCHW", "OIHW", "NCHW"))
    out = lax.conv_general_dilated(x_nchw, w1_oihw, (1, 1),
                                   ((1, 1), (1, 1)), dimension_numbers=dn)
    out = jnp.maximum(out, 0.0)
    out = lax.conv_general_dilated(out, w2_oihw, (1, 1),
                                   ((1, 1), (1, 1)), dimension_numbers=dn)
    return jnp.maximum(out + x_nchw, 0.0)


if __name__ == "__main__":
    key = jax.random.PRNGKey(0)
    kx, kw1, kw2, kx2 = jax.random.split(key, 4)

    N, C, H, W = 2, 4, 16, 16          # inplanes = planes = 4, stride = 1
    x = jax.random.normal(kx, (N, C, H, W), dtype=jnp.float32)
    w1 = jax.random.normal(kw1, (C, C, 3, 3), dtype=jnp.float32) * 0.1
    w2 = jax.random.normal(kw2, (C, C, 3, 3), dtype=jnp.float32) * 0.1
    ref = jax.block_until_ready(_reference_forward(x, w1, w2))

    # default tiling (TH = 16 here: one row tile per image)
    out = jax.block_until_ready(basic_block_forward(x, w1, w2))
    if not jnp.allclose(out, ref, atol=1e-4, rtol=1e-4):
        raise AssertionError("f32 (default tile) mismatch vs reference")

    # multi-tile path (TH = 8): exercises halo DMA + edge masking
    out8 = jax.block_until_ready(basic_block_forward(x, w1, w2, tile_h=8))
    if not jnp.allclose(out8, ref, atol=1e-4, rtol=1e-4):
        raise AssertionError("f32 (tile_h=8) mismatch vs reference")

    # bf16 MXU path (f32 accumulation, f32 residual from un-cast x)
    outb = jax.block_until_ready(
        basic_block_forward(x, w1, w2, tile_h=8, compute_dtype=jnp.bfloat16))
    if not jnp.allclose(outb, ref, atol=5e-2, rtol=5e-2):
        raise AssertionError("bf16 mismatch vs reference")

    # W not a multiple of 8: exercises the sublane padding + column masking
    xo = jax.random.normal(kx2, (N, C, H, 12), dtype=jnp.float32)
    refo = jax.block_until_ready(_reference_forward(xo, w1, w2))
    outo = jax.block_until_ready(basic_block_forward(xo, w1, w2, tile_h=8))
    if not jnp.allclose(outo, refo, atol=1e-4, rtol=1e-4):
        raise AssertionError("f32 (W=12 padded) mismatch vs reference")

    print("KERNEL_OK")
</pallas_src>

<mosaic_0001>
module attributes {stable_mosaic.version = 11 : i64} {
  func.func @kernel(%arg0: i32, %arg1: i32, %arg2: memref<1x16x16x4xf32, #tpu.memory_space<vmem>>, %arg3: memref<1x2x16x4xf32, #tpu.memory_space<vmem>>, %arg4: memref<1x2x16x4xf32, #tpu.memory_space<vmem>>, %arg5: memref<3x3x4x4xf32, #tpu.memory_space<vmem>>, %arg6: memref<3x3x4x4xf32, #tpu.memory_space<vmem>>, %arg7: memref<1x16x16x4xf32, #tpu.memory_space<vmem>>) attributes {dimension_semantics = [#tpu.dimension_semantics<parallel>, #tpu.dimension_semantics<parallel>], iteration_bounds = array<i64: 2, 1>, scalar_prefetch = 0 : i64, scratch_operands = 0 : i64, tpu.core_type = #tpu.core_type<tc>, window_params = [{transform_indices = @transform_0, window_bounds = array<i64: 1, 16, 16, 4>}, {transform_indices = @transform_1, window_bounds = array<i64: 1, 2, 16, 4>}, {transform_indices = @transform_2, window_bounds = array<i64: 1, 2, 16, 4>}, {pipeline_mode = #tpu.pipeline_mode<synchronous>, transform_indices = @transform_3, window_bounds = array<i64: 3, 3, 4, 4>}, {pipeline_mode = #tpu.pipeline_mode<synchronous>, transform_indices = @transform_4, window_bounds = array<i64: 3, 3, 4, 4>}, {transform_indices = @transform_5, window_bounds = array<i64: 1, 16, 16, 4>}]} {
    %c0_i32 = arith.constant 0 : i32
    %0 = arith.cmpi sgt, %arg1, %c0_i32 : i32
    %c0_i32_0 = arith.constant 0 : i32
    %1 = arith.cmpi slt, %arg1, %c0_i32_0 : i32
    %c0 = arith.constant 0 : index
    %c0_1 = arith.constant 0 : index
    %c0_2 = arith.constant 0 : index
    %c0_3 = arith.constant 0 : index
    %2 = vector.load %arg2[%c0, %c0_1, %c0_2, %c0_3] : memref<1x16x16x4xf32, #tpu.memory_space<vmem>>, vector<1x16x16x4xf32>
    %3 = vector.shape_cast %2 : vector<1x16x16x4xf32> to vector<16x16x4xf32>
    %c0_4 = arith.constant 0 : index
    %c0_5 = arith.constant 0 : index
    %c0_6 = arith.constant 0 : index
    %c0_7 = arith.constant 0 : index
    %4 = vector.load %arg3[%c0_4, %c0_5, %c0_6, %c0_7] : memref<1x2x16x4xf32, #tpu.memory_space<vmem>>, vector<1x2x16x4xf32>
    %5 = vector.shape_cast %4 : vector<1x2x16x4xf32> to vector<2x16x4xf32>
    %6 = arith.extui %0 : i1 to i32
    %7 = arith.sitofp %6 : i32 to f32
    %8 = vector.broadcast %7 : f32 to vector<2x16x4xf32>
    %9 = arith.mulf %5, %8 : vector<2x16x4xf32>
    %c0_8 = arith.constant 0 : index
    %c0_9 = arith.constant 0 : index
    %c0_10 = arith.constant 0 : index
    %c0_11 = arith.constant 0 : index
    %10 = vector.load %arg4[%c0_8, %c0_9, %c0_10, %c0_11] : memref<1x2x16x4xf32, #tpu.memory_space<vmem>>, vector<1x2x16x4xf32>
    %11 = vector.shape_cast %10 : vector<1x2x16x4xf32> to vector<2x16x4xf32>
    %12 = arith.extui %1 : i1 to i32
    %13 = arith.sitofp %12 : i32 to f32
    %14 = vector.broadcast %13 : f32 to vector<2x16x4xf32>
    %15 = arith.mulf %11, %14 : vector<2x16x4xf32>
    %16 = tpu.concatenate %9, %3, %15 in 0 : vector<2x16x4xf32>, vector<16x16x4xf32>, vector<2x16x4xf32> -> vector<20x16x4xf32>
    %17 = tpu.iota {dimensions = array<i32: 0>} : vector<16x1xi32>
    %c0_i32_12 = arith.constant 0 : i32
    %18 = vector.broadcast %c0_i32_12 : i32 to vector<16x1xi32>
    %19 = arith.cmpi ne, %17, %18 : vector<16x1xi32>
    %20 = arith.extui %19 : vector<16x1xi1> to vector<16x1xi32>
    %21 = arith.sitofp %20 : vector<16x1xi32> to vector<16x1xf32>
    %c15_i32 = arith.constant 15 : i32
    %22 = vector.broadcast %c15_i32 : i32 to vector<16x1xi32>
    %23 = arith.cmpi ne, %17, %22 : vector<16x1xi32>
    %24 = arith.extui %23 : vector<16x1xi1> to vector<16x1xi32>
    %25 = arith.sitofp %24 : vector<16x1xi32> to vector<16x1xf32>
    %c1_i32 = arith.constant 1 : i32
    %26 = tpu.dynamic_rotate %16 by %c1_i32 dim 1 : vector<20x16x4xf32>, i32 -> vector<20x16x4xf32>
    %27 = vector.shape_cast %21 : vector<16x1xf32> to vector<1x16x1xf32>
    %28 = vector.broadcast %27 : vector<1x16x1xf32> to vector<20x16x4xf32>
    %29 = arith.mulf %26, %28 : vector<20x16x4xf32>
    %c15_i32_13 = arith.constant 15 : i32
    %30 = tpu.dynamic_rotate %16 by %c15_i32_13 dim 1 : vector<20x16x4xf32>, i32 -> vector<20x16x4xf32>
    %31 = vector.shape_cast %25 : vector<16x1xf32> to vector<1x16x1xf32>
    %32 = vector.broadcast %31 : vector<1x16x1xf32> to vector<20x16x4xf32>
    %33 = arith.mulf %30, %32 : vector<20x16x4xf32>
    %34 = vector.shape_cast %29 : vector<20x16x4xf32> to vector<320x4xf32>
    %35 = vector.shape_cast %16 : vector<20x16x4xf32> to vector<320x4xf32>
    %36 = vector.shape_cast %33 : vector<20x16x4xf32> to vector<320x4xf32>
    %37 = vector.extract_strided_slice %34 {offsets = [0, 0], sizes = [288, 4], strides = [1, 1]} : vector<320x4xf32> to vector<288x4xf32>
    %c0_14 = arith.constant 0 : index
    %c0_15 = arith.constant 0 : index
    %c0_16 = arith.constant 0 : index
    %c0_17 = arith.constant 0 : index
    %38 = vector.load %arg5[%c0_14, %c0_15, %c0_16, %c0_17] : memref<3x3x4x4xf32, #tpu.memory_space<vmem>>, vector<1x1x4x4xf32>
    %39 = vector.shape_cast %38 : vector<1x1x4x4xf32> to vector<4x4xf32>
    %cst = arith.constant dense<0.000000e+00> : vector<288x4xf32>
    %40 = tpu.matmul %37, %39, %cst {dimension_numbers = #tpu.dot_dimension_numbers<[1], [0], [0], [1], [0, 0, 1, 1], [], []>} : vector<288x4xf32>, vector<4x4xf32>, vector<288x4xf32> -> vector<288x4xf32>
    %41 = vector.extract_strided_slice %35 {offsets = [0, 0], sizes = [288, 4], strides = [1, 1]} : vector<320x4xf32> to vector<288x4xf32>
    %c0_18 = arith.constant 0 : index
    %c1 = arith.constant 1 : index
    %c0_19 = arith.constant 0 : index
    %c0_20 = arith.constant 0 : index
    %42 = vector.load %arg5[%c0_18, %c1, %c0_19, %c0_20] : memref<3x3x4x4xf32, #tpu.memory_space<vmem>>, vector<1x1x4x4xf32>
    %43 = vector.shape_cast %42 : vector<1x1x4x4xf32> to vector<4x4xf32>
    %cst_21 = arith.constant dense<0.000000e+00> : vector<288x4xf32>
    %44 = tpu.matmul %41, %43, %cst_21 {dimension_numbers = #tpu.dot_dimension_numbers<[1], [0], [0], [1], [0, 0, 1, 1], [], []>} : vector<288x4xf32>, vector<4x4xf32>, vector<288x4xf32> -> vector<288x4xf32>
    %45 = arith.addf %40, %44 : vector<288x4xf32>
    %46 = vector.extract_strided_slice %36 {offsets = [0, 0], sizes = [288, 4], strides = [1, 1]} : vector<320x4xf32> to vector<288x4xf32>
    %c0_22 = arith.constant 0 : index
    %c2 = arith.constant 2 : index
    %c0_23 = arith.constant 0 : index
    %c0_24 = arith.constant 0 : index
    %47 = vector.load %arg5[%c0_22, %c2, %c0_23, %c0_24] : memref<3x3x4x4xf32, #tpu.memory_space<vmem>>, vector<1x1x4x4xf32>
    %48 = vector.shape_cast %47 : vector<1x1x4x4xf32> to vector<4x4xf32>
    %cst_25 = arith.constant dense<0.000000e+00> : vector<288x4xf32>
    %49 = tpu.matmul %46, %48, %cst_25 {dimension_numbers = #tpu.dot_dimension_numbers<[1], [0], [0], [1], [0, 0, 1, 1], [], []>} : vector<288x4xf32>, vector<4x4xf32>, vector<288x4xf32> -> vector<288x4xf32>
    %50 = arith.addf %45, %49 : vector<288x4xf32>
    %51 = vector.extract_strided_slice %34 {offsets = [16, 0], sizes = [288, 4], strides = [1, 1]} : vector<320x4xf32> to vector<288x4xf32>
    %c1_26 = arith.constant 1 : index
    %c0_27 = arith.constant 0 : index
    %c0_28 = arith.constant 0 : index
    %c0_29 = arith.constant 0 : index
    %52 = vector.load %arg5[%c1_26, %c0_27, %c0_28, %c0_29] : memref<3x3x4x4xf32, #tpu.memory_space<vmem>>, vector<1x1x4x4xf32>
    %53 = vector.shape_cast %52 : vector<1x1x4x4xf32> to vector<4x4xf32>
    %cst_30 = arith.constant dense<0.000000e+00> : vector<288x4xf32>
    %54 = tpu.matmul %51, %53, %cst_30 {dimension_numbers = #tpu.dot_dimension_numbers<[1], [0], [0], [1], [0, 0, 1, 1], [], []>} : vector<288x4xf32>, vector<4x4xf32>, vector<288x4xf32> -> vector<288x4xf32>
    %55 = arith.addf %50, %54 : vector<288x4xf32>
    %56 = vector.extract_strided_slice %35 {offsets = [16, 0], sizes = [288, 4], strides = [1, 1]} : vector<320x4xf32> to vector<288x4xf32>
    %c1_31 = arith.constant 1 : index
    %c1_32 = arith.constant 1 : index
    %c0_33 = arith.constant 0 : index
    %c0_34 = arith.constant 0 : index
    %57 = vector.load %arg5[%c1_31, %c1_32, %c0_33, %c0_34] : memref<3x3x4x4xf32, #tpu.memory_space<vmem>>, vector<1x1x4x4xf32>
    %58 = vector.shape_cast %57 : vector<1x1x4x4xf32> to vector<4x4xf32>
    %cst_35 = arith.constant dense<0.000000e+00> : vector<288x4xf32>
    %59 = tpu.matmul %56, %58, %cst_35 {dimension_numbers = #tpu.dot_dimension_numbers<[1], [0], [0], [1], [0, 0, 1, 1], [], []>} : vector<288x4xf32>, vector<4x4xf32>, vector<288x4xf32> -> vector<288x4xf32>
    %60 = arith.addf %55, %59 : vector<288x4xf32>
    %61 = vector.extract_strided_slice %36 {offsets = [16, 0], sizes = [288, 4], strides = [1, 1]} : vector<320x4xf32> to vector<288x4xf32>
    %c1_36 = arith.constant 1 : index
    %c2_37 = arith.constant 2 : index
    %c0_38 = arith.constant 0 : index
    %c0_39 = arith.constant 0 : index
    %62 = vector.load %arg5[%c1_36, %c2_37, %c0_38, %c0_39] : memref<3x3x4x4xf32, #tpu.memory_space<vmem>>, vector<1x1x4x4xf32>
    %63 = vector.shape_cast %62 : vector<1x1x4x4xf32> to vector<4x4xf32>
    %cst_40 = arith.constant dense<0.000000e+00> : vector<288x4xf32>
    %64 = tpu.matmul %61, %63, %cst_40 {dimension_numbers = #tpu.dot_dimension_numbers<[1], [0], [0], [1], [0, 0, 1, 1], [], []>} : vector<288x4xf32>, vector<4x4xf32>, vector<288x4xf32> -> vector<288x4xf32>
    %65 = arith.addf %60, %64 : vector<288x4xf32>
    %66 = vector.extract_strided_slice %34 {offsets = [32, 0], sizes = [288, 4], strides = [1, 1]} : vector<320x4xf32> to vector<288x4xf32>
    %c2_41 = arith.constant 2 : index
    %c0_42 = arith.constant 0 : index
    %c0_43 = arith.constant 0 : index
    %c0_44 = arith.constant 0 : index
    %67 = vector.load %arg5[%c2_41, %c0_42, %c0_43, %c0_44] : memref<3x3x4x4xf32, #tpu.memory_space<vmem>>, vector<1x1x4x4xf32>
    %68 = vector.shape_cast %67 : vector<1x1x4x4xf32> to vector<4x4xf32>
    %cst_45 = arith.constant dense<0.000000e+00> : vector<288x4xf32>
    %69 = tpu.matmul %66, %68, %cst_45 {dimension_numbers = #tpu.dot_dimension_numbers<[1], [0], [0], [1], [0, 0, 1, 1], [], []>} : vector<288x4xf32>, vector<4x4xf32>, vector<288x4xf32> -> vector<288x4xf32>
    %70 = arith.addf %65, %69 : vector<288x4xf32>
    %71 = vector.extract_strided_slice %35 {offsets = [32, 0], sizes = [288, 4], strides = [1, 1]} : vector<320x4xf32> to vector<288x4xf32>
    %c2_46 = arith.constant 2 : index
    %c1_47 = arith.constant 1 : index
    %c0_48 = arith.constant 0 : index
    %c0_49 = arith.constant 0 : index
    %72 = vector.load %arg5[%c2_46, %c1_47, %c0_48, %c0_49] : memref<3x3x4x4xf32, #tpu.memory_space<vmem>>, vector<1x1x4x4xf32>
    %73 = vector.shape_cast %72 : vector<1x1x4x4xf32> to vector<4x4xf32>
    %cst_50 = arith.constant dense<0.000000e+00> : vector<288x4xf32>
    %74 = tpu.matmul %71, %73, %cst_50 {dimension_numbers = #tpu.dot_dimension_numbers<[1], [0], [0], [1], [0, 0, 1, 1], [], []>} : vector<288x4xf32>, vector<4x4xf32>, vector<288x4xf32> -> vector<288x4xf32>
    %75 = arith.addf %70, %74 : vector<288x4xf32>
    %76 = vector.extract_strided_slice %36 {offsets = [32, 0], sizes = [288, 4], strides = [1, 1]} : vector<320x4xf32> to vector<288x4xf32>
    %c2_51 = arith.constant 2 : index
    %c2_52 = arith.constant 2 : index
    %c0_53 = arith.constant 0 : index
    %c0_54 = arith.constant 0 : index
    %77 = vector.load %arg5[%c2_51, %c2_52, %c0_53, %c0_54] : memref<3x3x4x4xf32, #tpu.memory_space<vmem>>, vector<1x1x4x4xf32>
    %78 = vector.shape_cast %77 : vector<1x1x4x4xf32> to vector<4x4xf32>
    %cst_55 = arith.constant dense<0.000000e+00> : vector<288x4xf32>
    %79 = tpu.matmul %76, %78, %cst_55 {dimension_numbers = #tpu.dot_dimension_numbers<[1], [0], [0], [1], [0, 0, 1, 1], [], []>} : vector<288x4xf32>, vector<4x4xf32>, vector<288x4xf32> -> vector<288x4xf32>
    %80 = arith.addf %75, %79 : vector<288x4xf32>
    %cst_56 = arith.constant 0.000000e+00 : f32
    %81 = vector.broadcast %cst_56 : f32 to vector<288x4xf32>
    %82 = arith.maximumf %80, %81 : vector<288x4xf32>
    %83 = vector.shape_cast %82 : vector<288x4xf32> to vector<18x16x4xf32>
    %84 = tpu.iota {dimensions = array<i32: 0>} : vector<18x1x1xi32>
    %c0_i32_57 = arith.constant 0 : i32
    %85 = vector.broadcast %c0_i32_57 : i32 to vector<18x1x1xi32>
    %86 = arith.cmpi eq, %84, %85 : vector<18x1x1xi32>
    %87 = arith.extui %0 : i1 to i32
    %88 = arith.sitofp %87 : i32 to f32
    %c17_i32 = arith.constant 17 : i32
    %89 = vector.broadcast %c17_i32 : i32 to vector<18x1x1xi32>
    %90 = arith.cmpi eq, %84, %89 : vector<18x1x1xi32>
    %91 = arith.extui %1 : i1 to i32
    %92 = arith.sitofp %91 : i32 to f32
    %cst_58 = arith.constant 1.000000e+00 : f32
    %93 = vector.broadcast %92 : f32 to vector<18x1x1xf32>
    %94 = vector.broadcast %cst_58 : f32 to vector<18x1x1xf32>
    %95 = arith.select %90, %93, %94 : vector<18x1x1xi1>, vector<18x1x1xf32>
    %96 = vector.broadcast %88 : f32 to vector<18x1x1xf32>
    %97 = arith.select %86, %96, %95 : vector<18x1x1xi1>, vector<18x1x1xf32>
    %98 = vector.broadcast %97 : vector<18x1x1xf32> to vector<18x16x4xf32>
    %99 = arith.mulf %83, %98 : vector<18x16x4xf32>
    %c1_i32_59 = arith.constant 1 : i32
    %100 = tpu.dynamic_rotate %99 by %c1_i32_59 dim 1 : vector<18x16x4xf32>, i32 -> vector<18x16x4xf32>
    %101 = vector.shape_cast %21 : vector<16x1xf32> to vector<1x16x1xf32>
    %102 = vector.broadcast %101 : vector<1x16x1xf32> to vector<18x16x4xf32>
    %103 = arith.mulf %100, %102 : vector<18x16x4xf32>
    %c15_i32_60 = arith.constant 15 : i32
    %104 = tpu.dynamic_rotate %99 by %c15_i32_60 dim 1 : vector<18x16x4xf32>, i32 -> vector<18x16x4xf32>
    %105 = vector.shape_cast %25 : vector<16x1xf32> to vector<1x16x1xf32>
    %106 = vector.broadcast %105 : vector<1x16x1xf32> to vector<18x16x4xf32>
    %107 = arith.mulf %104, %106 : vector<18x16x4xf32>
    %108 = vector.shape_cast %103 : vector<18x16x4xf32> to vector<288x4xf32>
    %109 = vector.shape_cast %99 : vector<18x16x4xf32> to vector<288x4xf32>
    %110 = vector.shape_cast %107 : vector<18x16x4xf32> to vector<288x4xf32>
    %111 = vector.extract_strided_slice %108 {offsets = [0, 0], sizes = [256, 4], strides = [1, 1]} : vector<288x4xf32> to vector<256x4xf32>
    %c0_61 = arith.constant 0 : index
    %c0_62 = arith.constant 0 : index
    %c0_63 = arith.constant 0 : index
    %c0_64 = arith.constant 0 : index
    %112 = vector.load %arg6[%c0_61, %c0_62, %c0_63, %c0_64] : memref<3x3x4x4xf32, #tpu.memory_space<vmem>>, vector<1x1x4x4xf32>
    %113 = vector.shape_cast %112 : vector<1x1x4x4xf32> to vector<4x4xf32>
    %cst_65 = arith.constant dense<0.000000e+00> : vector<256x4xf32>
    %114 = tpu.matmul %111, %113, %cst_65 {dimension_numbers = #tpu.dot_dimension_numbers<[1], [0], [0], [1], [0, 0, 1, 1], [], []>} : vector<256x4xf32>, vector<4x4xf32>, vector<256x4xf32> -> vector<256x4xf32>
    %115 = vector.extract_strided_slice %109 {offsets = [0, 0], sizes = [256, 4], strides = [1, 1]} : vector<288x4xf32> to vector<256x4xf32>
    %c0_66 = arith.constant 0 : index
    %c1_67 = arith.constant 1 : index
    %c0_68 = arith.constant 0 : index
    %c0_69 = arith.constant 0 : index
    %116 = vector.load %arg6[%c0_66, %c1_67, %c0_68, %c0_69] : memref<3x3x4x4xf32, #tpu.memory_space<vmem>>, vector<1x1x4x4xf32>
    %117 = vector.shape_cast %116 : vector<1x1x4x4xf32> to vector<4x4xf32>
    %cst_70 = arith.constant dense<0.000000e+00> : vector<256x4xf32>
    %118 = tpu.matmul %115, %117, %cst_70 {dimension_numbers = #tpu.dot_dimension_numbers<[1], [0], [0], [1], [0, 0, 1, 1], [], []>} : vector<256x4xf32>, vector<4x4xf32>, vector<256x4xf32> -> vector<256x4xf32>
    %119 = arith.addf %114, %118 : vector<256x4xf32>
    %120 = vector.extract_strided_slice %110 {offsets = [0, 0], sizes = [256, 4], strides = [1, 1]} : vector<288x4xf32> to vector<256x4xf32>
    %c0_71 = arith.constant 0 : index
    %c2_72 = arith.constant 2 : index
    %c0_73 = arith.constant 0 : index
    %c0_74 = arith.constant 0 : index
    %121 = vector.load %arg6[%c0_71, %c2_72, %c0_73, %c0_74] : memref<3x3x4x4xf32, #tpu.memory_space<vmem>>, vector<1x1x4x4xf32>
    %122 = vector.shape_cast %121 : vector<1x1x4x4xf32> to vector<4x4xf32>
    %cst_75 = arith.constant dense<0.000000e+00> : vector<256x4xf32>
    %123 = tpu.matmul %120, %122, %cst_75 {dimension_numbers = #tpu.dot_dimension_numbers<[1], [0], [0], [1], [0, 0, 1, 1], [], []>} : vector<256x4xf32>, vector<4x4xf32>, vector<256x4xf32> -> vector<256x4xf32>
    %124 = arith.addf %119, %123 : vector<256x4xf32>
    %125 = vector.extract_strided_slice %108 {offsets = [16, 0], sizes = [256, 4], strides = [1, 1]} : vector<288x4xf32> to vector<256x4xf32>
    %c1_76 = arith.constant 1 : index
    %c0_77 = arith.constant 0 : index
    %c0_78 = arith.constant 0 : index
    %c0_79 = arith.constant 0 : index
    %126 = vector.load %arg6[%c1_76, %c0_77, %c0_78, %c0_79] : memref<3x3x4x4xf32, #tpu.memory_space<vmem>>, vector<1x1x4x4xf32>
    %127 = vector.shape_cast %126 : vector<1x1x4x4xf32> to vector<4x4xf32>
    %cst_80 = arith.constant dense<0.000000e+00> : vector<256x4xf32>
    %128 = tpu.matmul %125, %127, %cst_80 {dimension_numbers = #tpu.dot_dimension_numbers<[1], [0], [0], [1], [0, 0, 1, 1], [], []>} : vector<256x4xf32>, vector<4x4xf32>, vector<256x4xf32> -> vector<256x4xf32>
    %129 = arith.addf %124, %128 : vector<256x4xf32>
    %130 = vector.extract_strided_slice %109 {offsets = [16, 0], sizes = [256, 4], strides = [1, 1]} : vector<288x4xf32> to vector<256x4xf32>
    %c1_81 = arith.constant 1 : index
    %c1_82 = arith.constant 1 : index
    %c0_83 = arith.constant 0 : index
    %c0_84 = arith.constant 0 : index
    %131 = vector.load %arg6[%c1_81, %c1_82, %c0_83, %c0_84] : memref<3x3x4x4xf32, #tpu.memory_space<vmem>>, vector<1x1x4x4xf32>
    %132 = vector.shape_cast %131 : vector<1x1x4x4xf32> to vector<4x4xf32>
    %cst_85 = arith.constant dense<0.000000e+00> : vector<256x4xf32>
    %133 = tpu.matmul %130, %132, %cst_85 {dimension_numbers = #tpu.dot_dimension_numbers<[1], [0], [0], [1], [0, 0, 1, 1], [], []>} : vector<256x4xf32>, vector<4x4xf32>, vector<256x4xf32> -> vector<256x4xf32>
    %134 = arith.addf %129, %133 : vector<256x4xf32>
    %135 = vector.extract_strided_slice %110 {offsets = [16, 0], sizes = [256, 4], strides = [1, 1]} : vector<288x4xf32> to vector<256x4xf32>
    %c1_86 = arith.constant 1 : index
    %c2_87 = arith.constant 2 : index
    %c0_88 = arith.constant 0 : index
    %c0_89 = arith.constant 0 : index
    %136 = vector.load %arg6[%c1_86, %c2_87, %c0_88, %c0_89] : memref<3x3x4x4xf32, #tpu.memory_space<vmem>>, vector<1x1x4x4xf32>
    %137 = vector.shape_cast %136 : vector<1x1x4x4xf32> to vector<4x4xf32>
    %cst_90 = arith.constant dense<0.000000e+00> : vector<256x4xf32>
    %138 = tpu.matmul %135, %137, %cst_90 {dimension_numbers = #tpu.dot_dimension_numbers<[1], [0], [0], [1], [0, 0, 1, 1], [], []>} : vector<256x4xf32>, vector<4x4xf32>, vector<256x4xf32> -> vector<256x4xf32>
    %139 = arith.addf %134, %138 : vector<256x4xf32>
    %140 = vector.extract_strided_slice %108 {offsets = [32, 0], sizes = [256, 4], strides = [1, 1]} : vector<288x4xf32> to vector<256x4xf32>
    %c2_91 = arith.constant 2 : index
    %c0_92 = arith.constant 0 : index
    %c0_93 = arith.constant 0 : index
    %c0_94 = arith.constant 0 : index
    %141 = vector.load %arg6[%c2_91, %c0_92, %c0_93, %c0_94] : memref<3x3x4x4xf32, #tpu.memory_space<vmem>>, vector<1x1x4x4xf32>
    %142 = vector.shape_cast %141 : vector<1x1x4x4xf32> to vector<4x4xf32>
    %cst_95 = arith.constant dense<0.000000e+00> : vector<256x4xf32>
    %143 = tpu.matmul %140, %142, %cst_95 {dimension_numbers = #tpu.dot_dimension_numbers<[1], [0], [0], [1], [0, 0, 1, 1], [], []>} : vector<256x4xf32>, vector<4x4xf32>, vector<256x4xf32> -> vector<256x4xf32>
    %144 = arith.addf %139, %143 : vector<256x4xf32>
    %145 = vector.extract_strided_slice %109 {offsets = [32, 0], sizes = [256, 4], strides = [1, 1]} : vector<288x4xf32> to vector<256x4xf32>
    %c2_96 = arith.constant 2 : index
    %c1_97 = arith.constant 1 : index
    %c0_98 = arith.constant 0 : index
    %c0_99 = arith.constant 0 : index
    %146 = vector.load %arg6[%c2_96, %c1_97, %c0_98, %c0_99] : memref<3x3x4x4xf32, #tpu.memory_space<vmem>>, vector<1x1x4x4xf32>
    %147 = vector.shape_cast %146 : vector<1x1x4x4xf32> to vector<4x4xf32>
    %cst_100 = arith.constant dense<0.000000e+00> : vector<256x4xf32>
    %148 = tpu.matmul %145, %147, %cst_100 {dimension_numbers = #tpu.dot_dimension_numbers<[1], [0], [0], [1], [0, 0, 1, 1], [], []>} : vector<256x4xf32>, vector<4x4xf32>, vector<256x4xf32> -> vector<256x4xf32>
    %149 = arith.addf %144, %148 : vector<256x4xf32>
    %150 = vector.extract_strided_slice %110 {offsets = [32, 0], sizes = [256, 4], strides = [1, 1]} : vector<288x4xf32> to vector<256x4xf32>
    %c2_101 = arith.constant 2 : index
    %c2_102 = arith.constant 2 : index
    %c0_103 = arith.constant 0 : index
    %c0_104 = arith.constant 0 : index
    %151 = vector.load %arg6[%c2_101, %c2_102, %c0_103, %c0_104] : memref<3x3x4x4xf32, #tpu.memory_space<vmem>>, vector<1x1x4x4xf32>
    %152 = vector.shape_cast %151 : vector<1x1x4x4xf32> to vector<4x4xf32>
    %cst_105 = arith.constant dense<0.000000e+00> : vector<256x4xf32>
    %153 = tpu.matmul %150, %152, %cst_105 {dimension_numbers = #tpu.dot_dimension_numbers<[1], [0], [0], [1], [0, 0, 1, 1], [], []>} : vector<256x4xf32>, vector<4x4xf32>, vector<256x4xf32> -> vector<256x4xf32>
    %154 = arith.addf %149, %153 : vector<256x4xf32>
    %155 = vector.shape_cast %3 : vector<16x16x4xf32> to vector<256x4xf32>
    %156 = arith.addf %154, %155 : vector<256x4xf32>
    %cst_106 = arith.constant 0.000000e+00 : f32
    %157 = vector.broadcast %cst_106 : f32 to vector<256x4xf32>
    %158 = arith.maximumf %156, %157 : vector<256x4xf32>
    %159 = vector.shape_cast %158 : vector<256x4xf32> to vector<16x16x4xf32>
    %c0_107 = arith.constant 0 : index
    %c0_108 = arith.constant 0 : index
    %c0_109 = arith.constant 0 : index
    %c0_110 = arith.constant 0 : index
    %160 = vector.load %arg7[%c0_107, %c0_108, %c0_109, %c0_110] : memref<1x16x16x4xf32, #tpu.memory_space<vmem>>, vector<1x16x16x4xf32>
    %161 = vector.shape_cast %160 : vector<1x16x16x4xf32> to vector<16x16x4xf32>
    %162 = vector.shape_cast %159 : vector<16x16x4xf32> to vector<1x16x16x4xf32>
    tpu.vector_store %arg7[%c0_107, %c0_108, %c0_109, %c0_110], %162 {strides = array<i32>} : memref<1x16x16x4xf32, #tpu.memory_space<vmem>>, vector<1x16x16x4xf32>,
    return
  }
  func.func @transform_0(%arg0: i32, %arg1: i32) -> (i32, i32, i32, i32) {
    %c0_i32 = arith.constant 0 : i32
    %c0_i32_0 = arith.constant 0 : i32
    %c0_i32_1 = arith.constant 0 : i32
    return %arg0, %arg1, %c0_i32, %c0_i32_0 : i32, i32, i32, i32
  }
  func.func @transform_1(%arg0: i32, %arg1: i32) -> (i32, i32, i32, i32) {
    %c8_i32 = arith.constant 8 : i32
    %0 = arith.muli %arg1, %c8_i32 : i32
    %c1_i32 = arith.constant 1 : i32
    %1 = arith.subi %0, %c1_i32 : i32
    %c0_i32 = arith.constant 0 : i32
    %2 = arith.maxsi %1, %c0_i32 : i32
    %c0_i32_0 = arith.constant 0 : i32
    %c0_i32_1 = arith.constant 0 : i32
    %c0_i32_2 = arith.constant 0 : i32
    return %arg0, %2, %c0_i32_0, %c0_i32_1 : i32, i32, i32, i32
  }
  func.func @transform_2(%arg0: i32, %arg1: i32) -> (i32, i32, i32, i32) {
    %c8_i32 = arith.constant 8 : i32
    %0 = arith.muli %arg1, %c8_i32 : i32
    %c8_i32_0 = arith.constant 8 : i32
    %1 = arith.addi %0, %c8_i32_0 : i32
    %c7_i32 = arith.constant 7 : i32
    %2 = arith.minsi %1, %c7_i32 : i32
    %c0_i32 = arith.constant 0 : i32
    %c0_i32_1 = arith.constant 0 : i32
    %c0_i32_2 = arith.constant 0 : i32
    return %arg0, %2, %c0_i32, %c0_i32_1 : i32, i32, i32, i32
  }
  func.func @transform_3(%arg0: i32, %arg1: i32) -> (i32, i32, i32, i32) {
    %c0_i32 = arith.constant 0 : i32
    %c0_i32_0 = arith.constant 0 : i32
    %c0_i32_1 = arith.constant 0 : i32
    %c0_i32_2 = arith.constant 0 : i32
    %c0_i32_3 = arith.constant 0 : i32
    return %c0_i32, %c0_i32_0, %c0_i32_1, %c0_i32_2 : i32, i32, i32, i32
  }
  func.func @transform_4(%arg0: i32, %arg1: i32) -> (i32, i32, i32, i32) {
    %c0_i32 = arith.constant 0 : i32
    %c0_i32_0 = arith.constant 0 : i32
    %c0_i32_1 = arith.constant 0 : i32
    %c0_i32_2 = arith.constant 0 : i32
    %c0_i32_3 = arith.constant 0 : i32
    return %c0_i32, %c0_i32_0, %c0_i32_1, %c0_i32_2 : i32, i32, i32, i32
  }
  func.func @transform_5(%arg0: i32, %arg1: i32) -> (i32, i32, i32, i32) {
    %c0_i32 = arith.constant 0 : i32
    %c0_i32_0 = arith.constant 0 : i32
    %c0_i32_1 = arith.constant 0 : i32
    return %arg0, %arg1, %c0_i32, %c0_i32_0 : i32, i32, i32, i32
  }
}

</mosaic_0001>

<bundles_post_ra>
// kernel: tpu_custom_call.1
= control target key start
LH: loop header
LB: loop body
LE: loop exit
PB: predicated region body
PF: predicated region fallthrough
CT: control target
= control target key end

     0   :  { %s9055_s18 = smov 0   ;;  %s9057_s19 = smov 0   ;;  %s12898_s0 = inlined_call_operand.vmem [shape: f32[2,16,16,4], index: 0, kind: input, shape index: {}]   ;;  %s12899_s1 = inlined_call_operand.vmem [shape: f32[2,16,16,4], index: 1, kind: input, shape index: {}]   ;;  %s12900_s2 = inlined_call_operand.vmem [shape: f32[2,16,16,4], index: 2, kind: input, shape index: {}]   ;;  %s12901_s3 = inlined_call_operand.vmem [shape: f32[3,3,4,4], index: 3, kind: input, shape index: {}]   ;;  %s12902_s4 = inlined_call_operand.vmem [shape: f32[3,3,4,4], index: 4, kind: input, shape index: {}]   ;;  %s12903_s5 = inlined_call_operand.vmem [shape: f32[2,16,16,4], index: 5, kind: output, shape index: {}]  }
   0x1   :  { %s9059_s20 = smov 0  }
   0x2 LB: > { %s27_s21 = sadd.s32 1, %s9018_s19  ;;  %p6690_p0 = scmp.ge.s32.totalorder %s9022_s20, 1  ;;  %s9022_s20 = sphi %s9059_s20, %s15_s20   ;;  %s9018_s19 = sphi %s9057_s19, %s13703_s19   ;;  %s9014_s18 = sphi %s9055_s18, %s13702_s18  }
   0x3   : > { %p29_p1 = scmp.ge.s32.totalorder %s27_s21, 2  ;;  %p277_p2 = scmp.lt.s32.totalorder %s9022_s20, 3 }
   0x5   : > { %s13705_s21 = smov (%p29_p1, %s27_s21), 0  ;;  %p278_p3 = pnand %p6690_p0, %p277_p2 }
   0x7   : > { %281 = sbr.rel (%p278_p3) target bundleno = 1028 (0x404), region = 40 }
   0xc   : > { %v6701_v0 = vld [vmem:[%s12901_s3 + $0x4] sm:$0xf]  ;;  %vm828_vm0 = vcmask 1043456   ;;  %p344_p4 = scmp.lt.s32.totalorder %s9014_s18, 1  ;;  %v459_v1 = vlaneseq  ;;  %v6776_v2 = vld [vmem:[%s12901_s3 + $0x8] sm:$0xf] }
   0xd   : > { %7985 = vmatprep.subr.msk.mxu0 %vm828_vm0, %v6701_v0  ;;  %8939 = vmatprep.subr.msk.mxu1 %vm828_vm0, %v6701_v0  ;;  %v716_v3 = vld [vmem:[%s12901_s3] sm:$0xf]  ;;  %vm719_vm1 = vcmask 31744   ;;  %v6814_v5 = vld [vmem:[%s12901_s3 + $0xc] sm:$0xf]  ;;  %v12904_v19 = vmov 0.0  }
   0xe   : > { %7986 = vmatpush3.msk.msra.mxu0 %vm828_vm0, %v6701_v0  ;;  %s13707_s18 = smov (!%p344_p4, %s9014_s18), 1  ;;  %8940 = vmatpush3.msk.msra.mxu1 %vm828_vm0, %v6701_v0  ;;  %v9086_v4 = vshrl.u32 %v459_v1, 7  ;;  %v9144_v22 = vld [vmem:[%s12901_s3 + $0x10] sm:$0xf]  ;;  %v9219_v46 = vld [vmem:[%s12901_s3 + $0x14] sm:$0xf] }
   0xf   : > { %8097 = vmatprep.subr.msk.mxu0 %vm828_vm0, %v6776_v2  ;;  %8041 = vmatprep.subr.msk.mxu1 %vm828_vm0, %v716_v3  ;;  %s9090_s28 = sshll.u32 %s13707_s18, 8 }
  0x10   : > { %s9096_s6 = scalar_lea.vmem %s12898_s0, %s9090_s28  ;;  %s367_s9 = scalar_lea.vmem %s12899_s1, %s9090_s28  ;;  %vm462_vm2 = vcmp.ne.s32.totalorder %v9086_v4, 0  ;;  %vm514_vm3 = vcmp.lt.s32.totalorder %v9086_v4, 1  ;;  %vm635_vm4 = vcmp.lt.s32.totalorder %v9086_v4, 7 }
  0x11   : > { %v437_v6 = vld [vmem:[%s367_s9] sm:$0xff]  ;;  %v438_v7 = vld [vmem:[%s367_s9 + $0x8] sm:$0xff]  ;;  %v9106_v8 = vld [vmem:[%s9096_s6 + $0xf0] sm:$0xff]  ;;  %v9136_v20 = vsel %vm462_vm2, 1.0, %v12904_v19  ;;  %s7352_s23 = sadd.s32 224, %s9090_s28  ;;  %s12671_s30 = scalar_lea.vmem %s12903_s5, %s9090_s28 }
  0x12   : > { %13096 = vst [vmem:[#allocation2_spill] sm:$0xff] %v9106_v8  ;;  %v9109_v9 = vmul.f32 0.0, %v437_v6  ;;  %v9111_v10 = vmul.f32 0.0, %v438_v7  ;;  %8038 = vmatprep.mubr.msk.f32.mxu1 %vm719_vm1, %v9106_v8  ;;  %v9116_v11 = vld [vmem:[%s9096_s6 + $0xf8] sm:$0xff]  ;;  %v439_v12 = vld [vmem:[%s367_s9 + $0x10] sm:$0xff]  ;;  %v9126_v16 = vld [vmem:[%s9096_s6] sm:$0xff]  ;;  %s9866_s26 = scalar_lea.vmem %s12900_s2, %s7352_s23 }
  0x13   : > { %v440_v13 = vld [vmem:[%s367_s9 + $0x18] sm:$0xff]  ;;  %8039 = vmatmul.mubr.msk.f32.vlgmr.msra.gmra.mxu1 %vm719_vm1, %v9116_v11  ;;  %v9120_v14 = vmul.f32 0.0, %v439_v12  ;;  %13099 = vst [vmem:[#allocation5_spill] sm:$0xff] %v9126_v16  ;;  %13100 = vst [vmem:[#allocation6_spill] sm:$0xff] %v9136_v20  ;;  %v9139_v21 = vld [vmem:[%s9096_s6 + $0x8] sm:$0xff]  ;;  %v476_v27 = vrot.slane %v9126_v16, 7 }
  0x14   : > { %v9122_v15 = vmul.f32 0.0, %v440_v13  ;;  %v474_v17 = vrot.slane %v9109_v9, 7  ;;  %7987 = vmatprep.mubr.msk.f32.mxu0 %vm719_vm1, %v9109_v9  ;;  %v494_v18 = vrot.slane %v9111_v10, 7  ;;  %8042 = vmatpush3.msk.msra.mxu1 %vm828_vm0, %v716_v3  ;;  %13101 = vst [vmem:[#allocation7_spill] sm:$0xff] %v9139_v21  ;;  %v9151_v25 = vld [vmem:[%s9096_s6 + $0x10] sm:$0xff]  ;;  %v9154_v26 = vld [vmem:[%s9096_s6 + $0x18] sm:$0xff] }
  0x15   : > { %13097 = vst [vmem:[#allocation3_spill] sm:$0xff] %v9120_v14  ;;  %7988 = vmatmul.mubr.msk.f32.vlgmr.msra.gmra.mxu0 %vm719_vm1, %v9111_v10  ;;  %v475_v23 = vrot.slane %v9120_v14, 7  ;;  %v496_v28 = vrot.slane %v9139_v21, 7  ;;  %8153 = vmatprep.subr.msk.mxu1 %vm828_vm0, %v6814_v5  ;;  %v477_v35 = vrot.slane %v9151_v25, 7  ;;  %v497_v36 = vrot.slane %v9154_v26, 7  ;;  %v9182_v37 = vld [vmem:[%s9096_s6 + $0x20] sm:$0xff] }
  0x16   : > { %13098 = vst [vmem:[#allocation4_spill] sm:$0xff] %v9122_v15  ;;  %v495_v24 = vrot.slane %v9122_v15, 7  ;;  %8098 = vmatpush3.msk.msra.mxu0 %vm828_vm0, %v6776_v2  ;;  %7990 = vmatprep.mubr.msk.f32.mxu0 %vm719_vm1, %v9120_v14  ;;  %v535_v29 = vsel %vm514_vm3, %v494_v18, %v474_v17  ;;  %v515_v31 = vsel %vm514_vm3, %v474_v17, %v494_v18  ;;  %v9185_v38 = vld [vmem:[%s9096_s6 + $0x28] sm:$0xff]  ;;  %v478_v42 = vrot.slane %v9182_v37, 7  ;;  %v9207_v44 = vld [vmem:[%s9096_s6 + $0x30] sm:$0xff]  ;;  %v9210_v45 = vld [vmem:[%s9096_s6 + $0x38] sm:$0xff] }
  0x17   : > { %v555_v30 = vmul.f32 %v9136_v20, %v535_v29  ;;  %8209 = vmatprep.subr.msk.mxu0 %vm828_vm0, %v9144_v22  ;;  %v537_v34 = vsel %vm514_vm3, %v496_v28, %v476_v27  ;;  %v538_v41 = vsel %vm514_vm3, %v497_v36, %v477_v35  ;;  %v498_v43 = vrot.slane %v9185_v38, 7  ;;  %v9239_v52 = vld [vmem:[%s9096_s6 + $0x40] sm:$0xff]  ;;  %v9242_v53 = vld [vmem:[%s9096_s6 + $0x48] sm:$0xff]  ;;  %v9264_v59 = vld [vmem:[%s9096_s6 + $0x50] sm:$0xff] }
  0x18   : > { %v536_v32 = vsel %vm514_vm3, %v495_v24, %v475_v23  ;;  %v9194_v39 = vsel %vm514_vm3, %v475_v23, %v495_v24  ;;  %v9197_v40 = vmul.f32 %v9136_v20, %v537_v34  ;;  %v9225_v47 = vsel %vm514_vm3, %v476_v27, %v496_v28  ;;  %v9267_v60 = vld [vmem:[%s9096_s6 + $0x58] sm:$0xff]  ;;  %v9295_v6 = vld [vmem:[%s9096_s6 + $0x68] sm:$0xff]  ;;  %v9325_v23 = vld [vmem:[%s9096_s6 + $0x70] sm:$0xff] }
  0x19   : > { %v9172_v33 = vmul.f32 %v9136_v20, %v536_v32  ;;  %7991 = vmatmul.mubr.msk.f32.gmra.mxu0 %vm719_vm1, %v9122_v15  ;;  %8043 = vmatprep.mubr.msk.f32.mxu1 %vm719_vm1, %v555_v30  ;;  %13103 = vst [vmem:[#allocation9_spill] sm:$0xff] %v9225_v47  ;;  %v9228_v48 = vmul.f32 %v9136_v20, %v538_v41  ;;  %v479_v50 = vrot.slane %v9207_v44, 7  ;;  %v499_v51 = vrot.slane %v9210_v45, 7  ;;  %v9328_v24 = vld [vmem:[%s9096_s6 + $0x78] sm:$0xff]  ;;  %v9350_v32 = vld [vmem:[%s9096_s6 + $0x80] sm:$0xff]  ;;  %v9353_v34 = vld [vmem:[%s9096_s6 + $0x88] sm:$0xff] }
  0x1a   : > { %8044 = vmatmul.mubr.msk.f32.vlgmr.msra.gmra.mxu1 %vm719_vm1, %v515_v31  ;;  %7993 = vmatprep.mubr.msk.f32.mxu0 %vm719_vm1, %v9126_v16  ;;  %13102 = vst [vmem:[#allocation8_spill] sm:$0xff] %v9197_v40  ;;  %v539_v49 = vsel %vm514_vm3, %v498_v43, %v478_v42  ;;  %v9252_v54 = vsel %vm514_vm3, %v477_v35, %v497_v36  ;;  %v480_v57 = vrot.slane %v9239_v52, 7  ;;  %v500_v58 = vrot.slane %v9242_v53, 7 }
  0x1b   : > { %8046 = vmatprep.mubr.msk.f32.mxu1 %vm719_vm1, %v9172_v33  ;;  %8154 = vmatpush3.msk.msra.mxu1 %vm828_vm0, %v6814_v5  ;;  %13104 = vst [vmem:[#allocation10_spill] sm:$0xff] %v9228_v48  ;;  %13105 = vst [vmem:[#allocation11_spill] sm:$0xff] %v9252_v54  ;;  %v9255_v55 = vmul.f32 %v9136_v20, %v539_v49  ;;  %v540_v56 = vsel %vm514_vm3, %v499_v51, %v479_v50  ;;  %v595_v61 = vrot.slane %v9109_v9, 1  ;;  %v9292_v5 = vld [vmem:[%s9096_s6 + $0x60] sm:$0xff]  ;;  %v9375_v49 = vld [vmem:[%s9096_s6 + $0x90] sm:$0xff] }
  0x1c   : > { %8265 = vmatprep.subr.msk.mxu1 %vm828_vm0, %v9219_v46  ;;  %v9279_v62 = vsel %vm514_vm3, %v478_v42, %v498_v43  ;;  %v9282_v63 = vmul.f32 %v9136_v20, %v540_v56  ;;  %v541_v0 = vsel %vm514_vm3, %v500_v58, %v480_v57  ;;  %v481_v1 = vrot.slane %v9264_v59, 7  ;;  %13115 = vst [vmem:[#allocation21_spill] sm:$0xff] %v9375_v49 }
  0x1d   : > { %7994 = vmatmul.mubr.msk.f32.gmra.mxu0 %vm719_vm1, %v9139_v21  ;;  %13106 = vst [vmem:[#allocation12_spill] sm:$0xff] %v9255_v55  ;;  %13107 = vst [vmem:[#allocation13_spill] sm:$0xff] %v9279_v62  ;;  %v501_v2 = vrot.slane %v9267_v60, 7  ;;  %v615_v3 = vrot.slane %v9111_v10, 1  ;;  %v9313_v10 = vsel %vm514_vm3, %v479_v50, %v499_v51  ;;  %v9316_v12 = vmul.f32 %v9136_v20, %v541_v0  ;;  %v9378_v50 = vld [vmem:[%s9096_s6 + $0x98] sm:$0xff]  ;;  %v9400_v0 = vld [vmem:[%s9096_s6 + $0xa0] sm:$0xff] }
  0x1e   : > { %8047 = vmatmul.mubr.msk.f32.gmra.mxu1 %vm719_vm1, %v9194_v39  ;;  %7996 = vmatprep.mubr.msk.f32.mxu0 %vm719_vm1, %v9151_v25  ;;  %13108 = vst [vmem:[#allocation14_spill] sm:$0xff] %v9282_v63  ;;  %13109 = vst [vmem:[#allocation15_spill] sm:$0xff] %v9313_v10  ;;  %v482_v17 = vrot.slane %v9292_v5, 7  ;;  %v502_v18 = vrot.slane %v9295_v6, 7  ;;  %v9338_v27 = vsel %vm514_vm3, %v480_v57, %v500_v58  ;;  %v483_v30 = vrot.slane %v9325_v23, 7 }
  0x1f   : > { %8049 = vmatprep.mubr.msk.f32.mxu1 %vm719_vm1, %v9197_v40  ;;  %v9303_v7 = vsel %vm635_vm4, %v595_v61, %v615_v3  ;;  %v9307_v9 = vsel %vm635_vm4, %v615_v3, %v595_v61  ;;  %13110 = vst [vmem:[#allocation16_spill] sm:$0xff] %v9316_v12  ;;  %v542_v13 = vsel %vm514_vm3, %v501_v2, %v481_v1  ;;  %13111 = vst [vmem:[#allocation17_spill] sm:$0xff] %v9338_v27 }
  0x20   : > { %v9341_v28 = vmul.f32 %v9136_v20, %v542_v13  ;;  %v543_v29 = vsel %vm514_vm3, %v502_v18, %v482_v17  ;;  %v503_v31 = vrot.slane %v9328_v24, 7  ;;  %v9363_v35 = vsel %vm514_vm3, %v481_v1, %v501_v2  ;;  %13116 = vst [vmem:[#allocation22_spill] sm:$0xff] %v9378_v50  ;;  %13119 = vst [vmem:[#allocation25_spill] sm:$0xff] %v9400_v0  ;;  %v9403_v1 = vld [vmem:[%s9096_s6 + $0xa8] sm:$0xff] }
  0x21   : > { %7997 = vmatmul.mubr.msk.f32.gmra.mxu0 %vm719_vm1, %v9154_v26  ;;  %13113 = vst [vmem:[#allocation19_spill] sm:$0xff] %v9363_v35  ;;  %v9366_v36 = vmul.f32 %v9136_v20, %v543_v29  ;;  %v484_v42 = vrot.slane %v9350_v32, 7  ;;  %v504_v43 = vrot.slane %v9353_v34, 7  ;;  %v9388_v51 = vsel %vm514_vm3, %v482_v17, %v502_v18  ;;  %13120 = vst [vmem:[#allocation26_spill] sm:$0xff] %v9403_v1  ;;  %v9425_v29 = vld [vmem:[%s9096_s6 + $0xb0] sm:$0xff] }
  0x22   : > { %8050 = vmatmul.mubr.msk.f32.gmra.mxu1 %vm719_vm1, %v9225_v47  ;;  %7999 = vmatprep.mubr.msk.f32.mxu0 %vm719_vm1, %v9182_v37  ;;  %13112 = vst [vmem:[#allocation18_spill] sm:$0xff] %v9341_v28  ;;  %v544_v41 = vsel %vm514_vm3, %v503_v31, %v483_v30  ;;  %13117 = vst [vmem:[#allocation23_spill] sm:$0xff] %v9388_v51  ;;  %v485_v58 = vrot.slane %v9375_v49, 7  ;;  %v505_v61 = vrot.slane %v9378_v50, 7  ;;  %v486_v17 = vrot.slane %v9400_v0, 7 }
  0x23   : > { %8052 = vmatprep.mubr.msk.f32.mxu1 %vm719_vm1, %v9228_v48  ;;  %13114 = vst [vmem:[#allocation20_spill] sm:$0xff] %v9366_v36  ;;  %v9391_v56 = vmul.f32 %v9136_v20, %v544_v41  ;;  %v545_v57 = vsel %vm514_vm3, %v504_v43, %v484_v42  ;;  %v9413_v2 = vsel %vm514_vm3, %v483_v30, %v503_v31  ;;  %v506_v18 = vrot.slane %v9403_v1, 7  ;;  %v9428_v41 = vld [vmem:[%s9096_s6 + $0xb8] sm:$0xff] }
  0x24   : > { %13121 = vst [vmem:[#allocation27_spill] sm:$0xff] %v9413_v2  ;;  %v9416_v3 = vmul.f32 %v9136_v20, %v545_v57  ;;  %v546_v13 = vsel %vm514_vm3, %v505_v61, %v485_v58  ;;  %13123 = vst [vmem:[#allocation29_spill] sm:$0xff] %v9425_v29  ;;  %v9438_v30 = vsel %vm514_vm3, %v484_v42, %v504_v43  ;;  %v487_v19 = vrot.slane %v9425_v29, 7 }
  0x25   : > { %8000 = vmatmul.mubr.msk.f32.gmra.mxu0 %vm719_vm1, %v9185_v38  ;;  %13118 = vst [vmem:[#allocation24_spill] sm:$0xff] %v9391_v56  ;;  %13124 = vst [vmem:[#allocation30_spill] sm:$0xff] %v9428_v41  ;;  %v9441_v31 = vmul.f32 %v9136_v20, %v546_v13  ;;  %v547_v57 = vsel %vm514_vm3, %v506_v18, %v486_v17  ;;  %v9463_v42 = vsel %vm514_vm3, %v485_v58, %v505_v61 }
  0x26   : > { %8053 = vmatmul.mubr.msk.f32.gmra.mxu1 %vm719_vm1, %v9252_v54  ;;  %8002 = vmatprep.mubr.msk.f32.mxu0 %vm719_vm1, %v9207_v44  ;;  %13122 = vst [vmem:[#allocation28_spill] sm:$0xff] %v9416_v3  ;;  %13125 = vst [vmem:[#allocation31_spill] sm:$0xff] %v9438_v30  ;;  %v9466_v43 = vmul.f32 %v9136_v20, %v547_v57  ;;  %v9488_v58 = vsel %vm514_vm3, %v486_v17, %v506_v18  ;;  %v461_v17 = vadd.s32 8, %v9086_v4 }
  0x27   : > { %8055 = vmatprep.mubr.msk.f32.mxu1 %vm719_vm1, %v9255_v55  ;;  %13126 = vst [vmem:[#allocation32_spill] sm:$0xff] %v9441_v31  ;;  %13129 = vst [vmem:[#allocation35_spill] sm:$0xff] %v9463_v42 }
  0x28   : > { %13130 = vst [vmem:[#allocation36_spill] sm:$0xff] %v9466_v43  ;;  %13133 = vst [vmem:[#allocation39_spill] sm:$0xff] %v9488_v58  ;;  %vm469_vm5 = vcmp.ne.s32.totalorder %v461_v17, 15  ;;  %v13138_v17 = vmov 0.0  }
  0x29   : > { %8003 = vmatmul.mubr.msk.f32.gmra.mxu0 %vm719_vm1, %v9210_v45 }
  0x2a   : > { %8056 = vmatmul.mubr.msk.f32.gmra.mxu1 %vm719_vm1, %v9279_v62  ;;  %8005 = vmatprep.mubr.msk.f32.mxu0 %vm719_vm1, %v9239_v52 }
  0x2b   : > { %8058 = vmatprep.mubr.msk.f32.mxu1 %vm719_vm1, %v9282_v63 }
  0x2d   : > { %8006 = vmatmul.mubr.msk.f32.gmra.mxu0 %vm719_vm1, %v9242_v53 }
  0x2e   : > { %8059 = vmatmul.mubr.msk.f32.gmra.mxu1 %vm719_vm1, %v9313_v10  ;;  %8008 = vmatprep.mubr.msk.f32.mxu0 %vm719_vm1, %v9264_v59 }
  0x2f   : > { %8061 = vmatprep.mubr.msk.f32.mxu1 %vm719_vm1, %v9316_v12 }
  0x31   : > { %8009 = vmatmul.mubr.msk.f32.gmra.mxu0 %vm719_vm1, %v9267_v60 }
  0x32   : > { %8062 = vmatmul.mubr.msk.f32.gmra.mxu1 %vm719_vm1, %v9338_v27  ;;  %8011 = vmatprep.mubr.msk.f32.mxu0 %vm719_vm1, %v9292_v5 }
  0x33   : > { %8064 = vmatprep.mubr.msk.f32.mxu1 %vm719_vm1, %v9341_v28 }
  0x35   : > { %8012 = vmatmul.mubr.msk.f32.gmra.mxu0 %vm719_vm1, %v9295_v6 }
  0x36   : > { %8065 = vmatmul.mubr.msk.f32.gmra.mxu1 %vm719_vm1, %v9363_v35  ;;  %8014 = vmatprep.mubr.msk.f32.mxu0 %vm719_vm1, %v9325_v23 }
  0x37   : > { %8067 = vmatprep.mubr.msk.f32.mxu1 %vm719_vm1, %v9366_v36 }
  0x39   : > { %8015 = vmatmul.mubr.msk.f32.gmra.mxu0 %vm719_vm1, %v9328_v24 }
  0x3a   : > { %8068 = vmatmul.mubr.msk.f32.gmra.mxu1 %vm719_vm1, %v9388_v51  ;;  %8017 = vmatprep.mubr.msk.f32.mxu0 %vm719_vm1, %v9350_v32 }
  0x3b   : > { %8070 = vmatprep.mubr.msk.f32.mxu1 %vm719_vm1, %v9391_v56  ;;  %v9453_v56 = vld [vmem:[%s9096_s6 + $0xc8] sm:$0xff] }
  0x3c   : > { %13128 = vst [vmem:[#allocation34_spill] sm:$0xff] %v9453_v56  ;;  %v508_v51 = vrot.slane %v9453_v56, 7 }
  0x3d   : > { %8018 = vmatmul.mubr.msk.f32.gmra.mxu0 %vm719_vm1, %v9353_v34 }
  0x3e   : > { %8071 = vmatmul.mubr.msk.f32.gmra.mxu1 %vm719_vm1, %v9413_v2  ;;  %8020 = vmatprep.mubr.msk.f32.mxu0 %vm719_vm1, %v9375_v49  ;;  %v507_v2 = vrot.slane %v9428_v41, 7 }
  0x3f   : > { %8073 = vmatprep.mubr.msk.f32.mxu1 %vm719_vm1, %v9416_v3  ;;  %v9450_v3 = vld [vmem:[%s9096_s6 + $0xc0] sm:$0xff] }
  0x40   : > { %13127 = vst [vmem:[#allocation33_spill] sm:$0xff] %v9450_v3  ;;  %v548_v13 = vsel %vm514_vm3, %v507_v2, %v487_v19  ;;  %v9514_v18 = vsel %vm514_vm3, %v487_v19, %v507_v2 }
  0x41   : > { %8021 = vmatmul.mubr.msk.f32.gmra.mxu0 %vm719_vm1, %v9378_v50  ;;  %v9491_v61 = vmul.f32 %v9136_v20, %v548_v13  ;;  %13136 = vst [vmem:[#allocation42_spill] sm:$0xff] %v9514_v18 }
  0x42   : > { %8074 = vmatmul.mubr.msk.f32.gmra.mxu1 %vm719_vm1, %v9438_v30  ;;  %8023 = vmatprep.mubr.msk.f32.mxu0 %vm719_vm1, %v9400_v0  ;;  %v488_v30 = vrot.slane %v9450_v3, 7  ;;  %v9478_v0 = vld [vmem:[%s9096_s6 + $0xd8] sm:$0xff] }
  0x43   : > { %8076 = vmatprep.mubr.msk.f32.mxu1 %vm719_vm1, %v9441_v31  ;;  %v9475_v31 = vld [vmem:[%s9096_s6 + $0xd0] sm:$0xff]  ;;  %13132 = vst [vmem:[#allocation38_spill] sm:$0xff] %v9478_v0  ;;  %13134 = vst [vmem:[#allocation40_spill] sm:$0xff] %v9491_v61 }
  0x44   : > { %13131 = vst [vmem:[#allocation37_spill] sm:$0xff] %v9475_v31  ;;  %v549_v57 = vsel %vm514_vm3, %v508_v51, %v488_v30  ;;  %v9533_v19 = vsel %vm514_vm3, %v488_v30, %v508_v51  ;;  %v596_v51 = vrot.slane %v9120_v14, 1 }
  0x45   : > { %8024 = vmatmul.mubr.msk.f32.gmra.mxu0 %vm719_vm1, %v9403_v1  ;;  %v489_v1 = vrot.slane %v9475_v31, 7  ;;  %v9517_v13 = vmul.f32 %v9136_v20, %v549_v57  ;;  %13137 = vst [vmem:[#allocation43_spill] sm:$0xff] %v9533_v19 }
  0x46   : > { %8077 = vmatmul.mubr.msk.f32.gmra.mxu1 %vm719_vm1, %v9463_v42  ;;  %8026 = vmatprep.mubr.msk.f32.mxu0 %vm719_vm1, %v9425_v29  ;;  %v509_v42 = vrot.slane %v9478_v0, 7  ;;  %v9500_v29 = vld [vmem:[%s9096_s6 + $0xe0] sm:$0xff] }
  0x47   : > { %8079 = vmatprep.mubr.msk.f32.mxu1 %vm719_vm1, %v9466_v43  ;;  %v9503_v43 = vld [vmem:[%s9096_s6 + $0xe8] sm:$0xff] }
  0x48   : > { %13135 = vst [vmem:[#allocation41_spill] sm:$0xff] %v9503_v43  ;;  %v510_v36 = vrot.slane %v9503_v43, 7  ;;  %v9557_v30 = vsel %vm514_vm3, %v489_v1, %v509_v42 }
  0x49   : > { %8027 = vmatmul.mubr.msk.f32.gmra.mxu0 %vm719_vm1, %v9428_v41  ;;  %v550_v41 = vsel %vm514_vm3, %v509_v42, %v489_v1  ;;  %13140 = vst [vmem:[#allocation45_spill] sm:$0xff] %v9557_v30  ;;  %v597_v42 = vrot.slane %v9126_v16, 1 }
  0x4a   : > { %8080 = vmatmul.mubr.msk.f32.gmra.mxu1 %vm719_vm1, %v9488_v58  ;;  %8029 = vmatprep.mubr.msk.f32.mxu0 %vm719_vm1, %v9450_v3  ;;  %v490_v58 = vrot.slane %v9500_v29, 7  ;;  %v9536_v2 = vmul.f32 %v9136_v20, %v550_v41  ;;  %v616_v41 = vrot.slane %v9122_v15, 1 }
  0x4b   : > { %8082 = vmatprep.mubr.msk.f32.mxu1 %vm719_vm1, %v9491_v61  ;;  %v491_v61 = vrot.slane %v9106_v8, 7 }
  0x4c   : > { %v551_v57 = vsel %vm514_vm3, %v510_v36, %v490_v58  ;;  %v657_v1 = vsel %vm635_vm4, %v616_v41, %v596_v51  ;;  %v9580_v15 = vsel %vm514_vm3, %v490_v58, %v510_v36  ;;  %v598_v58 = vrot.slane %v9151_v25, 1 }
  0x4d   : > { %8030 = vmatmul.mubr.msk.f32.gmra.mxu0 %vm719_vm1, %v9453_v56 }
  0x4e   : > { %8083 = vmatmul.mubr.msk.f32.gmra.mxu1 %vm719_vm1, %v9514_v18  ;;  %8032 = vmatprep.mubr.msk.f32.mxu0 %vm719_vm1, %v9475_v31  ;;  %v511_v18 = vrot.slane %v9116_v11, 7  ;;  %v9545_v31 = vsel %vm469_vm5, 1.0, %v13138_v17  ;;  %v9560_v17 = vmul.f32 %v9136_v20, %v551_v57  ;;  %v617_v57 = vrot.slane %v9139_v21, 1  ;;  %v9596_v21 = vld [vmem:[%s12901_s3 + $0x18] sm:$0xf] }
  0x4f   : > { %8085 = vmatprep.mubr.msk.f32.mxu1 %vm719_vm1, %v9517_v13  ;;  %13139 = vst [vmem:[#allocation44_spill] sm:$0xff] %v9545_v31  ;;  %v677_v14 = vmul.f32 %v9545_v31, %v9307_v9  ;;  %v9591_v16 = vmul.f32 %v9545_v31, %v657_v1 }
  0x50   : > { %13141 = vst [vmem:[#allocation46_spill] sm:$0xff] %v9560_v17  ;;  %v658_v36 = vsel %vm635_vm4, %v617_v57, %v597_v42 }
  0x51   : > { %8033 = vmatmul.mubr.msk.f32.gmra.mxu0 %vm719_vm1, %v9478_v0 }
  0x52   : > { %8086 = vmatmul.mubr.msk.f32.gmra.mxu1 %vm719_vm1, %v9533_v19  ;;  %8035 = vmatprep.mubr.msk.f32.mxu0 %vm719_vm1, %v9500_v29  ;;  %v552_v19 = vsel %vm514_vm3, %v511_v18, %v491_v61 }
  0x53   : > { %8088 = vmatprep.mubr.msk.f32.mxu1 %vm719_vm1, %v9536_v2  ;;  %v9583_v9 = vmul.f32 %v9136_v20, %v552_v19  ;;  %v9612_v19 = vsel %vm514_vm3, %v491_v61, %v511_v18  ;;  %v599_v18 = vrot.slane %v9182_v37, 1 }
  0x55   : > { %8036 = vmatmul.mubr.msk.f32.gmra.mxu0 %vm719_vm1, %v9503_v43 }
  0x56   : > { %8089 = vmatmul.mubr.msk.f32.gmra.mxu1 %vm719_vm1, %v9557_v30  ;;  %8099 = vmatprep.mubr.msk.f32.mxu0 %vm719_vm1, %v9303_v7  ;;  %v9587_v7 = vsel %vm635_vm4, %v596_v51, %v616_v41  ;;  %v9623_v51 = vmul.f32 %v9545_v31, %v658_v36  ;;  %v619_v41 = vrot.slane %v9185_v38, 1  ;;  %v620_v36 = vrot.slane %v9210_v45, 1 }
  0x57   : > { %8091 = vmatprep.mubr.msk.f32.mxu1 %vm719_vm1, %v9560_v17 }
  0x58   : > { %13143 = vst [vmem:[#allocation48_spill] sm:$0xff] %v9623_v51 }
  0x59   : > { %8100 = vmatmul.mubr.msk.f32.vlgmr.msra.gmra.mxu0 %vm719_vm1, %v677_v14  ;;  %v618_v14 = vrot.slane %v9154_v26, 1 }
  0x5a   : > { %8210 = vmatpush3.msk.msra.mxu0 %vm828_vm0, %v9144_v22  ;;  %8092 = vmatmul.mubr.msk.f32.gmra.mxu1 %vm719_vm1, %v9580_v15  ;;  %v9616_v22 = vsel %vm635_vm4, %v597_v42, %v617_v57  ;;  %v660_v57 = vsel %vm635_vm4, %v619_v41, %v599_v18 }
  0x5b   : > { %8102 = vmatprep.mubr.msk.f32.mxu0 %vm719_vm1, %v9587_v7  ;;  %8094 = vmatprep.mubr.msk.f32.mxu1 %vm719_vm1, %v9583_v9  ;;  %13142 = vst [vmem:[#allocation47_spill] sm:$0xff] %v9616_v22  ;;  %v659_v61 = vsel %vm635_vm4, %v618_v14, %v598_v58  ;;  %v9637_v1 = vsel %vm635_vm4, %v598_v58, %v618_v14 }
  0x5c   : > { %8321 = vmatprep.subr.msk.mxu0 %vm828_vm0, %v9596_v21  ;;  %13144 = vst [vmem:[#allocation49_spill] sm:$0xff] %v9637_v1  ;;  %v9642_v42 = vmul.f32 %v9545_v31, %v659_v61  ;;  %v9656_v58 = vsel %vm635_vm4, %v599_v18, %v619_v41  ;;  %v601_v61 = vrot.slane %v9239_v52, 1  ;;  %v621_v18 = vrot.slane %v9242_v53, 1  ;;  %v9682_v41 = vld [vmem:[%s12901_s3 + $0x1c] sm:$0xf] }
  0x5d   : > { %8103 = vmatmul.mubr.msk.f32.gmra.mxu0 %vm719_vm1, %v9591_v16  ;;  %13146 = vst [vmem:[#allocation51_spill] sm:$0xff] %v9656_v58 }
  0x5e   : > { %8095 = vmatmul.mubr.msk.f32.gmra.mxu1 %vm719_vm1, %v9612_v19  ;;  %8105 = vmatprep.mubr.msk.f32.mxu0 %vm719_vm1, %v9616_v22  ;;  %13145 = vst [vmem:[#allocation50_spill] sm:$0xff] %v9642_v42 }
  0x5f   : > { %8155 = vmatprep.mubr.msk.f32.mxu1 %vm719_vm1, %v9172_v33  ;;  %v600_v33 = vrot.slane %v9207_v44, 1 }
  0x61   : > { %8106 = vmatmul.mubr.msk.f32.gmra.mxu0 %vm719_vm1, %v9623_v51  ;;  %v661_v14 = vsel %vm635_vm4, %v620_v36, %v600_v33 }
  0x62   : > { %8156 = vmatmul.mubr.msk.f32.vlgmr.msra.gmra.mxu1 %vm719_vm1, %v9194_v39  ;;  %8108 = vmatprep.mubr.msk.f32.mxu0 %vm719_vm1, %v9637_v1  ;;  %v9663_v39 = vmul.f32 %v9545_v31, %v660_v57  ;;  %v9689_v57 = vmul.f32 %v9545_v31, %v661_v14  ;;  %v9703_v14 = vsel %vm635_vm4, %v601_v61, %v621_v18 }
  0x63   : > { %8158 = vmatprep.mubr.msk.f32.mxu1 %vm719_vm1, %v9197_v40  ;;  %8266 = vmatpush3.msk.msra.mxu1 %vm828_vm0, %v9219_v46  ;;  %v9677_v46 = vsel %vm635_vm4, %v600_v33, %v620_v36  ;;  %v662_v33 = vsel %vm635_vm4, %v621_v18, %v601_v61  ;;  %v602_v36 = vrot.slane %v9264_v59, 1  ;;  %13150 = vst [vmem:[#allocation55_spill] sm:$0xff] %v9703_v14  ;;  %v623_v61 = vrot.slane %v9295_v6, 1  ;;  %v13161_v40 = vld [vmem:[#allocation23_spill] sm:$0xff] }
  0x64   : > { %13147 = vst [vmem:[#allocation52_spill] sm:$0xff] %v9663_v39  ;;  %13148 = vst [vmem:[#allocation53_spill] sm:$0xff] %v9677_v46  ;;  %8377 = vmatprep.subr.msk.mxu1 %vm828_vm0, %v9682_v41 }
  0x65   : > { %8109 = vmatmul.mubr.msk.f32.gmra.mxu0 %vm719_vm1, %v9642_v42  ;;  %13149 = vst [vmem:[#allocation54_spill] sm:$0xff] %v9689_v57 }
  0x66   : > { %8159 = vmatmul.mubr.msk.f32.gmra.mxu1 %vm719_vm1, %v9225_v47  ;;  %8111 = vmatprep.mubr.msk.f32.mxu0 %vm719_vm1, %v9656_v58 }
  0x67   : > { %8161 = vmatprep.mubr.msk.f32.mxu1 %vm719_vm1, %v9228_v48  ;;  %v622_v48 = vrot.slane %v9267_v60, 1 }
  0x69   : > { %8112 = vmatmul.mubr.msk.f32.gmra.mxu0 %vm719_vm1, %v9663_v39  ;;  %v663_v47 = vsel %vm635_vm4, %v622_v48, %v602_v36  ;;  %v9722_v18 = vsel %vm635_vm4, %v602_v36, %v622_v48  ;;  %v624_v48 = vrot.slane %v9328_v24, 1 }
  0x6a   : > { %8162 = vmatmul.mubr.msk.f32.gmra.mxu1 %vm719_vm1, %v9252_v54  ;;  %8114 = vmatprep.mubr.msk.f32.mxu0 %vm719_vm1, %v9677_v46  ;;  %v9708_v54 = vmul.f32 %v9545_v31, %v662_v33  ;;  %13152 = vst [vmem:[#allocation57_spill] sm:$0xff] %v9722_v18  ;;  %v9727_v33 = vmul.f32 %v9545_v31, %v663_v47 }
  0x6b   : > { %8164 = vmatprep.mubr.msk.f32.mxu1 %vm719_vm1, %v9255_v55  ;;  %v603_v55 = vrot.slane %v9292_v5, 1 }
  0x6c   : > { %13151 = vst [vmem:[#allocation56_spill] sm:$0xff] %v9708_v54  ;;  %13153 = vst [vmem:[#allocation58_spill] sm:$0xff] %v9727_v33 }
  0x6d   : > { %8115 = vmatmul.mubr.msk.f32.gmra.mxu0 %vm719_vm1, %v9689_v57  ;;  %v9741_v47 = vsel %vm635_vm4, %v603_v55, %v623_v61 }
  0x6e   : > { %8165 = vmatmul.mubr.msk.f32.gmra.mxu1 %vm719_vm1, %v9279_v62  ;;  %8117 = vmatprep.mubr.msk.f32.mxu0 %vm719_vm1, %v9703_v14  ;;  %v664_v62 = vsel %vm635_vm4, %v623_v61, %v603_v55  ;;  %13154 = vst [vmem:[#allocation59_spill] sm:$0xff] %v9741_v47  ;;  %v625_v55 = vrot.slane %v9353_v34, 1 }
  0x6f   : > { %8167 = vmatprep.mubr.msk.f32.mxu1 %vm719_vm1, %v9282_v63  ;;  %v604_v63 = vrot.slane %v9325_v23, 1  ;;  %v9746_v36 = vmul.f32 %v9545_v31, %v664_v62 }
  0x71   : > { %8118 = vmatmul.mubr.msk.f32.gmra.mxu0 %vm719_vm1, %v9708_v54  ;;  %13155 = vst [vmem:[#allocation60_spill] sm:$0xff] %v9746_v36  ;;  %v9760_v62 = vsel %vm635_vm4, %v604_v63, %v624_v48 }
  0x72   : > { %8168 = vmatmul.mubr.msk.f32.gmra.mxu1 %vm719_vm1, %v9313_v10  ;;  %8120 = vmatprep.mubr.msk.f32.mxu0 %vm719_vm1, %v9722_v18  ;;  %v665_v10 = vsel %vm635_vm4, %v624_v48, %v604_v63  ;;  %13156 = vst [vmem:[#allocation61_spill] sm:$0xff] %v9760_v62  ;;  %v626_v63 = vrot.slane %v9378_v50, 1  ;;  %v13158_v48 = vld [vmem:[#allocation20_spill] sm:$0xff] }
  0x73   : > { %8170 = vmatprep.mubr.msk.f32.mxu1 %vm719_vm1, %v9316_v12  ;;  %v605_v12 = vrot.slane %v9350_v32, 1  ;;  %v9765_v61 = vmul.f32 %v9545_v31, %v665_v10 }
  0x75   : > { %8121 = vmatmul.mubr.msk.f32.gmra.mxu0 %vm719_vm1, %v9727_v33  ;;  %13157 = vst [vmem:[#allocation62_spill] sm:$0xff] %v9765_v61  ;;  %v9779_v10 = vsel %vm635_vm4, %v605_v12, %v625_v55 }
  0x76   : > { %8171 = vmatmul.mubr.msk.f32.gmra.mxu1 %vm719_vm1, %v9338_v27  ;;  %8123 = vmatprep.mubr.msk.f32.mxu0 %vm719_vm1, %v9741_v47  ;;  %v666_v27 = vsel %vm635_vm4, %v625_v55, %v605_v12  ;;  %13159 = vst [vmem:[#allocation63_spill] sm:$0xff] %v9779_v10  ;;  %v13164_v55 = vld [vmem:[#allocation24_spill] sm:$0xff] }
  0x77   : > { %8173 = vmatprep.mubr.msk.f32.mxu1 %vm719_vm1, %v9341_v28  ;;  %v606_v28 = vrot.slane %v9375_v49, 1  ;;  %v13163_v49 = vld [vmem:[#allocation26_spill] sm:$0xff] }
  0x78   : > { %v627_v12 = vrot.slane %v13163_v49, 1 }
  0x79   : > { %8124 = vmatmul.mubr.msk.f32.gmra.mxu0 %vm719_vm1, %v9746_v36  ;;  %v667_v50 = vsel %vm635_vm4, %v626_v63, %v606_v28 }
  0x7a   : > { %8174 = vmatmul.mubr.msk.f32.gmra.mxu1 %vm719_vm1, %v9363_v35  ;;  %8126 = vmatprep.mubr.msk.f32.mxu0 %vm719_vm1, %v9760_v62  ;;  %v9784_v35 = vmul.f32 %v9545_v31, %v666_v27  ;;  %v9798_v27 = vsel %vm635_vm4, %v606_v28, %v626_v63  ;;  %v13170_v63 = vld [vmem:[#allocation28_spill] sm:$0xff] }
  0x7b   : > { %8176 = vmatprep.mubr.msk.f32.mxu1 %vm719_vm1, %v13158_v48  ;;  %v13162_v48 = vld [vmem:[#allocation25_spill] sm:$0xff]  ;;  %13165 = vst [vmem:[#allocation65_spill] sm:$0xff] %v9798_v27 }
  0x7c   : > { %13160 = vst [vmem:[#allocation64_spill] sm:$0xff] %v9784_v35  ;;  %v607_v62 = vrot.slane %v13162_v48, 1 }
  0x7d   : > { %8127 = vmatmul.mubr.msk.f32.gmra.mxu0 %vm719_vm1, %v9765_v61  ;;  %v13169_v61 = vld [vmem:[#allocation30_spill] sm:$0xff] }
  0x7e   : > { %8177 = vmatmul.mubr.msk.f32.gmra.mxu1 %vm719_vm1, %v13161_v40  ;;  %8129 = vmatprep.mubr.msk.f32.mxu0 %vm719_vm1, %v9779_v10  ;;  %v9803_v40 = vmul.f32 %v9545_v31, %v667_v50  ;;  %v13167_v10 = vld [vmem:[#allocation27_spill] sm:$0xff]  ;;  %v668_v49 = vsel %vm635_vm4, %v627_v12, %v607_v62  ;;  %v628_v28 = vrot.slane %v13169_v61, 1  ;;  %v9817_v50 = vsel %vm635_vm4, %v607_v62, %v627_v12  ;;  %v13174_v12 = vld [vmem:[#allocation32_spill] sm:$0xff] }
  0x7f   : > { %8179 = vmatprep.mubr.msk.f32.mxu1 %vm719_vm1, %v13164_v55  ;;  %v13168_v55 = vld [vmem:[#allocation29_spill] sm:$0xff]  ;;  %v609_v61 = vrot.slane %v9450_v3, 1  ;;  %v629_v62 = vrot.slane %v9453_v56, 1 }
  0x80   : > { %13166 = vst [vmem:[#allocation66_spill] sm:$0xff] %v9803_v40  ;;  %v608_v48 = vrot.slane %v13168_v55, 1  ;;  %13171 = vst [vmem:[#allocation29_spill] sm:$0xff] %v9817_v50 }
  0x81   : > { %8130 = vmatmul.mubr.msk.f32.gmra.mxu0 %vm719_vm1, %v9784_v35  ;;  %v670_v56 = vsel %vm635_vm4, %v629_v62, %v609_v61 }
  0x82   : > { %8180 = vmatmul.mubr.msk.f32.gmra.mxu1 %vm719_vm1, %v13167_v10  ;;  %8132 = vmatprep.mubr.msk.f32.mxu0 %vm719_vm1, %v9798_v27  ;;  %v9822_v10 = vmul.f32 %v9545_v31, %v668_v49  ;;  %v13173_v27 = vld [vmem:[#allocation31_spill] sm:$0xff]  ;;  %v9836_v49 = vsel %vm635_vm4, %v608_v48, %v628_v28 }
  0x83   : > { %8182 = vmatprep.mubr.msk.f32.mxu1 %vm719_vm1, %v13170_v63  ;;  %v669_v63 = vsel %vm635_vm4, %v628_v28, %v608_v48  ;;  %13175 = vst [vmem:[#allocation68_spill] sm:$0xff] %v9836_v49  ;;  %v630_v48 = vrot.slane %v9478_v0, 1  ;;  %v13179_v28 = vld [vmem:[#allocation36_spill] sm:$0xff]  ;;  %v13182_v0 = vld [vmem:[#allocation39_spill] sm:$0xff] }
  0x84   : > { %13172 = vst [vmem:[#allocation67_spill] sm:$0xff] %v9822_v10 }
  0x85   : > { %8133 = vmatmul.mubr.msk.f32.gmra.mxu0 %vm719_vm1, %v9803_v40 }
  0x86   : > { %8183 = vmatmul.mubr.msk.f32.gmra.mxu1 %vm719_vm1, %v13173_v27  ;;  %8135 = vmatprep.mubr.msk.f32.mxu0 %vm719_vm1, %v9817_v50  ;;  %v9841_v27 = vmul.f32 %v9545_v31, %v669_v63  ;;  %v13177_v50 = vld [vmem:[#allocation35_spill] sm:$0xff]  ;;  %v9856_v63 = vsel %vm635_vm4, %v609_v61, %v629_v62  ;;  %v611_v62 = vrot.slane %v9500_v29, 1 }
  0x87   : > { %8185 = vmatprep.mubr.msk.f32.mxu1 %vm719_vm1, %v13174_v12  ;;  %v13178_v12 = vld [vmem:[#allocation37_spill] sm:$0xff]  ;;  %13180 = vst [vmem:[#allocation70_spill] sm:$0xff] %v9856_v63 }
  0x88   : > { %13176 = vst [vmem:[#allocation69_spill] sm:$0xff] %v9841_v27  ;;  %v610_v3 = vrot.slane %v13178_v12, 1  ;;  %v449_v12 = vld [vmem:[%s9866_s26 + $0x8] sm:$0xff] }
  0x89   : > { %8136 = vmatmul.mubr.msk.f32.gmra.mxu0 %vm719_vm1, %v9822_v10 }
  0x8a   : > { %8186 = vmatmul.mubr.msk.f32.gmra.mxu1 %vm719_vm1, %v13177_v50  ;;  %8138 = vmatprep.mubr.msk.f32.mxu0 %vm719_vm1, %v9836_v49  ;;  %v9861_v50 = vmul.f32 %v9545_v31, %v670_v56  ;;  %v671_v61 = vsel %vm635_vm4, %v630_v48, %v610_v3  ;;  %v631_v56 = vrot.slane %v9503_v43, 1  ;;  %v448_v49 = vld [vmem:[%s9866_s26] sm:$0xff] }
  0x8b   : > { %8188 = vmatprep.mubr.msk.f32.mxu1 %vm719_vm1, %v13179_v28  ;;  %v13183_v28 = vld [vmem:[#allocation40_spill] sm:$0xff] }
  0x8c   : > { %13181 = vst [vmem:[#allocation71_spill] sm:$0xff] %v9861_v50 }
  0x8d   : > { %8139 = vmatmul.mubr.msk.f32.gmra.mxu0 %vm719_vm1, %v9841_v27  ;;  %v9880_v27 = vsel %vm635_vm4, %v610_v3, %v630_v48  ;;  %v612_v3 = vrot.slane %v9106_v8, 1  ;;  %v632_v48 = vrot.slane %v9116_v11, 1  ;;  %v13191_v8 = vld [vmem:[#allocation43_spill] sm:$0xff] }
  0x8e   : > { %8189 = vmatmul.mubr.msk.f32.gmra.mxu1 %vm719_vm1, %v13182_v0  ;;  %8141 = vmatprep.mubr.msk.f32.mxu0 %vm719_vm1, %v9856_v63  ;;  %13184 = vst [vmem:[#allocation72_spill] sm:$0xff] %v9880_v27  ;;  %v9887_v0 = vmul.f32 %v9545_v31, %v671_v61  ;;  %v13186_v63 = vld [vmem:[#allocation42_spill] sm:$0xff]  ;;  %v9901_v61 = vsel %vm635_vm4, %v611_v62, %v631_v56 }
  0x8f   : > { %8191 = vmatprep.mubr.msk.f32.mxu1 %vm719_vm1, %v13183_v28  ;;  %v672_v28 = vsel %vm635_vm4, %v631_v56, %v611_v62  ;;  %13187 = vst [vmem:[#allocation74_spill] sm:$0xff] %v9901_v61  ;;  %v673_v62 = vsel %vm635_vm4, %v632_v48, %v612_v3 }
  0x90   : > { %13185 = vst [vmem:[#allocation73_spill] sm:$0xff] %v9887_v0  ;;  %v9929_v56 = vmul.f32 %v9545_v31, %v673_v62 }
  0x91   : > { %8142 = vmatmul.mubr.msk.f32.gmra.mxu0 %vm719_vm1, %v9861_v50  ;;  %v9903_v50 = vmul.f32 0.0, %v448_v49 }
  0x92   : > { %8192 = vmatmul.mubr.msk.f32.gmra.mxu1 %vm719_vm1, %v13186_v63  ;;  %8144 = vmatprep.mubr.msk.f32.mxu0 %vm719_vm1, %v9880_v27  ;;  %v9905_v63 = vmul.f32 0.0, %v449_v12  ;;  %v9910_v27 = vmul.f32 %v9545_v31, %v672_v28  ;;  %v9922_v12 = vsel %vm635_vm4, %v612_v3, %v632_v48  ;;  %13192 = vst [vmem:[#allocation43_spill] sm:$0xff] %v9929_v56  ;;  %v13193_v48 = vld [vmem:[#allocation3_spill] sm:$0xff] }
  0x93   : > { %8194 = vmatprep.mubr.msk.f32.mxu1 %vm719_vm1, %v9517_v13  ;;  %13188 = vst [vmem:[#allocation75_spill] sm:$0xff] %v9903_v50  ;;  %v492_v49 = vrot.slane %v9903_v50, 7 }
  0x94   : > { %13189 = vst [vmem:[#allocation76_spill] sm:$0xff] %v9905_v63  ;;  %13190 = vst [vmem:[#allocation77_spill] sm:$0xff] %v9910_v27  ;;  %v512_v28 = vrot.slane %v9905_v63, 7 }
  0x95   : > { %8145 = vmatmul.mubr.msk.f32.gmra.mxu0 %vm719_vm1, %v9887_v0 }
  0x96   : > { %8195 = vmatmul.mubr.msk.f32.gmra.mxu1 %vm719_vm1, %v13191_v8  ;;  %8147 = vmatprep.mubr.msk.f32.mxu0 %vm719_vm1, %v9901_v61  ;;  %v553_v3 = vsel %vm514_vm3, %v512_v28, %v492_v49 }
  0x97   : > { %8197 = vmatprep.mubr.msk.f32.mxu1 %vm719_vm1, %v9536_v2  ;;  %v9948_v62 = vmul.f32 %v9136_v20, %v553_v3  ;;  %v13196_v3 = vld [vmem:[#allocation7_spill] sm:$0xff] }
  0x99   : > { %8148 = vmatmul.mubr.msk.f32.gmra.mxu0 %vm719_vm1, %v9910_v27 }
  0x9a   : > { %8198 = vmatmul.mubr.msk.f32.gmra.mxu1 %vm719_vm1, %v9557_v30  ;;  %8150 = vmatprep.mubr.msk.f32.mxu0 %vm719_vm1, %v9922_v12  ;;  %v13194_v30 = vld [vmem:[#allocation4_spill] sm:$0xff] }
  0x9b   : > { %8200 = vmatprep.mubr.msk.f32.mxu1 %vm719_vm1, %v9560_v17  ;;  %v9955_v17 = vld [vmem:[%s12901_s3 + $0x20] sm:$0xf] }
  0x9d   : > { %8151 = vmatmul.mubr.msk.f32.gmra.mxu0 %vm719_vm1, %v9929_v56 }
  0x9e   : > { %8201 = vmatmul.mubr.msk.f32.gmra.mxu1 %vm719_vm1, %v9580_v15  ;;  %8211 = vmatprep.mubr.msk.f32.mxu0 %vm719_vm1, %v13193_v48  ;;  %v13195_v48 = vld [vmem:[#allocation5_spill] sm:$0xff] }
  0x9f   : > { %8203 = vmatprep.mubr.msk.f32.mxu1 %vm719_vm1, %v9583_v9 }
  0xa1   : > { %8212 = vmatmul.mubr.msk.f32.vlgmr.msra.gmra.mxu0 %vm719_vm1, %v13194_v30  ;;  %v9967_v30 = vsel %vm514_vm3, %v492_v49, %v512_v28  ;;  %v13201_v49 = vld [vmem:[#allocation25_spill] sm:$0xff]  ;;  %v13202_v28 = vld [vmem:[#allocation63_spill] sm:$0xff] }
  0xa2   : > { %8322 = vmatpush3.msk.msra.mxu0 %vm828_vm0, %v9596_v21  ;;  %8204 = vmatmul.mubr.msk.f32.gmra.mxu1 %vm719_vm1, %v9612_v19  ;;  %v13198_v21 = vld [vmem:[#allocation61_spill] sm:$0xff] }
  0xa3   : > { %8214 = vmatprep.mubr.msk.f32.mxu0 %vm719_vm1, %v13195_v48  ;;  %8206 = vmatprep.mubr.msk.f32.mxu1 %vm719_vm1, %v9948_v62 }
  0xa4   : > { %8433 = vmatprep.subr.msk.mxu0 %vm828_vm0, %v9955_v17 }
  0xa5   : > { %8215 = vmatmul.mubr.msk.f32.gmra.mxu0 %vm719_vm1, %v13196_v3 }
  0xa6   : > { %8207 = vmatmul.mubr.msk.f32.gmra.mxu1 %vm719_vm1, %v9967_v30  ;;  %8217 = vmatprep.mubr.msk.f32.mxu0 %vm719_vm1, %v9151_v25 }
  0xa7   : > { %8267 = vmatprep.mubr.msk.f32.mxu1 %vm719_vm1, %v9587_v7  ;;  %v13199_v7 = vld [vmem:[#allocation22_spill] sm:$0xff] }
  0xa9   : > { %8218 = vmatmul.mubr.msk.f32.gmra.mxu0 %vm719_vm1, %v9154_v26 }
  0xaa   : > { %8268 = vmatmul.mubr.msk.f32.vlgmr.msra.gmra.mxu1 %vm719_vm1, %v9591_v16  ;;  %8220 = vmatprep.mubr.msk.f32.mxu0 %vm719_vm1, %v9182_v37  ;;  %v13197_v16 = vld [vmem:[#allocation21_spill] sm:$0xff] }
  0xab   : > { %8270 = vmatprep.mubr.msk.f32.mxu1 %vm719_vm1, %v9616_v22  ;;  %8378 = vmatpush3.msk.msra.mxu1 %vm828_vm0, %v9682_v41  ;;  %v13200_v41 = vld [vmem:[#allocation62_spill] sm:$0xff]  ;;  %v13218_v22 = vld [vmem:[#allocation72_spill] sm:$0xff] }
  0xad   : > { %8221 = vmatmul.mubr.msk.f32.gmra.mxu0 %vm719_vm1, %v9185_v38 }
  0xae   : > { %8271 = vmatmul.mubr.msk.f32.gmra.mxu1 %vm719_vm1, %v9623_v51  ;;  %8223 = vmatprep.mubr.msk.f32.mxu0 %vm719_vm1, %v9207_v44  ;;  %v13216_v51 = vld [vmem:[#allocation71_spill] sm:$0xff] }
  0xaf   : > { %8273 = vmatprep.mubr.msk.f32.mxu1 %vm719_vm1, %v9637_v1 }
  0xb1   : > { %8224 = vmatmul.mubr.msk.f32.gmra.mxu0 %vm719_vm1, %v9210_v45 }
  0xb2   : > { %8274 = vmatmul.mubr.msk.f32.gmra.mxu1 %vm719_vm1, %v9642_v42  ;;  %8226 = vmatprep.mubr.msk.f32.mxu0 %vm719_vm1, %v9239_v52 }
  0xb3   : > { %8276 = vmatprep.mubr.msk.f32.mxu1 %vm719_vm1, %v9656_v58 }
  0xb5   : > { %8227 = vmatmul.mubr.msk.f32.gmra.mxu0 %vm719_vm1, %v9242_v53 }
  0xb6   : > { %8277 = vmatmul.mubr.msk.f32.gmra.mxu1 %vm719_vm1, %v9663_v39  ;;  %8229 = vmatprep.mubr.msk.f32.mxu0 %vm719_vm1, %v9264_v59  ;;  %v13215_v39 = vld [vmem:[#allocation70_spill] sm:$0xff] }
  0xb7   : > { %8279 = vmatprep.mubr.msk.f32.mxu1 %vm719_vm1, %v9677_v46  ;;  %v13214_v46 = vld [vmem:[#allocation69_spill] sm:$0xff] }
  0xb9   : > { %8230 = vmatmul.mubr.msk.f32.gmra.mxu0 %vm719_vm1, %v9267_v60 }
  0xba   : > { %8280 = vmatmul.mubr.msk.f32.gmra.mxu1 %vm719_vm1, %v9689_v57  ;;  %8232 = vmatprep.mubr.msk.f32.mxu0 %vm719_vm1, %v9292_v5 }
  0xbb   : > { %8282 = vmatprep.mubr.msk.f32.mxu1 %vm719_vm1, %v9703_v14  ;;  %v13212_v14 = vld [vmem:[#allocation68_spill] sm:$0xff] }
  0xbd   : > { %8233 = vmatmul.mubr.msk.f32.gmra.mxu0 %vm719_vm1, %v9295_v6 }
  0xbe   : > { %8283 = vmatmul.mubr.msk.f32.gmra.mxu1 %vm719_vm1, %v9708_v54  ;;  %8235 = vmatprep.mubr.msk.f32.mxu0 %vm719_vm1, %v9325_v23  ;;  %v13211_v54 = vld [vmem:[#allocation37_spill] sm:$0xff] }
  0xbf   : > { %8285 = vmatprep.mubr.msk.f32.mxu1 %vm719_vm1, %v9722_v18  ;;  %v13209_v18 = vld [vmem:[#allocation34_spill] sm:$0xff] }
  0xc1   : > { %8236 = vmatmul.mubr.msk.f32.gmra.mxu0 %vm719_vm1, %v9328_v24 }
  0xc2   : > { %8286 = vmatmul.mubr.msk.f32.gmra.mxu1 %vm719_vm1, %v9727_v33  ;;  %8238 = vmatprep.mubr.msk.f32.mxu0 %vm719_vm1, %v9350_v32 }
  0xc3   : > { %8288 = vmatprep.mubr.msk.f32.mxu1 %vm719_vm1, %v9741_v47  ;;  %v13203_v47 = vld [vmem:[#allocation26_spill] sm:$0xff] }
  0xc5   : > { %8239 = vmatmul.mubr.msk.f32.gmra.mxu0 %vm719_vm1, %v9353_v34 }
  0xc6   : > { %8289 = vmatmul.mubr.msk.f32.gmra.mxu1 %vm719_vm1, %v9746_v36  ;;  %8241 = vmatprep.mubr.msk.f32.mxu0 %vm719_vm1, %v13197_v16  ;;  %v13205_v36 = vld [vmem:[#allocation30_spill] sm:$0xff] }
  0xc7   : > { %8291 = vmatprep.mubr.msk.f32.mxu1 %vm719_vm1, %v13198_v21  ;;  %v13204_v21 = vld [vmem:[#allocation65_spill] sm:$0xff] }
  0xc9   : > { %8242 = vmatmul.mubr.msk.f32.gmra.mxu0 %vm719_vm1, %v13199_v7 }
  0xca   : > { %8292 = vmatmul.mubr.msk.f32.gmra.mxu1 %vm719_vm1, %v13200_v41  ;;  %8244 = vmatprep.mubr.msk.f32.mxu0 %vm719_vm1, %v13201_v49  ;;  %v13206_v41 = vld [vmem:[#allocation33_spill] sm:$0xff] }
  0xcb   : > { %8294 = vmatprep.mubr.msk.f32.mxu1 %vm719_vm1, %v13202_v28  ;;  %v13207_v28 = vld [vmem:[#allocation29_spill] sm:$0xff] }
  0xcd   : > { %8245 = vmatmul.mubr.msk.f32.gmra.mxu0 %vm719_vm1, %v13203_v47 }
  0xce   : > { %8295 = vmatmul.mubr.msk.f32.gmra.mxu1 %vm719_vm1, %v9784_v35  ;;  %8247 = vmatprep.mubr.msk.f32.mxu0 %vm719_vm1, %v13168_v55 }
  0xcf   : > { %8297 = vmatprep.mubr.msk.f32.mxu1 %vm719_vm1, %v13204_v21 }
  0xd1   : > { %8248 = vmatmul.mubr.msk.f32.gmra.mxu0 %vm719_vm1, %v13205_v36 }
  0xd2   : > { %8298 = vmatmul.mubr.msk.f32.gmra.mxu1 %vm719_vm1, %v9803_v40  ;;  %8250 = vmatprep.mubr.msk.f32.mxu0 %vm719_vm1, %v13206_v41 }
  0xd3   : > { %8300 = vmatprep.mubr.msk.f32.mxu1 %vm719_vm1, %v13207_v28  ;;  %v10069_v33 = vpop.f32.mrf.mxu1  ;;  %v13213_v28 = vld [vmem:[#allocation38_spill] sm:$0xff] }
  0xd4   : > { %13208 = vst [vmem:[#allocation3_spill] sm:$0xff] %v10069_v33 }
  0xd5   : > { %v7989_v35 = vpop.f32.mrf.mxu0  ;;  %8251 = vmatmul.mubr.msk.f32.gmra.mxu0 %vm719_vm1, %v13209_v18  ;;  %v10075_v21 = vpop.f32.mrf.mxu1 }
  0xd6   : > { %8301 = vmatmul.mubr.msk.f32.gmra.mxu1 %vm719_vm1, %v9822_v10  ;;  %13210 = vst [vmem:[#allocation4_spill] sm:$0xff] %v10075_v21  ;;  %8253 = vmatprep.mubr.msk.f32.mxu0 %vm719_vm1, %v13211_v54 }
  0xd7   : > { %v898_v40 = vpop.f32.mrf.mxu0  ;;  %8303 = vmatprep.mubr.msk.f32.mxu1 %vm719_vm1, %v13212_v14 }
  0xd9   : > { %v7992_v57 = vpop.f32.mrf.mxu0  ;;  %8254 = vmatmul.mubr.msk.f32.gmra.mxu0 %vm719_vm1, %v13213_v28 }
  0xda   : > { %v8045_v33 = vpop.f32.mrf.mxu1  ;;  %8304 = vmatmul.mubr.msk.f32.gmra.mxu1 %vm719_vm1, %v13214_v46  ;;  %8256 = vmatprep.mubr.msk.f32.mxu0 %vm719_vm1, %v9500_v29  ;;  %v13217_v46 = vld [vmem:[#allocation2_spill] sm:$0xff] }
  0xdb   : > { %v10087_v10 = vadd.f32 %v8045_v33, %v7989_v35  ;;  %v908_v21 = vpop.f32.mrf.mxu0  ;;  %8306 = vmatprep.mubr.msk.f32.mxu1 %vm719_vm1, %v13215_v39 }
  0xdc   : > { %v1254_v58 = vpop.f32.mrf.mxu1 }
  0xdd   : > { %v10091_v42 = vadd.f32 %v1254_v58, %v898_v40  ;;  %v7995_v14 = vpop.f32.mrf.mxu0  ;;  %8257 = vmatmul.mubr.msk.f32.gmra.mxu0 %vm719_vm1, %v9503_v43 }
  0xde   : > { %v8048_v1 = vpop.f32.mrf.mxu1  ;;  %8307 = vmatmul.mubr.msk.f32.gmra.mxu1 %vm719_vm1, %v13216_v51  ;;  %8259 = vmatprep.mubr.msk.f32.mxu0 %vm719_vm1, %v13217_v46 }
  0xdf   : > { %v10099_v35 = vadd.f32 %v8048_v1, %v7992_v57  ;;  %v918_v33 = vpop.f32.mrf.mxu0  ;;  %8309 = vmatprep.mubr.msk.f32.mxu1 %vm719_vm1, %v13218_v22  ;;  %v633_v57 = vrot.slane %v9905_v63, 1 }
  0xe0   : > { %v1264_v39 = vpop.f32.mrf.mxu1 }
  0xe1   : > { %v10103_v40 = vadd.f32 %v1264_v39, %v908_v21  ;;  %v7998_v58 = vpop.f32.mrf.mxu0  ;;  %8260 = vmatmul.mubr.msk.f32.gmra.mxu0 %vm719_vm1, %v9116_v11  ;;  %v613_v39 = vrot.slane %v9903_v50, 1 }
  0xe2   : > { %v8051_v43 = vpop.f32.mrf.mxu1  ;;  %8310 = vmatmul.mubr.msk.f32.gmra.mxu1 %vm719_vm1, %v9887_v0  ;;  %8262 = vmatprep.mubr.msk.f32.mxu0 %vm719_vm1, %v9903_v50  ;;  %v13220_v50 = vld [vmem:[#allocation9_spill] sm:$0xff] }
  0xe3   : > { %v10111_v1 = vadd.f32 %v8051_v43, %v7995_v14  ;;  %v928_v46 = vpop.f32.mrf.mxu0  ;;  %8312 = vmatprep.mubr.msk.f32.mxu1 %vm719_vm1, %v9901_v61  ;;  %v13219_v43 = vld [vmem:[#allocation8_spill] sm:$0xff]  ;;  %v10133_v51 = vsel %vm635_vm4, %v613_v39, %v633_v57 }
  0xe4   : > { %v1274_v21 = vpop.f32.mrf.mxu1 }
  0xe5   : > { %v10117_v22 = vadd.f32 %v1274_v21, %v918_v33  ;;  %v8001_v11 = vpop.f32.mrf.mxu0  ;;  %8263 = vmatmul.mubr.msk.f32.gmra.mxu0 %vm719_vm1, %v9905_v63  ;;  %v674_v33 = vsel %vm635_vm4, %v633_v57, %v613_v39  ;;  %v13222_v57 = vld [vmem:[#allocation10_spill] sm:$0xff] }
  0xe6   : > { %v8054_v0 = vpop.f32.mrf.mxu1  ;;  %8313 = vmatmul.mubr.msk.f32.gmra.mxu1 %vm719_vm1, %v9910_v27  ;;  %8323 = vmatprep.mubr.msk.f32.mxu0 %vm719_vm1, %v13219_v43 }
  0xe7   : > { %v10125_v14 = vadd.f32 %v8054_v0, %v7998_v58  ;;  %v938_v61 = vpop.f32.mrf.mxu0  ;;  %8315 = vmatprep.mubr.msk.f32.mxu1 %vm719_vm1, %v9922_v12  ;;  %v10144_v58 = vmul.f32 %v9545_v31, %v674_v33  ;;  %v13225_v31 = vld [vmem:[#allocation13_spill] sm:$0xff] }
  0xe8   : > { %v1284_v21 = vpop.f32.mrf.mxu1 }
  0xe9   : > { %v10135_v63 = vadd.f32 %v1284_v21, %v928_v46  ;;  %v8004_v27 = vpop.f32.mrf.mxu0  ;;  %8324 = vmatmul.mubr.msk.f32.vlgmr.msra.gmra.mxu0 %vm719_vm1, %v13220_v50  ;;  %13221 = vst [vmem:[#allocation5_spill] sm:$0xff] %v10144_v58  ;;  %v13223_v21 = vld [vmem:[#allocation11_spill] sm:$0xff] }
  0xea   : > { %8434 = vmatpush3.msk.msra.mxu0 %vm828_vm0, %v9955_v17  ;;  %v8057_v0 = vpop.f32.mrf.mxu1  ;;  %8316 = vmatmul.mubr.msk.f32.gmra.mxu1 %vm719_vm1, %v9929_v56 }
  0xeb   : > { %v10146_v43 = vadd.f32 %v8057_v0, %v8001_v11  ;;  %v948_v39 = vpop.f32.mrf.mxu0  ;;  %8326 = vmatprep.mubr.msk.f32.mxu0 %vm719_vm1, %v13222_v57  ;;  %8318 = vmatprep.mubr.msk.f32.mxu1 %vm719_vm1, %v10133_v51  ;;  %v13224_v11 = vld [vmem:[#allocation12_spill] sm:$0xff] }
  0xec   : > { %v1294_v50 = vpop.f32.mrf.mxu1 }
  0xed   : > { %v10152_v46 = vadd.f32 %v1294_v50, %v938_v61  ;;  %v8007_v17 = vpop.f32.mrf.mxu0  ;;  %8327 = vmatmul.mubr.msk.f32.gmra.mxu0 %vm719_vm1, %v13223_v21 }
  0xee   : > { %v8060_v56 = vpop.f32.mrf.mxu1  ;;  %8319 = vmatmul.mubr.msk.f32.gmra.mxu1 %vm719_vm1, %v10144_v58  ;;  %8329 = vmatprep.mubr.msk.f32.mxu0 %vm719_vm1, %v13224_v11  ;;  %v13226_v58 = vld [vmem:[#allocation14_spill] sm:$0xff] }
  0xef   : > { %v10160_v33 = vadd.f32 %v8060_v56, %v8004_v27  ;;  %v958_v0 = vpop.f32.mrf.mxu0  ;;  %8379 = vmatprep.mubr.msk.f32.mxu1 %vm719_vm1, %v13195_v48 }
  0xf0   : > { %v1304_v57 = vpop.f32.mrf.mxu1 }
  0xf1   : > { %v10164_v61 = vadd.f32 %v1304_v57, %v948_v39  ;;  %v8010_v50 = vpop.f32.mrf.mxu0  ;;  %8330 = vmatmul.mubr.msk.f32.gmra.mxu0 %vm719_vm1, %v13225_v31  ;;  %v13227_v57 = vld [vmem:[#allocation15_spill] sm:$0xff] }
  0xf2   : > { %v8063_v21 = vpop.f32.mrf.mxu1  ;;  %8380 = vmatmul.mubr.msk.f32.vlgmr.msra.gmra.mxu1 %vm719_vm1, %v13196_v3  ;;  %8332 = vmatprep.mubr.msk.f32.mxu0 %vm719_vm1, %v13226_v58  ;;  %v13228_v3 = vld [vmem:[#allocation16_spill] sm:$0xff] }
  0xf3   : > { %v10172_v27 = vadd.f32 %v8063_v21, %v8007_v17  ;;  %v968_v56 = vpop.f32.mrf.mxu0  ;;  %8382 = vmatprep.mubr.msk.f32.mxu1 %vm719_vm1, %v9151_v25 }
  0xf4   : > { %v1314_v48 = vpop.f32.mrf.mxu1 }
  0xf5   : > { %v10176_v39 = vadd.f32 %v1314_v48, %v958_v0  ;;  %v8013_v11 = vpop.f32.mrf.mxu0  ;;  %8333 = vmatmul.mubr.msk.f32.gmra.mxu0 %vm719_vm1, %v13227_v57  ;;  %v13229_v48 = vld [vmem:[#allocation17_spill] sm:$0xff] }
  0xf6   : > { %v8066_v31 = vpop.f32.mrf.mxu1  ;;  %8383 = vmatmul.mubr.msk.f32.gmra.mxu1 %vm719_vm1, %v9154_v26  ;;  %8335 = vmatprep.mubr.msk.f32.mxu0 %vm719_vm1, %v13228_v3  ;;  %v13230_v26 = vld [vmem:[#allocation18_spill] sm:$0xff] }
  0xf7   : > { %v10184_v58 = vadd.f32 %v8066_v31, %v8010_v50  ;;  %v978_v17 = vpop.f32.mrf.mxu0  ;;  %8385 = vmatprep.mubr.msk.f32.mxu1 %vm719_vm1, %v9182_v37 }
  0xf8   : > { %v1324_v25 = vpop.f32.mrf.mxu1 }
  0xf9   : > { %v10188_v0 = vadd.f32 %v1324_v25, %v968_v56  ;;  %v8016_v21 = vpop.f32.mrf.mxu0  ;;  %8336 = vmatmul.mubr.msk.f32.gmra.mxu0 %vm719_vm1, %v13229_v48  ;;  %v13231_v25 = vld [vmem:[#allocation19_spill] sm:$0xff] }
  0xfa   : > { %v8069_v57 = vpop.f32.mrf.mxu1  ;;  %8386 = vmatmul.mubr.msk.f32.gmra.mxu1 %vm719_vm1, %v9185_v38  ;;  %8338 = vmatprep.mubr.msk.f32.mxu0 %vm719_vm1, %v13230_v26  ;;  %v13232_v38 = vld [vmem:[#allocation20_spill] sm:$0xff] }
  0xfb   : > { %v10196_v50 = vadd.f32 %v8069_v57, %v8013_v11  ;;  %v988_v31 = vpop.f32.mrf.mxu0  ;;  %8388 = vmatprep.mubr.msk.f32.mxu1 %vm719_vm1, %v9207_v44 }
  0xfc   : > { %v1334_v37 = vpop.f32.mrf.mxu1 }
  0xfd   : > { %v10200_v56 = vadd.f32 %v1334_v37, %v978_v17  ;;  %v8019_v3 = vpop.f32.mrf.mxu0  ;;  %8339 = vmatmul.mubr.msk.f32.gmra.mxu0 %vm719_vm1, %v13231_v25  ;;  %v13233_v37 = vld [vmem:[#allocation23_spill] sm:$0xff] }
  0xfe   : > { %v8072_v48 = vpop.f32.mrf.mxu1  ;;  %8389 = vmatmul.mubr.msk.f32.gmra.mxu1 %vm719_vm1, %v9210_v45  ;;  %8341 = vmatprep.mubr.msk.f32.mxu0 %vm719_vm1, %v13232_v38  ;;  %v13234_v45 = vld [vmem:[#allocation24_spill] sm:$0xff] }
  0xff   : > { %v10208_v11 = vadd.f32 %v8072_v48, %v8016_v21  ;;  %v998_v57 = vpop.f32.mrf.mxu0  ;;  %8391 = vmatprep.mubr.msk.f32.mxu1 %vm719_vm1, %v9239_v52 }
 0x100   : > { %v1344_v44 = vpop.f32.mrf.mxu1 }
 0x101   : > { %v10212_v17 = vadd.f32 %v1344_v44, %v988_v31  ;;  %v8022_v26 = vpop.f32.mrf.mxu0  ;;  %8342 = vmatmul.mubr.msk.f32.gmra.mxu0 %vm719_vm1, %v13233_v37  ;;  %v13235_v44 = vld [vmem:[#allocation27_spill] sm:$0xff] }
 0x102   : > { %v8075_v25 = vpop.f32.mrf.mxu1  ;;  %8392 = vmatmul.mubr.msk.f32.gmra.mxu1 %vm719_vm1, %v9242_v53  ;;  %8344 = vmatprep.mubr.msk.f32.mxu0 %vm719_vm1, %v13234_v45  ;;  %v13236_v53 = vld [vmem:[#allocation28_spill] sm:$0xff] }
 0x103   : > { %v10220_v21 = vadd.f32 %v8075_v25, %v8019_v3  ;;  %v1008_v48 = vpop.f32.mrf.mxu0  ;;  %8394 = vmatprep.mubr.msk.f32.mxu1 %vm719_vm1, %v9264_v59 }
 0x104   : > { %v1354_v52 = vpop.f32.mrf.mxu1 }
 0x105   : > { %v10224_v31 = vadd.f32 %v1354_v52, %v998_v57  ;;  %v8025_v38 = vpop.f32.mrf.mxu0  ;;  %8345 = vmatmul.mubr.msk.f32.gmra.mxu0 %vm719_vm1, %v13235_v44  ;;  %v13237_v52 = vld [vmem:[#allocation31_spill] sm:$0xff] }
 0x106   : > { %v8078_v37 = vpop.f32.mrf.mxu1  ;;  %8395 = vmatmul.mubr.msk.f32.gmra.mxu1 %vm719_vm1, %v9267_v60  ;;  %8347 = vmatprep.mubr.msk.f32.mxu0 %vm719_vm1, %v13236_v53  ;;  %v13238_v60 = vld [vmem:[#allocation32_spill] sm:$0xff] }
 0x107   : > { %v10232_v3 = vadd.f32 %v8078_v37, %v8022_v26  ;;  %v1018_v25 = vpop.f32.mrf.mxu0  ;;  %8397 = vmatprep.mubr.msk.f32.mxu1 %vm719_vm1, %v9292_v5 }
 0x108   : > { %v1364_v59 = vpop.f32.mrf.mxu1 }
 0x109   : > { %v10236_v57 = vadd.f32 %v1364_v59, %v1008_v48  ;;  %v8028_v45 = vpop.f32.mrf.mxu0  ;;  %8348 = vmatmul.mubr.msk.f32.gmra.mxu0 %vm719_vm1, %v13237_v52  ;;  %v13239_v59 = vld [vmem:[#allocation35_spill] sm:$0xff] }
 0x10a   : > { %v8081_v44 = vpop.f32.mrf.mxu1  ;;  %8398 = vmatmul.mubr.msk.f32.gmra.mxu1 %vm719_vm1, %v9295_v6  ;;  %8350 = vmatprep.mubr.msk.f32.mxu0 %vm719_vm1, %v13238_v60  ;;  %v13240_v6 = vld [vmem:[#allocation36_spill] sm:$0xff] }
 0x10b   : > { %v10244_v26 = vadd.f32 %v8081_v44, %v8025_v38  ;;  %v1028_v37 = vpop.f32.mrf.mxu0  ;;  %8400 = vmatprep.mubr.msk.f32.mxu1 %vm719_vm1, %v9325_v23 }
 0x10c   : > { %v1374_v5 = vpop.f32.mrf.mxu1 }
 0x10d   : > { %v10248_v48 = vadd.f32 %v1374_v5, %v1018_v25  ;;  %v8031_v53 = vpop.f32.mrf.mxu0  ;;  %8351 = vmatmul.mubr.msk.f32.gmra.mxu0 %vm719_vm1, %v13239_v59  ;;  %v13241_v5 = vld [vmem:[#allocation39_spill] sm:$0xff] }
 0x10e   : > { %v8084_v52 = vpop.f32.mrf.mxu1  ;;  %8401 = vmatmul.mubr.msk.f32.gmra.mxu1 %vm719_vm1, %v9328_v24  ;;  %8353 = vmatprep.mubr.msk.f32.mxu0 %vm719_vm1, %v13240_v6  ;;  %v13242_v24 = vld [vmem:[#allocation40_spill] sm:$0xff] }
 0x10f   : > { %v10256_v38 = vadd.f32 %v8084_v52, %v8028_v45  ;;  %v1038_v44 = vpop.f32.mrf.mxu0  ;;  %8403 = vmatprep.mubr.msk.f32.mxu1 %vm719_vm1, %v9350_v32 }
 0x110   : > { %v1384_v23 = vpop.f32.mrf.mxu1 }
 0x111   : > { %v10260_v25 = vadd.f32 %v1384_v23, %v1028_v37  ;;  %v8034_v60 = vpop.f32.mrf.mxu0  ;;  %8354 = vmatmul.mubr.msk.f32.gmra.mxu0 %vm719_vm1, %v13241_v5  ;;  %v13243_v23 = vld [vmem:[#allocation42_spill] sm:$0xff] }
 0x112   : > { %v8087_v59 = vpop.f32.mrf.mxu1  ;;  %8404 = vmatmul.mubr.msk.f32.gmra.mxu1 %vm719_vm1, %v9353_v34  ;;  %8356 = vmatprep.mubr.msk.f32.mxu0 %vm719_vm1, %v13242_v24 }
 0x113   : > { %v10268_v45 = vadd.f32 %v8087_v59, %v8031_v53  ;;  %v1048_v52 = vpop.f32.mrf.mxu0  ;;  %8406 = vmatprep.mubr.msk.f32.mxu1 %vm719_vm1, %v13197_v16  ;;  %v451_v59 = vld [vmem:[%s9866_s26 + $0x18] sm:$0xff] }
 0x114   : > { %v1394_v32 = vpop.f32.mrf.mxu1 }
 0x115   : > { %v10272_v37 = vadd.f32 %v1394_v32, %v1038_v44  ;;  %v8037_v6 = vpop.f32.mrf.mxu0  ;;  %8357 = vmatmul.mubr.msk.f32.gmra.mxu0 %vm719_vm1, %v13243_v23  ;;  %v450_v44 = vld [vmem:[%s9866_s26 + $0x10] sm:$0xff] }
 0x116   : > { %v8090_v5 = vpop.f32.mrf.mxu1  ;;  %8407 = vmatmul.mubr.msk.f32.gmra.mxu1 %vm719_vm1, %v13199_v7  ;;  %8359 = vmatprep.mubr.msk.f32.mxu0 %vm719_vm1, %v9517_v13 }
 0x117   : > { %v10280_v34 = vadd.f32 %v8090_v5, %v8034_v60  ;;  %v10282_v53 = vpop.f32.mrf.mxu0  ;;  %8409 = vmatprep.mubr.msk.f32.mxu1 %vm719_vm1, %v13201_v49  ;;  %v10301_v60 = vmul.f32 0.0, %v450_v44 }
 0x118   : > { %13244 = vst [vmem:[#allocation7_spill] sm:$0xff] %v10282_v53  ;;  %v1404_v16 = vpop.f32.mrf.mxu1 }
 0x119   : > { %v10288_v24 = vadd.f32 %v1404_v16, %v1048_v52  ;;  %v8101_v32 = vpop.f32.mrf.mxu0  ;;  %8360 = vmatmul.mubr.msk.f32.gmra.mxu0 %vm719_vm1, %v13191_v8  ;;  %v10303_v52 = vmul.f32 0.0, %v451_v59 }
 0x11a   : > { %v1792_v7 = vadd.f32 %v8101_v32, %v10087_v10  ;;  %v8093_v23 = vpop.f32.mrf.mxu1  ;;  %8410 = vmatmul.mubr.msk.f32.gmra.mxu1 %vm719_vm1, %v13203_v47  ;;  %8362 = vmatprep.mubr.msk.f32.mxu0 %vm719_vm1, %v9536_v2  ;;  %v13246_v47 = vld [vmem:[#allocation45_spill] sm:$0xff] }
 0x11b   : > { %v10297_v13 = vadd.f32 %v8093_v23, %v8037_v6  ;;  %v1612_v49 = vpop.f32.mrf.mxu0  ;;  %8412 = vmatprep.mubr.msk.f32.mxu1 %vm719_vm1, %v13168_v55  ;;  %v13247_v55 = vld [vmem:[#allocation46_spill] sm:$0xff]  ;;  %v513_v44 = vrot.slane %v10303_v52, 7 }
 0x11c   : > { %v10306_v8 = vadd.f32 %v1612_v49, %v10091_v42  ;;  %v10308_v10 = vpop.f32.mrf.mxu1  ;;  %v493_v42 = vrot.slane %v10301_v60, 7 }
 0x11d   : > { %13245 = vst [vmem:[#allocation21_spill] sm:$0xff] %v10308_v10  ;;  %v8104_v5 = vpop.f32.mrf.mxu0  ;;  %8363 = vmatmul.mubr.msk.f32.gmra.mxu0 %vm719_vm1, %v13246_v47 }
 0x11e   : > { %v1794_v2 = vadd.f32 %v8104_v5, %v10099_v35  ;;  %v10313_v6 = vpop.f32.mrf.mxu1  ;;  %8413 = vmatmul.mubr.msk.f32.gmra.mxu1 %vm719_vm1, %v13205_v36  ;;  %8365 = vmatprep.mubr.msk.f32.mxu0 %vm719_vm1, %v13247_v55  ;;  %v13249_v55 = vld [vmem:[#allocation41_spill] sm:$0xff] }
 0x11f   : > { %v1622_v16 = vpop.f32.mrf.mxu0  ;;  %8415 = vmatprep.mubr.msk.f32.mxu1 %vm719_vm1, %v13206_v41 }
 0x120   : > { %v10324_v59 = vadd.f32 %v1622_v16, %v10103_v40  ;;  %v10326_v35 = vpop.f32.mrf.mxu1  ;;  %v554_v40 = vsel %vm514_vm3, %v513_v44, %v493_v42  ;;  %v8966_v16 = vld [vmem:[%s9096_s6 + $0xf0] sm:$0xff] }
 0x121   : > { %13248 = vst [vmem:[#allocation22_spill] sm:$0xff] %v10326_v35  ;;  %v8107_v32 = vpop.f32.mrf.mxu0  ;;  %8366 = vmatmul.mubr.msk.f32.gmra.mxu0 %vm719_vm1, %v9580_v15 }
 0x122   : > { %v1796_v36 = vadd.f32 %v8107_v32, %v10111_v1  ;;  %v8157_v23 = vpop.f32.mrf.mxu1  ;;  %8416 = vmatmul.mubr.msk.f32.gmra.mxu1 %vm719_vm1, %v13209_v18  ;;  %8368 = vmatprep.mubr.msk.f32.mxu0 %vm719_vm1, %v9583_v9 }
 0x123   : > { %v10335_v41 = vadd.f32 %v8157_v23, %v1792_v7  ;;  %v1632_v49 = vpop.f32.mrf.mxu0  ;;  %8418 = vmatprep.mubr.msk.f32.mxu1 %vm719_vm1, %v13211_v54  ;;  %v593_v54 = vmul.f32 %v9136_v20, %v554_v40  ;;  %v8967_v40 = vld [vmem:[%s9096_s6 + $0xf8] sm:$0xff] }
 0x124   : > { %v10342_v15 = vadd.f32 %v1632_v49, %v10117_v22  ;;  %v10344_v1 = vpop.f32.mrf.mxu1 }
 0x125   : > { %v8110_v5 = vpop.f32.mrf.mxu0  ;;  %8369 = vmatmul.mubr.msk.f32.gmra.mxu0 %vm719_vm1, %v9612_v19 }
 0x126   : > { %v1798_v9 = vadd.f32 %v8110_v5, %v10125_v14  ;;  %v8160_v18 = vpop.f32.mrf.mxu1  ;;  %8419 = vmatmul.mubr.msk.f32.gmra.mxu1 %vm719_vm1, %v13213_v28  ;;  %8371 = vmatprep.mubr.msk.f32.mxu0 %vm719_vm1, %v9948_v62  ;;  %v13251_v5 = vld [vmem:[#allocation75_spill] sm:$0xff] }
 0x127   : > { %v10354_v22 = vadd.f32 %v8160_v18, %v1794_v2  ;;  %v1642_v7 = vpop.f32.mrf.mxu0  ;;  %8421 = vmatprep.mubr.msk.f32.mxu1 %vm719_vm1, %v9500_v29  ;;  %v534_v29 = vsel %vm514_vm3, %v493_v42, %v513_v44  ;;  %v13250_v42 = vld [vmem:[#allocation47_spill] sm:$0xff] }
 0x128   : > { %v10359_v19 = vadd.f32 %v1642_v7, %v10135_v63  ;;  %v10361_v14 = vpop.f32.mrf.mxu1 }
 0x129   : > { %v8113_v47 = vpop.f32.mrf.mxu0  ;;  %8372 = vmatmul.mubr.msk.f32.gmra.mxu0 %vm719_vm1, %v9967_v30 }
 0x12a   : > { %v1800_v62 = vadd.f32 %v8113_v47, %v10146_v43  ;;  %v8163_v28 = vpop.f32.mrf.mxu1  ;;  %8422 = vmatmul.mubr.msk.f32.gmra.mxu1 %vm719_vm1, %v13249_v55  ;;  %8374 = vmatprep.mubr.msk.f32.mxu0 %vm719_vm1, %v593_v54 }
 0x12b   : > { %v10371_v63 = vadd.f32 %v8163_v28, %v1796_v36  ;;  %v1652_v2 = vpop.f32.mrf.mxu0  ;;  %8424 = vmatprep.mubr.msk.f32.mxu1 %vm719_vm1, %v8966_v16  ;;  %v13253_v28 = vld [vmem:[#allocation76_spill] sm:$0xff] }
 0x12c   : > { %v10376_v30 = vadd.f32 %v1652_v2, %v10152_v46  ;;  %v10378_v32 = vpop.f32.mrf.mxu1 }
 0x12d   : > { %v8116_v43 = vpop.f32.mrf.mxu0  ;;  %8375 = vmatmul.mubr.msk.f32.gmra.mxu0 %vm719_vm1, %v534_v29 }
 0x12e   : > { %v1802_v23 = vadd.f32 %v8116_v43, %v10160_v33  ;;  %v8166_v49 = vpop.f32.mrf.mxu1  ;;  %8425 = vmatmul.mubr.msk.f32.gmra.mxu1 %vm719_vm1, %v8967_v40  ;;  %8435 = vmatprep.mubr.msk.f32.mxu0 %vm719_vm1, %v13250_v42  ;;  %v13252_v33 = vld [vmem:[#allocation48_spill] sm:$0xff]  ;;  %v13256_v43 = vld [vmem:[#allocation50_spill] sm:$0xff]  ;;  %v13257_v40 = vld [vmem:[#allocation51_spill] sm:$0xff] }
 0x12f   : > { %v10386_v44 = vadd.f32 %v8166_v49, %v1798_v9  ;;  %v1662_v36 = vpop.f32.mrf.mxu0  ;;  %8427 = vmatprep.mubr.msk.f32.mxu1 %vm719_vm1, %v13251_v5  ;;  %v13254_v9 = vld [vmem:[#allocation49_spill] sm:$0xff] }
 0x130   : > { %v10391_v46 = vadd.f32 %v1662_v36, %v10164_v61  ;;  %v10393_v18 = vpop.f32.mrf.mxu1  ;;  %v7042_v61 = vld [vmem:[%s12902_s4 + $0x4] sm:$0xf] }
 0x131   : > { %v8119_v54 = vpop.f32.mrf.mxu0  ;;  %8436 = vmatmul.mubr.msk.f32.vlgmr.msra.gmra.mxu0 %vm719_vm1, %v13252_v33  ;;  %8489 = vmatprep.subr.msk.mxu1 %vm828_vm0, %v7042_v61  ;;  %v13259_v33 = vld [vmem:[#allocation52_spill] sm:$0xff] }
 0x132   : > { %v1804_v7 = vadd.f32 %v8119_v54, %v10172_v27  ;;  %v8169_v47 = vpop.f32.mrf.mxu1  ;;  %8428 = vmatmul.mubr.msk.f32.gmra.mxu1 %vm719_vm1, %v13253_v28  ;;  %8438 = vmatprep.mubr.msk.f32.mxu0 %vm719_vm1, %v13254_v9  ;;  %v13260_v28 = vld [vmem:[#allocation53_spill] sm:$0xff] }
 0x133   : > { %v10402_v55 = vadd.f32 %v8169_v47, %v1800_v62  ;;  %v1672_v29 = vpop.f32.mrf.mxu0  ;;  %8430 = vmatprep.mubr.msk.f32.mxu1 %vm719_vm1, %v10301_v60  ;;  %8490 = vmatpush3.msk.msra.mxu1 %vm828_vm0, %v7042_v61 }
 0x134   : > { %v10410_v2 = vadd.f32 %v1672_v29, %v10176_v39  ;;  %v10412_v27 = vpop.f32.mrf.mxu1 }
 0x135   : > { %v8122_v16 = vpop.f32.mrf.mxu0  ;;  %8439 = vmatmul.mubr.msk.f32.gmra.mxu0 %vm719_vm1, %v13256_v43 }
 0x136   : > { %13255 = vst [vmem:[#allocation25_spill] sm:$0xff] %v10410_v2  ;;  %v1806_v62 = vadd.f32 %v8122_v16, %v10184_v58  ;;  %v8172_v49 = vpop.f32.mrf.mxu1  ;;  %8431 = vmatmul.mubr.msk.f32.gmra.mxu1 %vm719_vm1, %v10303_v52  ;;  %8441 = vmatprep.mubr.msk.f32.mxu0 %vm719_vm1, %v13257_v40  ;;  %v13263_v16 = vld [vmem:[#allocation54_spill] sm:$0xff] }
 0x137   : > { %v10423_v39 = vadd.f32 %v8172_v49, %v1802_v23  ;;  %v1682_v42 = vpop.f32.mrf.mxu0 }
 0x138   : > { %v10426_v36 = vadd.f32 %v1682_v42, %v10188_v0  ;;  %v10428_v5 = vpop.f32.mrf.mxu1 }
 0x139   : > { %v8125_v54 = vpop.f32.mrf.mxu0  ;;  %8442 = vmatmul.mubr.msk.f32.gmra.mxu0 %vm719_vm1, %v13259_v33  ;;  %v13267_v33 = vld [vmem:[#allocation56_spill] sm:$0xff] }
 0x13a   : > { %13258 = vst [vmem:[#allocation26_spill] sm:$0xff] %v10426_v36  ;;  %v1808_v58 = vadd.f32 %v8125_v54, %v10196_v50  ;;  %v8175_v47 = vpop.f32.mrf.mxu1  ;;  %8444 = vmatprep.mubr.msk.f32.mxu0 %vm719_vm1, %v13260_v28  ;;  %v13264_v50 = vld [vmem:[#allocation55_spill] sm:$0xff] }
 0x13b   : > { %v10435_v9 = vadd.f32 %v8175_v47, %v1804_v7  ;;  %v1692_v23 = vpop.f32.mrf.mxu0 }
 0x13c   : > { %v10438_v29 = vadd.f32 %v1692_v23, %v10200_v56  ;;  %v10440_v0 = vpop.f32.mrf.mxu1 }
 0x13d   : > { %13262 = vst [vmem:[#allocation33_spill] sm:$0xff] %v10440_v0  ;;  %v8128_v61 = vpop.f32.mrf.mxu0  ;;  %8445 = vmatmul.mubr.msk.f32.gmra.mxu0 %vm719_vm1, %v13263_v16 }
 0x13e   : > { %13261 = vst [vmem:[#allocation30_spill] sm:$0xff] %v10438_v29  ;;  %v1810_v43 = vadd.f32 %v8128_v61, %v10208_v11  ;;  %v8178_v49 = vpop.f32.mrf.mxu1  ;;  %8447 = vmatprep.mubr.msk.f32.mxu0 %vm719_vm1, %v13264_v50  ;;  %v13268_v11 = vld [vmem:[#allocation57_spill] sm:$0xff] }
 0x13f   : > { %v10447_v40 = vadd.f32 %v8178_v49, %v1806_v62  ;;  %v1702_v7 = vpop.f32.mrf.mxu0  ;;  %v13271_v49 = vld [vmem:[#allocation58_spill] sm:$0xff] }
 0x140   : > { %v10450_v42 = vadd.f32 %v1702_v7, %v10212_v17  ;;  %v10452_v56 = vpop.f32.mrf.mxu1 }
 0x141   : > { %13266 = vst [vmem:[#allocation37_spill] sm:$0xff] %v10452_v56  ;;  %v8131_v54 = vpop.f32.mrf.mxu0  ;;  %8448 = vmatmul.mubr.msk.f32.gmra.mxu0 %vm719_vm1, %v13267_v33 }
 0x142   : > { %13265 = vst [vmem:[#allocation34_spill] sm:$0xff] %v10450_v42  ;;  %v1812_v47 = vadd.f32 %v8131_v54, %v10220_v21  ;;  %v8181_v28 = vpop.f32.mrf.mxu1  ;;  %8450 = vmatprep.mubr.msk.f32.mxu0 %vm719_vm1, %v13268_v11  ;;  %v13272_v21 = vld [vmem:[#allocation59_spill] sm:$0xff]  ;;  %v13275_v11 = vld [vmem:[#allocation60_spill] sm:$0xff] }
 0x143   : > { %v10459_v23 = vadd.f32 %v8181_v28, %v1808_v58  ;;  %v1712_v62 = vpop.f32.mrf.mxu0 }
 0x144   : > { %v10462_v61 = vadd.f32 %v1712_v62, %v10224_v31  ;;  %v10464_v17 = vpop.f32.mrf.mxu1 }
 0x145   : > { %13270 = vst [vmem:[#allocation2_spill] sm:$0xff] %v10464_v17  ;;  %v8134_v16 = vpop.f32.mrf.mxu0  ;;  %8451 = vmatmul.mubr.msk.f32.gmra.mxu0 %vm719_vm1, %v13271_v49 }
 0x146   : > { %13269 = vst [vmem:[#allocation38_spill] sm:$0xff] %v10462_v61  ;;  %v1814_v50 = vadd.f32 %v8134_v16, %v10232_v3  ;;  %v8184_v7 = vpop.f32.mrf.mxu1  ;;  %8453 = vmatprep.mubr.msk.f32.mxu0 %vm719_vm1, %v13272_v21  ;;  %v13276_v3 = vld [vmem:[#allocation61_spill] sm:$0xff] }
 0x147   : > { %v10471_v54 = vadd.f32 %v8184_v7, %v1810_v43  ;;  %v1722_v58 = vpop.f32.mrf.mxu0 }
 0x148   : > { %v10474_v33 = vadd.f32 %v1722_v58, %v10236_v57  ;;  %v10476_v31 = vpop.f32.mrf.mxu1  ;;  %v13279_v58 = vld [vmem:[#allocation62_spill] sm:$0xff] }
 0x149   : > { %13274 = vst [vmem:[#allocation9_spill] sm:$0xff] %v10476_v31  ;;  %v8137_v28 = vpop.f32.mrf.mxu0  ;;  %8454 = vmatmul.mubr.msk.f32.gmra.mxu0 %vm719_vm1, %v13275_v11 }
 0x14a   : > { %13273 = vst [vmem:[#allocation8_spill] sm:$0xff] %v10474_v33  ;;  %v1816_v62 = vadd.f32 %v8137_v28, %v10244_v26  ;;  %v8187_v49 = vpop.f32.mrf.mxu1  ;;  %8456 = vmatprep.mubr.msk.f32.mxu0 %vm719_vm1, %v13276_v3  ;;  %v13280_v26 = vld [vmem:[#allocation63_spill] sm:$0xff] }
 0x14b   : > { %v10483_v16 = vadd.f32 %v8187_v49, %v1812_v47  ;;  %v1732_v43 = vpop.f32.mrf.mxu0 }
 0x14c   : > { %v10486_v7 = vadd.f32 %v1732_v43, %v10248_v48  ;;  %v10488_v57 = vpop.f32.mrf.mxu1  ;;  %v13283_v43 = vld [vmem:[#allocation64_spill] sm:$0xff] }
 0x14d   : > { %13278 = vst [vmem:[#allocation11_spill] sm:$0xff] %v10488_v57  ;;  %v8140_v21 = vpop.f32.mrf.mxu0  ;;  %8457 = vmatmul.mubr.msk.f32.gmra.mxu0 %vm719_vm1, %v13279_v58 }
 0x14e   : > { %13277 = vst [vmem:[#allocation10_spill] sm:$0xff] %v10486_v7  ;;  %v1818_v11 = vadd.f32 %v8140_v21, %v10256_v38  ;;  %v8190_v35 = vpop.f32.mrf.mxu1  ;;  %8459 = vmatprep.mubr.msk.f32.mxu0 %vm719_vm1, %v13280_v26  ;;  %v13284_v38 = vld [vmem:[#allocation65_spill] sm:$0xff] }
 0x14f   : > { %v10495_v28 = vadd.f32 %v8190_v35, %v1814_v50  ;;  %v1742_v47 = vpop.f32.mrf.mxu0 }
 0x150   : > { %v10498_v49 = vadd.f32 %v1742_v47, %v10260_v25  ;;  %v10500_v48 = vpop.f32.mrf.mxu1  ;;  %v13287_v47 = vld [vmem:[#allocation66_spill] sm:$0xff] }
 0x151   : > { %13282 = vst [vmem:[#allocation13_spill] sm:$0xff] %v10500_v48  ;;  %v8143_v3 = vpop.f32.mrf.mxu0  ;;  %8460 = vmatmul.mubr.msk.f32.gmra.mxu0 %vm719_vm1, %v13283_v43 }
 0x152   : > { %13281 = vst [vmem:[#allocation12_spill] sm:$0xff] %v10498_v49  ;;  %v1820_v58 = vadd.f32 %v8143_v3, %v10268_v45  ;;  %v8193_v10 = vpop.f32.mrf.mxu1  ;;  %8462 = vmatprep.mubr.msk.f32.mxu0 %vm719_vm1, %v13284_v38  ;;  %v13288_v45 = vld [vmem:[#allocation29_spill] sm:$0xff] }
 0x153   : > { %v10507_v21 = vadd.f32 %v8193_v10, %v1816_v62  ;;  %v1752_v35 = vpop.f32.mrf.mxu0 }
 0x154   : > { %v10510_v50 = vadd.f32 %v1752_v35, %v10272_v37  ;;  %v10512_v25 = vpop.f32.mrf.mxu1  ;;  %v13291_v35 = vld [vmem:[#allocation67_spill] sm:$0xff] }
 0x155   : > { %13286 = vst [vmem:[#allocation15_spill] sm:$0xff] %v10512_v25  ;;  %v8146_v26 = vpop.f32.mrf.mxu0  ;;  %8463 = vmatmul.mubr.msk.f32.gmra.mxu0 %vm719_vm1, %v13287_v47 }
 0x156   : > { %13285 = vst [vmem:[#allocation14_spill] sm:$0xff] %v10510_v50  ;;  %v1822_v43 = vadd.f32 %v8146_v26, %v10280_v34  ;;  %v8196_v53 = vpop.f32.mrf.mxu1  ;;  %8465 = vmatprep.mubr.msk.f32.mxu0 %vm719_vm1, %v13288_v45  ;;  %v13292_v34 = vld [vmem:[#allocation68_spill] sm:$0xff] }
 0x157   : > { %v10519_v3 = vadd.f32 %v8196_v53, %v1818_v11  ;;  %v1762_v10 = vpop.f32.mrf.mxu0  ;;  %v13294_v11 = vld [vmem:[#allocation3_spill] sm:$0xff] }
 0x158   : > { %v10522_v62 = vadd.f32 %v1762_v10, %v10288_v24  ;;  %v10524_v37 = vpop.f32.mrf.mxu1  ;;  %v1430_v24 = vadd.f32 %v10313_v6, %v13294_v11 }
 0x159   : > { %13290 = vst [vmem:[#allocation17_spill] sm:$0xff] %v10524_v37  ;;  %v8149_v38 = vpop.f32.mrf.mxu0  ;;  %8466 = vmatmul.mubr.msk.f32.gmra.mxu0 %vm719_vm1, %v13291_v35 }
 0x15a   : > { %13289 = vst [vmem:[#allocation16_spill] sm:$0xff] %v10522_v62  ;;  %v1824_v47 = vadd.f32 %v8149_v38, %v10297_v13  ;;  %v8199_v20 = vpop.f32.mrf.mxu1  ;;  %8468 = vmatprep.mubr.msk.f32.mxu0 %vm719_vm1, %v13292_v34  ;;  %v13296_v62 = vld [vmem:[#allocation69_spill] sm:$0xff]  ;;  %v13297_v13 = vld [vmem:[#allocation70_spill] sm:$0xff] }
 0x15b   : > { %v10531_v26 = vadd.f32 %v8199_v20, %v1820_v58  ;;  %v10533_v53 = vpop.f32.mrf.mxu0 }
 0x15c   : > { %13293 = vst [vmem:[#allocation18_spill] sm:$0xff] %v10533_v53  ;;  %v10537_v45 = vpop.f32.mrf.mxu1  ;;  %v13300_v53 = vld [vmem:[#allocation71_spill] sm:$0xff] }
 0x15d   : > { %13295 = vst [vmem:[#allocation19_spill] sm:$0xff] %v10537_v45  ;;  %v8152_v10 = vpop.f32.mrf.mxu0  ;;  %8469 = vmatmul.mubr.msk.f32.gmra.mxu0 %vm719_vm1, %v13296_v62  ;;  %v13301_v45 = vld [vmem:[#allocation72_spill] sm:$0xff] }
 0x15e   : > { %v1826_v35 = vadd.f32 %v8152_v10, %v1430_v24  ;;  %v8202_v50 = vpop.f32.mrf.mxu1  ;;  %8471 = vmatprep.mubr.msk.f32.mxu0 %vm719_vm1, %v13297_v13  ;;  %v13303_v10 = vld [vmem:[#allocation73_spill] sm:$0xff] }
 0x15f   : > { %v10543_v38 = vadd.f32 %v8202_v50, %v1822_v43  ;;  %v10545_v20 = vpop.f32.mrf.mxu0 }
 0x160   : > { %13298 = vst [vmem:[#allocation20_spill] sm:$0xff] %v10545_v20  ;;  %v10547_v58 = vpop.f32.mrf.mxu1 }
 0x161   : > { %13299 = vst [vmem:[#allocation23_spill] sm:$0xff] %v10547_v58  ;;  %v8213_v34 = vpop.f32.mrf.mxu0  ;;  %8472 = vmatmul.mubr.msk.f32.gmra.mxu0 %vm719_vm1, %v13300_v53  ;;  %v13304_v53 = vld [vmem:[#allocation74_spill] sm:$0xff] }
 0x162   : > { %v2376_v6 = vadd.f32 %v8213_v34, %v10335_v41  ;;  %v8205_v11 = vpop.f32.mrf.mxu1  ;;  %8474 = vmatprep.mubr.msk.f32.mxu0 %vm719_vm1, %v13301_v45 }
 0x163   : > { %v10554_v62 = vadd.f32 %v8205_v11, %v1824_v47  ;;  %v10556_v24 = vpop.f32.mrf.mxu0  ;;  %v13306_v11 = vld [vmem:[#allocation77_spill] sm:$0xff] }
 0x164   : > { %v10558_v50 = vpop.f32.mrf.mxu1 }
 0x165   : > { %13302 = vst [vmem:[#allocation24_spill] sm:$0xff] %v10558_v50  ;;  %v8216_v43 = vpop.f32.mrf.mxu0  ;;  %8475 = vmatmul.mubr.msk.f32.gmra.mxu0 %vm719_vm1, %v13303_v10 }
 0x166   : > { %v2378_v13 = vadd.f32 %v8216_v43, %v10354_v22  ;;  %v8208_v20 = vpop.f32.mrf.mxu1  ;;  %8477 = vmatprep.mubr.msk.f32.mxu0 %vm719_vm1, %v13304_v53  ;;  %v614_v22 = vrot.slane %v10301_v60, 1  ;;  %v634_v43 = vrot.slane %v10303_v52, 1 }
 0x167   : > { %v10565_v41 = vadd.f32 %v8208_v20, %v1826_v35  ;;  %v10567_v34 = vpop.f32.mrf.mxu0 }
 0x168   : > { %v10569_v47 = vpop.f32.mrf.mxu1 }
 0x169   : > { %13305 = vst [vmem:[#allocation27_spill] sm:$0xff] %v10569_v47  ;;  %v8219_v45 = vpop.f32.mrf.mxu0  ;;  %8478 = vmatmul.mubr.msk.f32.gmra.mxu0 %vm719_vm1, %v13306_v11  ;;  %v13307_v47 = vld [vmem:[#allocation43_spill] sm:$0xff] }
 0x16a   : > { %v2380_v50 = vadd.f32 %v8219_v45, %v10371_v63  ;;  %v8269_v58 = vpop.f32.mrf.mxu1  ;;  %8480 = vmatprep.mubr.msk.f32.mxu0 %vm719_vm1, %v9922_v12  ;;  %v675_v12 = vsel %vm635_vm4, %v634_v43, %v614_v22 }
 0x16b   : > { %v10578_v35 = vadd.f32 %v8269_v58, %v2376_v6  ;;  %v10580_v20 = vpop.f32.mrf.mxu0  ;;  %v655_v58 = vsel %vm635_vm4, %v614_v22, %v634_v43 }
 0x16c   : > { %v10582_v10 = vpop.f32.mrf.mxu1 }
 0x16d   : > { %v8222_v53 = vpop.f32.mrf.mxu0  ;;  %8481 = vmatmul.mubr.msk.f32.gmra.mxu0 %vm719_vm1, %v13307_v47  ;;  %v13308_v47 = vld [vmem:[#allocation5_spill] sm:$0xff] }
 0x16e   : > { %v2382_v63 = vadd.f32 %v8222_v53, %v10386_v44  ;;  %v8272_v45 = vpop.f32.mrf.mxu1  ;;  %8483 = vmatprep.mubr.msk.f32.mxu0 %vm719_vm1, %v10133_v51  ;;  %v13309_v44 = vld [vmem:[#allocation44_spill] sm:$0xff] }
 0x16f   : > { %v10591_v60 = vadd.f32 %v8272_v45, %v2378_v13  ;;  %v10593_v52 = vpop.f32.mrf.mxu0  ;;  %v715_v53 = vmul.f32 %v13309_v44, %v675_v12 }
 0x170   : > { %v10597_v6 = vpop.f32.mrf.mxu1 }
 0x171   : > { %v8225_v11 = vpop.f32.mrf.mxu0  ;;  %8484 = vmatmul.mubr.msk.f32.gmra.mxu0 %vm719_vm1, %v13308_v47 }
 0x172   : > { %v2384_v51 = vadd.f32 %v8225_v11, %v10402_v55  ;;  %v8275_v37 = vpop.f32.mrf.mxu1  ;;  %8486 = vmatprep.mubr.msk.f32.mxu0 %vm719_vm1, %v655_v58 }
 0x173   : > { %v10604_v13 = vadd.f32 %v8275_v37, %v2380_v50  ;;  %v10606_v45 = vpop.f32.mrf.mxu0 }
 0x174   : > { %v10608_v49 = vpop.f32.mrf.mxu1 }
 0x175   : > { %v8228_v22 = vpop.f32.mrf.mxu0  ;;  %8487 = vmatmul.mubr.msk.f32.gmra.mxu0 %vm719_vm1, %v715_v53 }
 0x176   : > { %v2386_v43 = vadd.f32 %v8228_v22, %v10423_v39  ;;  %v8278_v25 = vpop.f32.mrf.mxu1  ;;  %v7109_v39 = vld [vmem:[%s12902_s4 + $0x8] sm:$0xf] }
 0x177   : > { %v10612_v47 = vadd.f32 %v8278_v25, %v2382_v63  ;;  %v10614_v12 = vpop.f32.mrf.mxu0  ;;  %8589 = vmatprep.subr.msk.mxu0 %vm828_vm0, %v7109_v39  ;;  %v10632_v63 = vld [vmem:[%s12902_s4] sm:$0xf] }
 0x178   : > { %v10616_v55 = vpop.f32.mrf.mxu1  ;;  %8590 = vmatpush3.msk.msra.mxu0 %vm828_vm0, %v7109_v39  ;;  %8539 = vmatprep.subr.msk.mxu1 %vm828_vm0, %v10632_v63 }
 0x179   : > { %v8231_v11 = vpop.f32.mrf.mxu0 }
 0x17a   : > { %v2388_v37 = vadd.f32 %v8231_v11, %v10435_v9  ;;  %v8281_v50 = vpop.f32.mrf.mxu1 }
 0x17b   : > { %v10619_v58 = vadd.f32 %v8281_v50, %v2384_v51  ;;  %v10621_v7 = vpop.f32.mrf.mxu0 }
 0x17c   : > { %13310 = vst [vmem:[#allocation28_spill] sm:$0xff] %v10621_v7  ;;  %v10623_v48 = vpop.f32.mrf.mxu1 }
 0x17d   : > { %v8234_v25 = vpop.f32.mrf.mxu0 }
 0x17e   : > { %v2390_v9 = vadd.f32 %v8234_v25, %v10447_v40  ;;  %v8284_v53 = vpop.f32.mrf.mxu1 }
 0x17f   : > { %v10638_v51 = vadd.f32 %v8284_v53, %v2386_v43  ;;  %v10640_v22 = vpop.f32.mrf.mxu0 }
 0x180   : > { %13311 = vst [vmem:[#allocation31_spill] sm:$0xff] %v10640_v22  ;;  %v10642_v11 = vpop.f32.mrf.mxu1 }
 0x181   : > { %13312 = vst [vmem:[#allocation32_spill] sm:$0xff] %v10642_v11  ;;  %v8237_v50 = vpop.f32.mrf.mxu0 }
 0x182   : > { %v2392_v33 = vadd.f32 %v8237_v50, %v10459_v23  ;;  %v8287_v57 = vpop.f32.mrf.mxu1 }
 0x183   : > { %v10645_v61 = vadd.f32 %v8287_v57, %v2388_v37  ;;  %v10647_v31 = vpop.f32.mrf.mxu0 }
 0x184   : > { %13313 = vst [vmem:[#allocation35_spill] sm:$0xff] %v10647_v31  ;;  %v10649_v40 = vpop.f32.mrf.mxu1 }
 0x185   : > { %13314 = vst [vmem:[#allocation36_spill] sm:$0xff] %v10649_v40  ;;  %v8240_v39 = vpop.f32.mrf.mxu0 }
 0x186   : > { %v2394_v25 = vadd.f32 %v8240_v39, %v10471_v54  ;;  %v8290_v42 = vpop.f32.mrf.mxu1 }
 0x187   : > { %v10652_v43 = vadd.f32 %v8290_v42, %v2390_v9  ;;  %v10654_v53 = vpop.f32.mrf.mxu0 }
 0x188   : > { %13315 = vst [vmem:[#allocation39_spill] sm:$0xff] %v10654_v53  ;;  %v10656_v17 = vpop.f32.mrf.mxu1 }
 0x189   : > { %13316 = vst [vmem:[#allocation40_spill] sm:$0xff] %v10656_v17  ;;  %v8243_v29 = vpop.f32.mrf.mxu0 }
 0x18a   : > { %v2396_v23 = vadd.f32 %v8243_v29, %v10483_v16  ;;  %v8293_v50 = vpop.f32.mrf.mxu1 }
 0x18b   : > { %v10659_v57 = vadd.f32 %v8293_v50, %v2392_v33  ;;  %v10661_v37 = vpop.f32.mrf.mxu0 }
 0x18c   : > { %13317 = vst [vmem:[#allocation42_spill] sm:$0xff] %v10661_v37  ;;  %v10663_v31 = vpop.f32.mrf.mxu1 }
 0x18d   : > { %13318 = vst [vmem:[#allocation45_spill] sm:$0xff] %v10663_v31  ;;  %v8246_v22 = vpop.f32.mrf.mxu0 }
 0x18e   : > { %v2398_v54 = vadd.f32 %v8246_v22, %v10495_v28  ;;  %v8296_v39 = vpop.f32.mrf.mxu1 }
 0x18f   : > { %v10666_v42 = vadd.f32 %v8296_v39, %v2394_v25  ;;  %v10668_v9 = vpop.f32.mrf.mxu0 }
 0x190   : > { %13319 = vst [vmem:[#allocation46_spill] sm:$0xff] %v10668_v9  ;;  %v10670_v53 = vpop.f32.mrf.mxu1 }
 0x191   : > { %13320 = vst [vmem:[#allocation41_spill] sm:$0xff] %v10670_v53  ;;  %v8249_v17 = vpop.f32.mrf.mxu0 }
 0x192   : > { %v2400_v29 = vadd.f32 %v8249_v17, %v10507_v21  ;;  %v8299_v16 = vpop.f32.mrf.mxu1 }
 0x193   : > { %v10673_v33 = vadd.f32 %v8299_v16, %v2396_v23  ;;  %v10675_v50 = vpop.f32.mrf.mxu0 }
 0x194   : > { %13321 = vst [vmem:[#allocation47_spill] sm:$0xff] %v10675_v50  ;;  %v10677_v37 = vpop.f32.mrf.mxu1 }
 0x195   : > { %13322 = vst [vmem:[#allocation75_spill] sm:$0xff] %v10677_v37  ;;  %v8252_v31 = vpop.f32.mrf.mxu0 }
 0x196   : > { %v2402_v28 = vadd.f32 %v8252_v31, %v10519_v3  ;;  %v8302_v22 = vpop.f32.mrf.mxu1 }
 0x197   : > { %v10680_v25 = vadd.f32 %v8302_v22, %v2398_v54  ;;  %v10682_v39 = vpop.f32.mrf.mxu0 }
 0x198   : > { %13323 = vst [vmem:[#allocation48_spill] sm:$0xff] %v10682_v39  ;;  %v10684_v9 = vpop.f32.mrf.mxu1 }
 0x199   : > { %13324 = vst [vmem:[#allocation76_spill] sm:$0xff] %v10684_v9  ;;  %v8255_v53 = vpop.f32.mrf.mxu0 }
 0x19a   : > { %v2404_v17 = vadd.f32 %v8255_v53, %v10531_v26  ;;  %v8305_v21 = vpop.f32.mrf.mxu1 }
 0x19b   : > { %v10687_v23 = vadd.f32 %v8305_v21, %v2400_v29  ;;  %v10689_v16 = vpop.f32.mrf.mxu0 }
 0x19c   : > { %13325 = vst [vmem:[#allocation49_spill] sm:$0xff] %v10689_v16  ;;  %v10691_v50 = vpop.f32.mrf.mxu1 }
 0x19d   : > { %13326 = vst [vmem:[#allocation50_spill] sm:$0xff] %v10691_v50  ;;  %v8258_v37 = vpop.f32.mrf.mxu0 }
 0x19e   : > { %v2406_v31 = vadd.f32 %v8258_v37, %v10543_v38  ;;  %v8308_v3 = vpop.f32.mrf.mxu1 }
 0x19f   : > { %v10694_v54 = vadd.f32 %v8308_v3, %v2402_v28  ;;  %v10696_v22 = vpop.f32.mrf.mxu0 }
 0x1a0   : > { %13327 = vst [vmem:[#allocation51_spill] sm:$0xff] %v10696_v22  ;;  %v10698_v39 = vpop.f32.mrf.mxu1 }
 0x1a1   : > { %13328 = vst [vmem:[#allocation52_spill] sm:$0xff] %v10698_v39  ;;  %v8261_v9 = vpop.f32.mrf.mxu0 }
 0x1a2   : > { %v2408_v26 = vadd.f32 %v8261_v9, %v10554_v62  ;;  %v8311_v53 = vpop.f32.mrf.mxu1 }
 0x1a3   : > { %v10701_v29 = vadd.f32 %v8311_v53, %v2404_v17  ;;  %v10703_v21 = vpop.f32.mrf.mxu0 }
 0x1a4   : > { %13329 = vst [vmem:[#allocation53_spill] sm:$0xff] %v10703_v21  ;;  %v10705_v16 = vpop.f32.mrf.mxu1 }
 0x1a5   : > { %13330 = vst [vmem:[#allocation54_spill] sm:$0xff] %v10705_v16  ;;  %v8264_v50 = vpop.f32.mrf.mxu0 }
 0x1a6   : > { %v2410_v38 = vadd.f32 %v8264_v50, %v10565_v41  ;;  %v8314_v37 = vpop.f32.mrf.mxu1 }
 0x1a7   : > { %v10708_v28 = vadd.f32 %v8314_v37, %v2406_v31  ;;  %v10710_v3 = vpop.f32.mrf.mxu0 }
 0x1a8   : > { %13331 = vst [vmem:[#allocation55_spill] sm:$0xff] %v10710_v3  ;;  %v10712_v22 = vpop.f32.mrf.mxu1 }
 0x1a9   : > { %13332 = vst [vmem:[#allocation56_spill] sm:$0xff] %v10712_v22  ;;  %v8325_v39 = vpop.f32.mrf.mxu0 }
 0x1aa   : > { %v10715_v62 = vadd.f32 %v8325_v39, %v10578_v35  ;;  %v8317_v9 = vpop.f32.mrf.mxu1 }
 0x1ab   : > { %v10717_v17 = vadd.f32 %v8317_v9, %v2408_v26  ;;  %v10719_v53 = vpop.f32.mrf.mxu0 }
 0x1ac   : > { %v10721_v21 = vpop.f32.mrf.mxu1 }
 0x1ad   : > { %13333 = vst [vmem:[#allocation57_spill] sm:$0xff] %v10721_v21  ;;  %v8328_v16 = vpop.f32.mrf.mxu0 }
 0x1ae   : > { %v10724_v41 = vadd.f32 %v8328_v16, %v10591_v60  ;;  %v8320_v50 = vpop.f32.mrf.mxu1 }
 0x1af   : > { %v10726_v31 = vadd.f32 %v8320_v50, %v2410_v38  ;;  %v10728_v37 = vpop.f32.mrf.mxu0 }
 0x1b0   : > { %v10730_v3 = vpop.f32.mrf.mxu1 }
 0x1b1   : > { %13334 = vst [vmem:[#allocation58_spill] sm:$0xff] %v10730_v3  ;;  %v8331_v35 = vpop.f32.mrf.mxu0 }
 0x1b2   : > { %v10733_v39 = vadd.f32 %v8331_v35, %v10604_v13  ;;  %v10735_v26 = vpop.f32.mrf.mxu1 }
 0x1b3   : > { %v10737_v9 = vpop.f32.mrf.mxu0 }
 0x1b4   : > { %v10739_v21 = vpop.f32.mrf.mxu1 }
 0x1b5   : > { %v8334_v22 = vpop.f32.mrf.mxu0 }
 0x1b6   : > { %v10742_v60 = vadd.f32 %v8334_v22, %v10612_v47  ;;  %v10744_v16 = vpop.f32.mrf.mxu1  ;;  %v10765_v22 = vld [vmem:[%s12902_s4 + $0x10] sm:$0xf] }
 0x1b7   : > { %v10746_v38 = vpop.f32.mrf.mxu0  ;;  %13338 = vst [vmem:[#allocation62_spill] sm:$0xff] %v10765_v22  ;;  %8689 = vmatprep.subr.msk.mxu0 %vm828_vm0, %v10765_v22 }
 0x1b8   : > { %v10748_v3 = vpop.f32.mrf.mxu1 }
 0x1b9   : > { %v8337_v50 = vpop.f32.mrf.mxu0 }
 0x1ba   : > { %v10751_v13 = vadd.f32 %v8337_v50, %v10619_v58  ;;  %v10755_v56 = vpop.f32.mrf.mxu1 }
 0x1bb   : > { %v10753_v35 = vpop.f32.mrf.mxu0 }
 0x1bc   : > { %13335 = vst [vmem:[#allocation59_spill] sm:$0xff] %v10751_v13  ;;  %v10769_v58 = vpop.f32.mrf.mxu1 }
 0x1bd   : > { %v8340_v40 = vpop.f32.mrf.mxu0 }
 0x1be   : > { %v10758_v36 = vadd.f32 %v8340_v40, %v10638_v51  ;;  %v10776_v40 = vpop.f32.mrf.mxu1 }
 0x1bf   : > { %v10760_v47 = vpop.f32.mrf.mxu0 }
 0x1c0   : > { %13336 = vst [vmem:[#allocation60_spill] sm:$0xff] %v10758_v36  ;;  %13337 = vst [vmem:[#allocation61_spill] sm:$0xff] %v10760_v47  ;;  %v10783_v2 = vpop.f32.mrf.mxu1 }
 0x1c1   : > { %v8343_v7 = vpop.f32.mrf.mxu0 }
 0x1c2   : > { %v10772_v50 = vadd.f32 %v8343_v7, %v10645_v61  ;;  %v10790_v7 = vpop.f32.mrf.mxu1 }
 0x1c3   : > { %v10774_v11 = vpop.f32.mrf.mxu0 }
 0x1c4   : > { %13339 = vst [vmem:[#allocation63_spill] sm:$0xff] %v10772_v50  ;;  %13340 = vst [vmem:[#allocation64_spill] sm:$0xff] %v10774_v11 }
 0x1c5   : > { %v8346_v51 = vpop.f32.mrf.mxu0 }
 0x1c6   : > { %v10779_v36 = vadd.f32 %v8346_v51, %v10652_v43  ;;  %v10797_v51 = vpop.f32.mrf.mxu1 }
 0x1c7   : > { %v10781_v47 = vpop.f32.mrf.mxu0 }
 0x1c8   : > { %13341 = vst [vmem:[#allocation65_spill] sm:$0xff] %v10779_v36  ;;  %13342 = vst [vmem:[#allocation66_spill] sm:$0xff] %v10781_v47 }
 0x1c9   : > { %v8349_v0 = vpop.f32.mrf.mxu0 }
 0x1ca   : > { %v10786_v22 = vadd.f32 %v8349_v0, %v10659_v57  ;;  %v10804_v57 = vpop.f32.mrf.mxu1 }
 0x1cb   : > { %v10788_v13 = vpop.f32.mrf.mxu0 }
 0x1cc   : > { %13343 = vst [vmem:[#allocation29_spill] sm:$0xff] %v10786_v22  ;;  %13344 = vst [vmem:[#allocation67_spill] sm:$0xff] %v10788_v13 }
 0x1cd   : > { %v8352_v61 = vpop.f32.mrf.mxu0 }
 0x1ce   : > { %v10793_v50 = vadd.f32 %v8352_v61, %v10666_v42  ;;  %v10811_v61 = vpop.f32.mrf.mxu1 }
 0x1cf   : > { %v10795_v11 = vpop.f32.mrf.mxu0 }
 0x1d0   : > { %13345 = vst [vmem:[#allocation68_spill] sm:$0xff] %v10793_v50  ;;  %13346 = vst [vmem:[#allocation3_spill] sm:$0xff] %v10795_v11 }
 0x1d1   : > { %v8355_v43 = vpop.f32.mrf.mxu0 }
 0x1d2   : > { %v10800_v36 = vadd.f32 %v8355_v43, %v10673_v33  ;;  %v10818_v43 = vpop.f32.mrf.mxu1 }
 0x1d3   : > { %v10802_v47 = vpop.f32.mrf.mxu0 }
 0x1d4   : > { %13347 = vst [vmem:[#allocation69_spill] sm:$0xff] %v10800_v36  ;;  %13348 = vst [vmem:[#allocation70_spill] sm:$0xff] %v10802_v47 }
 0x1d5   : > { %v8358_v0 = vpop.f32.mrf.mxu0 }
 0x1d6   : > { %v10807_v22 = vadd.f32 %v8358_v0, %v10680_v25  ;;  %v10825_v0 = vpop.f32.mrf.mxu1 }
 0x1d7   : > { %v10809_v13 = vpop.f32.mrf.mxu0 }
 0x1d8   : > { %13349 = vst [vmem:[#allocation71_spill] sm:$0xff] %v10807_v22  ;;  %13350 = vst [vmem:[#allocation72_spill] sm:$0xff] %v10809_v13 }
 0x1d9   : > { %v8361_v42 = vpop.f32.mrf.mxu0 }
 0x1da   : > { %v10814_v50 = vadd.f32 %v8361_v42, %v10687_v23  ;;  %v10832_v42 = vpop.f32.mrf.mxu1 }
 0x1db   : > { %v10816_v11 = vpop.f32.mrf.mxu0 }
 0x1dc   : > { %13351 = vst [vmem:[#allocation73_spill] sm:$0xff] %v10814_v50  ;;  %13352 = vst [vmem:[#allocation74_spill] sm:$0xff] %v10816_v11 }
 0x1dd   : > { %v8364_v33 = vpop.f32.mrf.mxu0 }
 0x1de   : > { %v10821_v36 = vadd.f32 %v8364_v33, %v10694_v54  ;;  %v2083_v33 = vadd.f32 %v10344_v1, %v10306_v8  ;;  %v2085_v8 = vadd.f32 %v10361_v14, %v10324_v59  ;;  %v2089_v59 = vadd.f32 %v10393_v18, %v10359_v19 }
 0x1df   : > { %v10823_v47 = vpop.f32.mrf.mxu0 }
 0x1e0   : > { %13353 = vst [vmem:[#allocation77_spill] sm:$0xff] %v10821_v36  ;;  %13354 = vst [vmem:[#allocation43_spill] sm:$0xff] %v10823_v47  ;;  %v10841_v36 = vpop.f32.mrf.mxu1 }
 0x1e1   : > { %v8367_v25 = vpop.f32.mrf.mxu0 }
 0x1e2   : > { %v10828_v22 = vadd.f32 %v8367_v25, %v10701_v29  ;;  %v2375_v25 = vadd.f32 %v10556_v24, %v2083_v33  ;;  %v2087_v24 = vadd.f32 %v10378_v32, %v10342_v15  ;;  %v3254_v15 = vadd.f32 %v10744_v16, %v10724_v41 }
 0x1e3   : > { %v10830_v13 = vpop.f32.mrf.mxu0 }
 0x1e4   : > { %13355 = vst [vmem:[#allocation5_spill] sm:$0xff] %v10828_v22  ;;  %13356 = vst [vmem:[#allocation78_spill] sm:$0xff] %v10830_v13  ;;  %v2667_v13 = vadd.f32 %v10582_v10, %v2375_v25  ;;  %v2377_v10 = vadd.f32 %v10567_v34, %v2085_v8  ;;  %v2379_v14 = vadd.f32 %v10580_v20, %v2087_v24 }
 0x1e5   : > { %v8370_v23 = vpop.f32.mrf.mxu0 }
 0x1e6   : > { %v10835_v50 = vadd.f32 %v8370_v23, %v10708_v28  ;;  %v10850_v28 = vpop.f32.mrf.mxu1  ;;  %v2671_v19 = vadd.f32 %v10608_v49, %v2379_v14 }
 0x1e7   : > { %v10837_v11 = vpop.f32.mrf.mxu0 }
 0x1e8   : > { %v2963_v16 = vadd.f32 %v10737_v9, %v2671_v19 }
 0x1e9   : > { %v8373_v54 = vpop.f32.mrf.mxu0 }
 0x1ea   : > { %v10844_v47 = vadd.f32 %v8373_v54, %v10717_v17  ;;  %v2959_v17 = vadd.f32 %v10719_v53, %v2667_v13  ;;  %v3252_v54 = vadd.f32 %v10735_v26, %v10715_v62  ;;  %v2669_v53 = vadd.f32 %v10597_v6, %v2377_v10 }
 0x1eb   : > { %v10846_v29 = vpop.f32.mrf.mxu0  ;;  %v2091_v62 = vadd.f32 %v10412_v27, %v10376_v30  ;;  %v2381_v26 = vadd.f32 %v10593_v52, %v2089_v59  ;;  %v3255_v24 = vadd.f32 %v10769_v58, %v2963_v16  ;;  %v10907_v59 = vld [vmem:[%s12902_s4 + $0xc] sm:$0xf] }
 0x1ec   : > { %v3251_v25 = vadd.f32 %v10739_v21, %v2959_v17  ;;  %v2093_v21 = vadd.f32 %v10428_v5, %v10391_v46  ;;  %v2961_v18 = vadd.f32 %v10728_v37, %v2669_v53  ;;  %v3256_v37 = vadd.f32 %v10755_v56, %v10733_v39 }
 0x1ed   : > { %v8376_v22 = vpop.f32.mrf.mxu0  ;;  %v2383_v6 = vadd.f32 %v10606_v45, %v2091_v62  ;;  %v2673_v41 = vadd.f32 %v10616_v55, %v2381_v26  ;;  %v3258_v56 = vadd.f32 %v10776_v40, %v10742_v60 }
 0x1ee   : > { %v10853_v23 = vadd.f32 %v8376_v22, %v10726_v31  ;;  %v10866_v31 = vpop.f32.mrf.mxu1  ;;  %v3253_v46 = vadd.f32 %v10748_v3, %v2961_v18  ;;  %v2385_v52 = vadd.f32 %v10614_v12, %v2093_v21 }
 0x1ef   : > { %v10857_v1 = vpop.f32.mrf.mxu0  ;;  %v2675_v49 = vadd.f32 %v10623_v48, %v2383_v6 }
 0x1f0   : > { %v10882_v8 = vpop.f32.mrf.mxu1 }
 0x1f1   : > { %v8437_v33 = vpop.f32.mrf.mxu0  ;;  %v2967_v48 = vadd.f32 %v10753_v35, %v2675_v49 }
 0x1f2   : > { %v3544_v22 = vadd.f32 %v8437_v33, %v3252_v54  ;;  %v2965_v54 = vadd.f32 %v10746_v38, %v2673_v41  ;;  %v10895_v9 = vpop.f32.mrf.mxu1 }
 0x1f3   : > { %v3364_v13 = vpop.f32.mrf.mxu0 }
 0x1f4   : > { %v3580_v32 = vmax.f32 %v3544_v22, 0.0  ;;  %v3543_v34 = vadd.f32 %v3364_v13, %v3251_v25  ;;  %v10930_v26 = vpop.f32.mrf.mxu1 }
 0x1f5   : > { %v8440_v20 = vpop.f32.mrf.mxu0 }
 0x1f6   : > { %v3616_v30 = vmul.f32 0.0, %v3580_v32  ;;  %v3579_v27 = vmax.f32 %v3543_v34, 0.0  ;;  %v3546_v17 = vadd.f32 %v8440_v20, %v3254_v15  ;;  %v13358_v34 = vld [vmem:[#allocation59_spill] sm:$0xff] }
 0x1f7   : > { %v3374_v5 = vpop.f32.mrf.mxu0  ;;  %v3260_v21 = vadd.f32 %v10790_v7, %v13358_v34  ;;  %v13372_v34 = vld [vmem:[#allocation36_spill] sm:$0xff] }
 0x1f8   : > { %v3615_v45 = vmul.f32 0.0, %v3579_v27  ;;  %v10893_v10 = vmax.f32 %v3546_v17, 0.0  ;;  %v3545_v55 = vadd.f32 %v3374_v5, %v3253_v46  ;;  %v3745_v3 = vrot.slane %v3616_v30, 1  ;;  %v13361_v46 = vld [vmem:[#allocation25_spill] sm:$0xff] }
 0x1f9   : > { %v8443_v33 = vpop.f32.mrf.mxu0  ;;  %v3637_v39 = vrot.slane %v3616_v30, 7  ;;  %v13362_v5 = vld [vmem:[#allocation33_spill] sm:$0xff] }
 0x1fa   : > { %v3619_v25 = vrot.slane %v3615_v45, 7  ;;  %v3727_v22 = vrot.slane %v3615_v45, 1  ;;  %v3548_v12 = vadd.f32 %v8443_v33, %v3256_v37  ;;  %8491 = vmatprep.mubr.msk.f32.mxu1 %vm719_vm1, %v3615_v45  ;;  %v10901_v38 = vmax.f32 %v3545_v55, 0.0  ;;  %v13363_v37 = vld [vmem:[#allocation32_spill] sm:$0xff]  ;;  %v13364_v33 = vld [vmem:[#allocation62_spill] sm:$0xff] }
 0x1fb   : > { %v3384_v58 = vpop.f32.mrf.mxu0  ;;  %8492 = vmatmul.mubr.msk.f32.vlgmr.msra.gmra.mxu1 %vm719_vm1, %v3616_v30  ;;  %v3746_v15 = vrot.slane %v10893_v10, 1  ;;  %v10952_v30 = vld [vmem:[%s12902_s4 + $0x18] sm:$0xf]  ;;  %v2095_v49 = vadd.f32 %v13362_v5, %v13361_v46  ;;  %v2677_v45 = vadd.f32 %v13363_v37, %v2385_v52 }
 0x1fc   : > { %v3781_v14 = vsel %vm635_vm4, %v3745_v3, %v3727_v22  ;;  %v10911_v53 = vmax.f32 %v3548_v12, 0.0  ;;  %v3547_v35 = vadd.f32 %v3384_v58, %v3255_v24  ;;  %8540 = vmatpush3.msk.msra.mxu1 %vm828_vm0, %v10632_v63  ;;  %v3763_v60 = vsel %vm635_vm4, %v3727_v22, %v3745_v3  ;;  %8494 = vmatprep.mubr.msk.f32.mxu1 %vm719_vm1, %v10901_v38  ;;  %v10971_v3 = vpop.f32.mrf.mxu1  ;;  %v13368_v58 = vld [vmem:[#allocation60_spill] sm:$0xff] }
 0x1fd   : > { %v3800_v40 = vmul.f32 %v13309_v44, %v3781_v14  ;;  %v8446_v13 = vpop.f32.mrf.mxu0  ;;  %8591 = vmatprep.mubr.msk.f32.mxu0 %vm719_vm1, %v3763_v60  ;;  %v3728_v62 = vrot.slane %v10901_v38, 1  ;;  %v10925_v32 = vsel %vm514_vm3, %v3637_v39, %v3619_v25  ;;  %v3257_v63 = vadd.f32 %v10783_v2, %v2965_v54  ;;  %8639 = vmatprep.subr.msk.mxu1 %vm828_vm0, %v10907_v59 }
 0x1fe   : > { %13357 = vst [vmem:[#allocation79_spill] sm:$0xff] %v10911_v53  ;;  %v10932_v19 = vmax.f32 %v3547_v35, 0.0  ;;  %v3550_v18 = vadd.f32 %v8446_v13, %v3258_v56  ;;  %v10947_v6 = vsel %vm514_vm3, %v3619_v25, %v3637_v39  ;;  %v3747_v16 = vrot.slane %v10911_v53, 1  ;;  %v13367_v56 = vld [vmem:[#allocation61_spill] sm:$0xff] }
 0x1ff   : > { %v3394_v20 = vpop.f32.mrf.mxu0  ;;  %8495 = vmatmul.mubr.msk.f32.gmra.mxu1 %vm719_vm1, %v10893_v10  ;;  %8592 = vmatmul.mubr.msk.f32.vlgmr.msra.gmra.mxu0 %vm719_vm1, %v3800_v40  ;;  %v10941_v2 = vsel %vm635_vm4, %v3728_v62, %v3746_v15  ;;  %v3782_v7 = vsel %vm635_vm4, %v3746_v15, %v3728_v62  ;;  %v3259_v54 = vadd.f32 %v10797_v51, %v2967_v48  ;;  %v13366_v51 = vld [vmem:[#allocation28_spill] sm:$0xff]  ;;  %v13370_v62 = vld [vmem:[#allocation26_spill] sm:$0xff]  ;;  %v13371_v15 = vld [vmem:[#allocation37_spill] sm:$0xff] }
 0x200   : > { %13359 = vst [vmem:[#allocation59_spill] sm:$0xff] %v10932_v19  ;;  %v10954_v27 = vmax.f32 %v3550_v18, 0.0  ;;  %v3549_v17 = vadd.f32 %v3394_v20, %v3257_v63  ;;  %8497 = vmatprep.mubr.msk.f32.mxu1 %vm719_vm1, %v10932_v19  ;;  %8594 = vmatprep.mubr.msk.f32.mxu0 %vm719_vm1, %v10941_v2  ;;  %v3729_v41 = vrot.slane %v10932_v19, 1  ;;  %v10967_v55 = vmul.f32 %v13309_v44, %v3782_v7 }
 0x201   : > { %v8449_v24 = vpop.f32.mrf.mxu0  ;;  %8690 = vmatpush3.msk.msra.mxu0 %vm828_vm0, %v13364_v33  ;;  %v2387_v48 = vadd.f32 %v13366_v51, %v2095_v49  ;;  %v2969_v39 = vadd.f32 %v13367_v56, %v2677_v45  ;;  %v3262_v14 = vadd.f32 %v10804_v57, %v13368_v58  ;;  %v2097_v63 = vadd.f32 %v13371_v15, %v13370_v62  ;;  %v13374_v49 = vld [vmem:[#allocation31_spill] sm:$0xff]  ;;  %v13375_v45 = vld [vmem:[#allocation64_spill] sm:$0xff]  ;;  %v13379_v56 = vld [vmem:[#allocation2_spill] sm:$0xff] }
 0x202   : > { %13360 = vst [vmem:[#allocation80_spill] sm:$0xff] %v10954_v27  ;;  %v10973_v25 = vmax.f32 %v3549_v17, 0.0  ;;  %v3552_v22 = vadd.f32 %v8449_v24, %v3260_v21  ;;  %v10977_v12 = vsel %vm635_vm4, %v3729_v41, %v3747_v16  ;;  %v3783_v52 = vsel %vm635_vm4, %v3747_v16, %v3729_v41  ;;  %8789 = vmatprep.subr.msk.mxu0 %vm828_vm0, %v10952_v30  ;;  %v11006_v17 = vpop.f32.mrf.mxu1  ;;  %v13380_v58 = vld [vmem:[#allocation40_spill] sm:$0xff] }
 0x203   : > { %v3404_v35 = vpop.f32.mrf.mxu0  ;;  %8498 = vmatmul.mubr.msk.f32.gmra.mxu1 %vm719_vm1, %v10911_v53  ;;  %8595 = vmatmul.mubr.msk.f32.gmra.mxu0 %vm719_vm1, %v10967_v55  ;;  %v3748_v57 = vrot.slane %v10954_v27, 1  ;;  %v2679_v21 = vadd.f32 %v13372_v34, %v2387_v48  ;;  %v3261_v18 = vadd.f32 %v10811_v61, %v2969_v39  ;;  %v11004_v7 = vmul.f32 %v13309_v44, %v3783_v52  ;;  %v13378_v48 = vld [vmem:[#allocation30_spill] sm:$0xff] }
 0x204   : > { %13365 = vst [vmem:[#allocation25_spill] sm:$0xff] %v10973_v25  ;;  %v10991_v60 = vmax.f32 %v3552_v22, 0.0  ;;  %v3551_v40 = vadd.f32 %v3404_v35, %v3259_v54  ;;  %8500 = vmatprep.mubr.msk.f32.mxu1 %vm719_vm1, %v10973_v25  ;;  %8597 = vmatprep.mubr.msk.f32.mxu0 %vm719_vm1, %v10977_v12  ;;  %v3730_v13 = vrot.slane %v10973_v25, 1  ;;  %v2389_v37 = vadd.f32 %v13374_v49, %v2097_v63  ;;  %v13376_v54 = vld [vmem:[#allocation63_spill] sm:$0xff] }
 0x205   : > { %v8452_v20 = vpop.f32.mrf.mxu0  ;;  %v2971_v61 = vadd.f32 %v13375_v45, %v2679_v21  ;;  %v3264_v24 = vadd.f32 %v10818_v43, %v13376_v54  ;;  %v2099_v39 = vadd.f32 %v13379_v56, %v13378_v48  ;;  %v13384_v21 = vld [vmem:[#allocation35_spill] sm:$0xff]  ;;  %v13388_v54 = vld [vmem:[#allocation34_spill] sm:$0xff] }
 0x206   : > { %13369 = vst [vmem:[#allocation33_spill] sm:$0xff] %v10991_v60  ;;  %v11008_v41 = vmax.f32 %v3551_v40, 0.0  ;;  %v3554_v16 = vadd.f32 %v8452_v20, %v3262_v14  ;;  %v11012_v46 = vsel %vm635_vm4, %v3730_v13, %v3748_v57  ;;  %v3784_v5 = vsel %vm635_vm4, %v3748_v57, %v3730_v13  ;;  %v11039_v57 = vpop.f32.mrf.mxu1  ;;  %v13385_v20 = vld [vmem:[#allocation66_spill] sm:$0xff] }
 0x207   : > { %v3414_v33 = vpop.f32.mrf.mxu0  ;;  %8501 = vmatmul.mubr.msk.f32.gmra.mxu1 %vm719_vm1, %v10954_v27  ;;  %8598 = vmatmul.mubr.msk.f32.gmra.mxu0 %vm719_vm1, %v11004_v7  ;;  %v3749_v43 = vrot.slane %v10991_v60, 1  ;;  %v2681_v14 = vadd.f32 %v13380_v58, %v2389_v37  ;;  %v3263_v35 = vadd.f32 %v10825_v0, %v2971_v61  ;;  %v11037_v13 = vmul.f32 %v13309_v44, %v3784_v5 }
 0x208   : > { %13373 = vst [vmem:[#allocation32_spill] sm:$0xff] %v11008_v41  ;;  %v11024_v22 = vmax.f32 %v3554_v16, 0.0  ;;  %v3553_v52 = vadd.f32 %v3414_v33, %v3261_v18  ;;  %8503 = vmatprep.mubr.msk.f32.mxu1 %vm719_vm1, %v11008_v41  ;;  %8600 = vmatprep.mubr.msk.f32.mxu0 %vm719_vm1, %v11012_v46  ;;  %v3731_v51 = vrot.slane %v11008_v41, 1  ;;  %v2391_v18 = vadd.f32 %v13384_v21, %v2099_v39  ;;  %v13386_v16 = vld [vmem:[#allocation65_spill] sm:$0xff]  ;;  %v11072_v39 = vpop.f32.mrf.mxu1 }
 0x209   : > { %v8455_v40 = vpop.f32.mrf.mxu0  ;;  %13381 = vst [vmem:[#allocation28_spill] sm:$0xff] %v11037_v13  ;;  %v2973_v0 = vadd.f32 %v13385_v20, %v2681_v14  ;;  %v3266_v5 = vadd.f32 %v10832_v42, %v13386_v16  ;;  %v13396_v20 = vld [vmem:[#allocation29_spill] sm:$0xff] }
 0x20a   : > { %13377 = vst [vmem:[#allocation62_spill] sm:$0xff] %v11024_v22  ;;  %v11041_v62 = vmax.f32 %v3553_v52, 0.0  ;;  %v3556_v15 = vadd.f32 %v8455_v40, %v3264_v24  ;;  %v11045_v63 = vsel %vm635_vm4, %v3731_v51, %v3749_v43  ;;  %v3785_v34 = vsel %vm635_vm4, %v3749_v43, %v3731_v51  ;;  %v13389_v24 = vld [vmem:[#allocation9_spill] sm:$0xff] }
 0x20b   : > { %13383 = vst [vmem:[#allocation60_spill] sm:$0xff] %v11045_v63  ;;  %v3424_v49 = vpop.f32.mrf.mxu0  ;;  %8504 = vmatmul.mubr.msk.f32.gmra.mxu1 %vm719_vm1, %v10991_v60  ;;  %8601 = vmatmul.mubr.msk.f32.gmra.mxu0 %vm719_vm1, %v11037_v13  ;;  %v3750_v42 = vrot.slane %v11024_v22, 1  ;;  %v2101_v33 = vadd.f32 %v13389_v24, %v13388_v54  ;;  %v13390_v52 = vld [vmem:[#allocation45_spill] sm:$0xff]  ;;  %v3265_v43 = vadd.f32 %v10841_v36, %v2973_v0 }
 0x20c   : > { %13382 = vst [vmem:[#allocation61_spill] sm:$0xff] %v11041_v62  ;;  %v11057_v37 = vmax.f32 %v3556_v15, 0.0  ;;  %v3555_v45 = vadd.f32 %v3424_v49, %v3263_v35  ;;  %8506 = vmatprep.mubr.msk.f32.mxu1 %vm719_vm1, %v11041_v62  ;;  %8603 = vmatprep.mubr.msk.f32.mxu0 %vm719_vm1, %v11045_v63  ;;  %v3732_v61 = vrot.slane %v11041_v62, 1  ;;  %v2683_v51 = vadd.f32 %v13390_v52, %v2391_v18  ;;  %v13394_v15 = vld [vmem:[#allocation39_spill] sm:$0xff]  ;;  %v13400_v54 = vld [vmem:[#allocation41_spill] sm:$0xff] }
 0x20d   : > { %v8458_v48 = vpop.f32.mrf.mxu0  ;;  %v11070_v56 = vmul.f32 %v13309_v44, %v3785_v34  ;;  %v2393_v21 = vadd.f32 %v13394_v15, %v2101_v33  ;;  %v13395_v18 = vld [vmem:[#allocation67_spill] sm:$0xff]  ;;  %v3268_v34 = vadd.f32 %v10850_v28, %v13396_v20  ;;  %v13404_v20 = vld [vmem:[#allocation42_spill] sm:$0xff] }
 0x20e   : > { %13387 = vst [vmem:[#allocation26_spill] sm:$0xff] %v11057_v37  ;;  %v11074_v58 = vmax.f32 %v3555_v45, 0.0  ;;  %v3558_v14 = vadd.f32 %v8458_v48, %v3266_v5  ;;  %v11078_v35 = vsel %vm635_vm4, %v3732_v61, %v3750_v42  ;;  %v3786_v40 = vsel %vm635_vm4, %v3750_v42, %v3732_v61  ;;  %v13398_v45 = vld [vmem:[#allocation38_spill] sm:$0xff]  ;;  %v13399_v61 = vld [vmem:[#allocation11_spill] sm:$0xff] }
 0x20f   : > { %13391 = vst [vmem:[#allocation37_spill] sm:$0xff] %v11070_v56  ;;  %13393 = vst [vmem:[#allocation31_spill] sm:$0xff] %v11078_v35  ;;  %v2975_v36 = vadd.f32 %v13395_v18, %v2683_v51  ;;  %v3434_v0 = vpop.f32.mrf.mxu0  ;;  %8507 = vmatmul.mubr.msk.f32.gmra.mxu1 %vm719_vm1, %v11024_v22  ;;  %8604 = vmatmul.mubr.msk.f32.gmra.mxu0 %vm719_vm1, %v11070_v56  ;;  %v3751_v28 = vrot.slane %v11057_v37, 1  ;;  %v2103_v42 = vadd.f32 %v13399_v61, %v13398_v45  ;;  %v13409_v61 = vld [vmem:[#allocation13_spill] sm:$0xff] }
 0x210   : > { %13392 = vst [vmem:[#allocation36_spill] sm:$0xff] %v11074_v58  ;;  %v11090_v16 = vmax.f32 %v3558_v14, 0.0  ;;  %v3557_v5 = vadd.f32 %v3434_v0, %v3265_v43  ;;  %8509 = vmatprep.mubr.msk.f32.mxu1 %vm719_vm1, %v11074_v58  ;;  %8606 = vmatprep.mubr.msk.f32.mxu0 %vm719_vm1, %v11078_v35  ;;  %v3733_v49 = vrot.slane %v11074_v58, 1  ;;  %v2685_v24 = vadd.f32 %v13400_v54, %v2393_v21  ;;  %v11105_v43 = vpop.f32.mrf.mxu1  ;;  %v13405_v0 = vld [vmem:[#allocation3_spill] sm:$0xff] }
 0x211   : > { %v3267_v33 = vadd.f32 %v10866_v31, %v2975_v36  ;;  %v8461_v52 = vpop.f32.mrf.mxu0  ;;  %v11103_v51 = vmul.f32 %v13309_v44, %v3786_v40  ;;  %v2395_v21 = vadd.f32 %v13404_v20, %v2103_v42  ;;  %v13406_v36 = vld [vmem:[#allocation68_spill] sm:$0xff]  ;;  %v13410_v54 = vld [vmem:[#allocation75_spill] sm:$0xff] }
 0x212   : > { %13397 = vst [vmem:[#allocation64_spill] sm:$0xff] %v11090_v16  ;;  %v11107_v48 = vmax.f32 %v3557_v5, 0.0  ;;  %v3560_v14 = vadd.f32 %v8461_v52, %v3268_v34  ;;  %v11111_v15 = vsel %vm635_vm4, %v3733_v49, %v3751_v28  ;;  %v3787_v18 = vsel %vm635_vm4, %v3751_v28, %v3733_v49  ;;  %v13408_v28 = vld [vmem:[#allocation8_spill] sm:$0xff]  ;;  %v11138_v20 = vpop.f32.mrf.mxu1 }
 0x213   : > { %13401 = vst [vmem:[#allocation63_spill] sm:$0xff] %v11103_v51  ;;  %13403 = vst [vmem:[#allocation2_spill] sm:$0xff] %v11111_v15  ;;  %v2977_v31 = vadd.f32 %v13405_v0, %v2685_v24  ;;  %v3270_v40 = vadd.f32 %v10882_v8, %v13406_v36  ;;  %v3444_v45 = vpop.f32.mrf.mxu0  ;;  %8510 = vmatmul.mubr.msk.f32.gmra.mxu1 %vm719_vm1, %v11057_v37  ;;  %8607 = vmatmul.mubr.msk.f32.gmra.mxu0 %vm719_vm1, %v11103_v51  ;;  %v3752_v8 = vrot.slane %v11090_v16, 1 }
 0x214   : > { %13402 = vst [vmem:[#allocation30_spill] sm:$0xff] %v11107_v48  ;;  %v11123_v34 = vmax.f32 %v3560_v14, 0.0  ;;  %v3559_v5 = vadd.f32 %v3444_v45, %v3267_v33  ;;  %8512 = vmatprep.mubr.msk.f32.mxu1 %vm719_vm1, %v11107_v48  ;;  %8609 = vmatprep.mubr.msk.f32.mxu0 %vm719_vm1, %v11111_v15  ;;  %v3734_v49 = vrot.slane %v11107_v48, 1  ;;  %v2105_v42 = vadd.f32 %v13409_v61, %v13408_v28  ;;  %v13414_v61 = vld [vmem:[#allocation46_spill] sm:$0xff] }
 0x215   : > { %v2687_v24 = vadd.f32 %v13410_v54, %v2395_v21  ;;  %v3269_v52 = vadd.f32 %v10895_v9, %v2977_v31  ;;  %v8464_v14 = vpop.f32.mrf.mxu0  ;;  %v11136_v33 = vmul.f32 %v13309_v44, %v3787_v18  ;;  %v13415_v54 = vld [vmem:[#allocation70_spill] sm:$0xff]  ;;  %v13416_v31 = vld [vmem:[#allocation69_spill] sm:$0xff] }
 0x216   : > { %13407 = vst [vmem:[#allocation40_spill] sm:$0xff] %v11123_v34  ;;  %v11140_v0 = vmax.f32 %v3559_v5, 0.0  ;;  %v3562_v36 = vadd.f32 %v8464_v14, %v3270_v40  ;;  %v11144_v45 = vsel %vm635_vm4, %v3734_v49, %v3752_v8  ;;  %v3788_v28 = vsel %vm635_vm4, %v3752_v8, %v3734_v49  ;;  %v13418_v8 = vld [vmem:[#allocation10_spill] sm:$0xff]  ;;  %v13420_v14 = vld [vmem:[#allocation76_spill] sm:$0xff] }
 0x217   : > { %13411 = vst [vmem:[#allocation35_spill] sm:$0xff] %v11136_v33  ;;  %13413 = vst [vmem:[#allocation65_spill] sm:$0xff] %v11144_v45  ;;  %v2397_v21 = vadd.f32 %v13414_v61, %v2105_v42  ;;  %v2979_v9 = vadd.f32 %v13415_v54, %v2687_v24  ;;  %v3272_v18 = vadd.f32 %v10930_v26, %v13416_v31  ;;  %v3454_v15 = vpop.f32.mrf.mxu0  ;;  %8513 = vmatmul.mubr.msk.f32.gmra.mxu1 %vm719_vm1, %v11090_v16  ;;  %v13419_v42 = vld [vmem:[#allocation15_spill] sm:$0xff] }
 0x218   : > { %13412 = vst [vmem:[#allocation66_spill] sm:$0xff] %v11140_v0  ;;  %8610 = vmatmul.mubr.msk.f32.gmra.mxu0 %vm719_vm1, %v11136_v33  ;;  %v11156_v40 = vmax.f32 %v3562_v36, 0.0  ;;  %v3561_v5 = vadd.f32 %v3454_v15, %v3269_v52  ;;  %8515 = vmatprep.mubr.msk.f32.mxu1 %vm719_vm1, %v11140_v0  ;;  %v3735_v49 = vrot.slane %v11140_v0, 1  ;;  %v3753_v26 = vrot.slane %v11123_v34, 1  ;;  %v11171_v52 = vpop.f32.mrf.mxu1 }
 0x219   : > { %8612 = vmatprep.mubr.msk.f32.mxu0 %vm719_vm1, %v11144_v45  ;;  %v2107_v24 = vadd.f32 %v13419_v42, %v13418_v8  ;;  %v2689_v61 = vadd.f32 %v13420_v14, %v2397_v21  ;;  %v3271_v54 = vadd.f32 %v10971_v3, %v2979_v9  ;;  %v8467_v36 = vpop.f32.mrf.mxu0  ;;  %v11169_v15 = vmul.f32 %v13309_v44, %v3788_v28  ;;  %v13424_v42 = vld [vmem:[#allocation47_spill] sm:$0xff]  ;;  %v13425_v14 = vld [vmem:[#allocation72_spill] sm:$0xff] }
 0x21a   : > { %13417 = vst [vmem:[#allocation34_spill] sm:$0xff] %v11156_v40  ;;  %v11173_v31 = vmax.f32 %v3561_v5, 0.0  ;;  %v3564_v45 = vadd.f32 %v8467_v36, %v3272_v18  ;;  %v11177_v33 = vsel %vm635_vm4, %v3735_v49, %v3753_v26  ;;  %v3789_v8 = vsel %vm635_vm4, %v3753_v26, %v3735_v49  ;;  %v13426_v9 = vld [vmem:[#allocation71_spill] sm:$0xff]  ;;  %v13428_v26 = vld [vmem:[#allocation12_spill] sm:$0xff]  ;;  %v13430_v36 = vld [vmem:[#allocation50_spill] sm:$0xff] }
 0x21b   : > { %13421 = vst [vmem:[#allocation9_spill] sm:$0xff] %v11169_v15  ;;  %13423 = vst [vmem:[#allocation39_spill] sm:$0xff] %v11177_v33  ;;  %v2399_v21 = vadd.f32 %v13424_v42, %v2107_v24  ;;  %v2981_v3 = vadd.f32 %v13425_v14, %v2689_v61  ;;  %v3274_v28 = vadd.f32 %v11006_v17, %v13426_v9  ;;  %v3464_v51 = vpop.f32.mrf.mxu0  ;;  %8516 = vmatmul.mubr.msk.f32.gmra.mxu1 %vm719_vm1, %v11123_v34  ;;  %v13429_v24 = vld [vmem:[#allocation17_spill] sm:$0xff] }
 0x21c   : > { %13422 = vst [vmem:[#allocation45_spill] sm:$0xff] %v11173_v31  ;;  %8613 = vmatmul.mubr.msk.f32.gmra.mxu0 %vm719_vm1, %v11169_v15  ;;  %v11189_v18 = vmax.f32 %v3564_v45, 0.0  ;;  %v3563_v5 = vadd.f32 %v3464_v51, %v3271_v54  ;;  %8518 = vmatprep.mubr.msk.f32.mxu1 %vm719_vm1, %v11173_v31  ;;  %v3736_v49 = vrot.slane %v11173_v31, 1  ;;  %v3754_v17 = vrot.slane %v11156_v40, 1  ;;  %v8423_v54 = vpop.f32.mrf.mxu1 }
 0x21d   : > { %8615 = vmatprep.mubr.msk.f32.mxu0 %vm719_vm1, %v11177_v33  ;;  %v2109_v61 = vadd.f32 %v13429_v24, %v13428_v26  ;;  %v2691_v42 = vadd.f32 %v13430_v36, %v2399_v21  ;;  %v3273_v14 = vadd.f32 %v11039_v57, %v2981_v3  ;;  %v8470_v45 = vpop.f32.mrf.mxu0  ;;  %v11202_v51 = vmul.f32 %v13309_v44, %v3789_v8  ;;  %v13434_v26 = vld [vmem:[#allocation48_spill] sm:$0xff]  ;;  %v13435_v21 = vld [vmem:[#allocation74_spill] sm:$0xff]  ;;  %v13436_v57 = vld [vmem:[#allocation73_spill] sm:$0xff] }
 0x21e   : > { %13427 = vst [vmem:[#allocation67_spill] sm:$0xff] %v11189_v18  ;;  %v11204_v9 = vmax.f32 %v3563_v5, 0.0  ;;  %v3566_v15 = vadd.f32 %v8470_v45, %v3274_v28  ;;  %v11208_v33 = vsel %vm635_vm4, %v3736_v49, %v3754_v17  ;;  %v3790_v35 = vsel %vm635_vm4, %v3754_v17, %v3736_v49  ;;  %v13438_v17 = vld [vmem:[#allocation14_spill] sm:$0xff]  ;;  %v13440_v45 = vld [vmem:[#allocation52_spill] sm:$0xff] }
 0x21f   : > { %13431 = vst [vmem:[#allocation29_spill] sm:$0xff] %v11202_v51  ;;  %13433 = vst [vmem:[#allocation11_spill] sm:$0xff] %v11208_v33  ;;  %v2401_v24 = vadd.f32 %v13434_v26, %v2109_v61  ;;  %v2983_v36 = vadd.f32 %v13435_v21, %v2691_v42  ;;  %v3276_v3 = vadd.f32 %v11072_v39, %v13436_v57  ;;  %v3474_v8 = vpop.f32.mrf.mxu0  ;;  %8519 = vmatmul.mubr.msk.f32.gmra.mxu1 %vm719_vm1, %v11156_v40  ;;  %v13439_v61 = vld [vmem:[#allocation19_spill] sm:$0xff]  ;;  %v3212_v57 = vpop.f32.mrf.mxu1 }
 0x220   : > { %13432 = vst [vmem:[#allocation38_spill] sm:$0xff] %v11204_v9  ;;  %8616 = vmatmul.mubr.msk.f32.gmra.mxu0 %vm719_vm1, %v11202_v51  ;;  %v11220_v28 = vmax.f32 %v3566_v15, 0.0  ;;  %v3565_v5 = vadd.f32 %v3474_v8, %v3273_v14  ;;  %8521 = vmatprep.mubr.msk.f32.mxu1 %vm719_vm1, %v11204_v9  ;;  %v3737_v49 = vrot.slane %v11204_v9, 1  ;;  %v3755_v39 = vrot.slane %v11189_v18, 1 }
 0x221   : > { %8618 = vmatprep.mubr.msk.f32.mxu0 %vm719_vm1, %v11208_v33  ;;  %v2111_v42 = vadd.f32 %v13439_v61, %v13438_v17  ;;  %v2693_v26 = vadd.f32 %v13440_v45, %v2401_v24  ;;  %v3275_v21 = vadd.f32 %v11105_v43, %v2983_v36  ;;  %v8473_v15 = vpop.f32.mrf.mxu0  ;;  %v11233_v14 = vmul.f32 %v13309_v44, %v3790_v35  ;;  %v13444_v17 = vld [vmem:[#allocation49_spill] sm:$0xff]  ;;  %v13445_v24 = vld [vmem:[#allocation43_spill] sm:$0xff] }
 0x222   : > { %13437 = vst [vmem:[#allocation41_spill] sm:$0xff] %v11220_v28  ;;  %v11235_v8 = vmax.f32 %v3565_v5, 0.0  ;;  %v3568_v51 = vadd.f32 %v8473_v15, %v3276_v3  ;;  %v11239_v33 = vsel %vm635_vm4, %v3737_v49, %v3755_v39  ;;  %v3791_v56 = vsel %vm635_vm4, %v3755_v39, %v3737_v49  ;;  %v13446_v43 = vld [vmem:[#allocation77_spill] sm:$0xff]  ;;  %v13448_v39 = vld [vmem:[#allocation16_spill] sm:$0xff]  ;;  %v13450_v15 = vld [vmem:[#allocation54_spill] sm:$0xff] }
 0x223   : > { %13441 = vst [vmem:[#allocation42_spill] sm:$0xff] %v11233_v14  ;;  %13443 = vst [vmem:[#allocation68_spill] sm:$0xff] %v11239_v33  ;;  %v2403_v61 = vadd.f32 %v13444_v17, %v2111_v42  ;;  %v2985_v45 = vadd.f32 %v13445_v24, %v2693_v26  ;;  %v3278_v36 = vadd.f32 %v11138_v20, %v13446_v43  ;;  %v3484_v35 = vpop.f32.mrf.mxu0  ;;  %8522 = vmatmul.mubr.msk.f32.gmra.mxu1 %vm719_vm1, %v11189_v18  ;;  %v13449_v42 = vld [vmem:[#allocation23_spill] sm:$0xff]  ;;  %v8426_v43 = vpop.f32.mrf.mxu1 }
 0x224   : > { %13442 = vst [vmem:[#allocation3_spill] sm:$0xff] %v11235_v8  ;;  %8619 = vmatmul.mubr.msk.f32.gmra.mxu0 %vm719_vm1, %v11233_v14  ;;  %v11251_v3 = vmax.f32 %v3568_v51, 0.0  ;;  %v3567_v5 = vadd.f32 %v3484_v35, %v3275_v21  ;;  %8524 = vmatprep.mubr.msk.f32.mxu1 %vm719_vm1, %v11235_v8  ;;  %v3738_v49 = vrot.slane %v11235_v8, 1  ;;  %v3756_v20 = vrot.slane %v11220_v28, 1 }
 0x225   : > { %8621 = vmatprep.mubr.msk.f32.mxu0 %vm719_vm1, %v11239_v33  ;;  %v2113_v26 = vadd.f32 %v13449_v42, %v13448_v39  ;;  %v2695_v17 = vadd.f32 %v13450_v15, %v2403_v61  ;;  %v3277_v24 = vadd.f32 %v11171_v52, %v2985_v45  ;;  %v8476_v51 = vpop.f32.mrf.mxu0  ;;  %v11264_v21 = vmul.f32 %v13309_v44, %v3791_v56  ;;  %v13452_v39 = vld [vmem:[#allocation51_spill] sm:$0xff]  ;;  %v13453_v61 = vld [vmem:[#allocation78_spill] sm:$0xff]  ;;  %v13454_v52 = vld [vmem:[#allocation5_spill] sm:$0xff] }
 0x226   : > { %13447 = vst [vmem:[#allocation8_spill] sm:$0xff] %v11251_v3  ;;  %v11266_v35 = vmax.f32 %v3567_v5, 0.0  ;;  %v3570_v14 = vadd.f32 %v8476_v51, %v3278_v36  ;;  %v11270_v33 = vsel %vm635_vm4, %v3738_v49, %v3756_v20  ;;  %v3792_v63 = vsel %vm635_vm4, %v3756_v20, %v3738_v49  ;;  %v13455_v49 = vld [vmem:[#allocation56_spill] sm:$0xff] }
 0x227   : > { %v2405_v42 = vadd.f32 %v13452_v39, %v2113_v26  ;;  %v2987_v15 = vadd.f32 %v13453_v61, %v2695_v17  ;;  %v3280_v45 = vadd.f32 %v8423_v54, %v13454_v52  ;;  %v3494_v13 = vpop.f32.mrf.mxu0  ;;  %8525 = vmatmul.mubr.msk.f32.gmra.mxu1 %vm719_vm1, %v11220_v28  ;;  %v3757_v54 = vrot.slane %v11251_v3, 1 }
 0x228   : > { %13451 = vst [vmem:[#allocation13_spill] sm:$0xff] %v11266_v35  ;;  %8622 = vmatmul.mubr.msk.f32.gmra.mxu0 %vm719_vm1, %v11264_v21  ;;  %v11281_v56 = vmax.f32 %v3570_v14, 0.0  ;;  %v3569_v36 = vadd.f32 %v3494_v13, %v3277_v24  ;;  %8527 = vmatprep.mubr.msk.f32.mxu1 %vm719_vm1, %v11266_v35  ;;  %v3739_v5 = vrot.slane %v11266_v35, 1  ;;  %v11291_v51 = vmul.f32 %v13309_v44, %v3792_v63  ;;  %v3222_v14 = vpop.f32.mrf.mxu1 }
 0x229   : > { %8624 = vmatprep.mubr.msk.f32.mxu0 %vm719_vm1, %v11270_v33  ;;  %v2697_v20 = vadd.f32 %v13455_v49, %v2405_v42  ;;  %v3279_v26 = vadd.f32 %v3212_v57, %v2987_v15  ;;  %v8479_v17 = vpop.f32.mrf.mxu0  ;;  %v3282_v42 = vadd.f32 %v8426_v43, %v10835_v50 }
 0x22a   : > { %v11293_v39 = vmax.f32 %v3569_v36, 0.0  ;;  %v3572_v13 = vadd.f32 %v8479_v17, %v3280_v45  ;;  %v11297_v24 = vsel %vm635_vm4, %v3739_v5, %v3757_v54  ;;  %v3793_v61 = vsel %vm635_vm4, %v3757_v54, %v3739_v5 }
 0x22b   : > { %13456 = vst [vmem:[#allocation75_spill] sm:$0xff] %v11297_v24  ;;  %v2989_v52 = vadd.f32 %v10837_v11, %v2697_v20  ;;  %v3504_v57 = vpop.f32.mrf.mxu0  ;;  %8528 = vmatmul.mubr.msk.f32.gmra.mxu1 %vm719_vm1, %v11251_v3  ;;  %v3758_v50 = vrot.slane %v11281_v56, 1  ;;  %v11316_v36 = vmul.f32 %v13309_v44, %v3793_v61 }
 0x22c   : > { %8625 = vmatmul.mubr.msk.f32.gmra.mxu0 %vm719_vm1, %v11291_v51  ;;  %v11307_v63 = vmax.f32 %v3572_v13, 0.0  ;;  %v3571_v15 = vadd.f32 %v3504_v57, %v3279_v26  ;;  %8530 = vmatprep.mubr.msk.f32.mxu1 %vm719_vm1, %v11293_v39  ;;  %v3740_v11 = vrot.slane %v11293_v39, 1 }
 0x22d   : > { %8627 = vmatprep.mubr.msk.f32.mxu0 %vm719_vm1, %v11297_v24  ;;  %v3281_v43 = vadd.f32 %v3222_v14, %v2989_v52  ;;  %v8482_v45 = vpop.f32.mrf.mxu0  ;;  %13458 = vst [vmem:[#allocation70_spill] sm:$0xff] %v11316_v36 }
 0x22e   : > { %13457 = vst [vmem:[#allocation46_spill] sm:$0xff] %v11307_v63  ;;  %v11318_v5 = vmax.f32 %v3571_v15, 0.0  ;;  %v3574_v54 = vadd.f32 %v8482_v45, %v3282_v42  ;;  %v11322_v49 = vsel %vm635_vm4, %v3740_v11, %v3758_v50  ;;  %v3794_v20 = vsel %vm635_vm4, %v3758_v50, %v3740_v11 }
 0x22f   : > { %13459 = vst [vmem:[#allocation69_spill] sm:$0xff] %v11322_v49  ;;  %v3514_v26 = vpop.f32.mrf.mxu0  ;;  %8531 = vmatmul.mubr.msk.f32.gmra.mxu1 %vm719_vm1, %v11281_v56  ;;  %v3759_v61 = vrot.slane %v11307_v63, 1  ;;  %v11339_v52 = vmul.f32 %v13309_v44, %v3794_v20  ;;  %v3620_v11 = vrot.slane %v10901_v38, 7  ;;  %v3638_v45 = vrot.slane %v10893_v10, 7  ;;  %v13465_v20 = vld [vmem:[#allocation6_spill] sm:$0xff] }
 0x230   : > { %8628 = vmatmul.mubr.msk.f32.gmra.mxu0 %vm719_vm1, %v11316_v36  ;;  %v11330_v17 = vmax.f32 %v3574_v54, 0.0  ;;  %v3573_v14 = vadd.f32 %v3514_v26, %v3281_v43  ;;  %8533 = vmatprep.mubr.msk.f32.mxu1 %vm719_vm1, %v11318_v5  ;;  %v3741_v13 = vrot.slane %v11318_v5, 1  ;;  %v3691_v26 = vmul.f32 %v13465_v20, %v10925_v32 }
 0x231   : > { %8630 = vmatprep.mubr.msk.f32.mxu0 %vm719_vm1, %v11322_v49  ;;  %13461 = vst [vmem:[#allocation15_spill] sm:$0xff] %v11339_v52  ;;  %v8485_v36 = vpop.f32.mrf.mxu0 }
 0x232   : > { %13460 = vst [vmem:[#allocation10_spill] sm:$0xff] %v11330_v17  ;;  %v11341_v42 = vmax.f32 %v3573_v14, 0.0  ;;  %v11345_v57 = vsel %vm635_vm4, %v3741_v13, %v3759_v61  ;;  %v3795_v15 = vsel %vm635_vm4, %v3759_v61, %v3741_v13  ;;  %v3760_v43 = vrot.slane %v11330_v17, 1 }
 0x233   : > { %13463 = vst [vmem:[#allocation47_spill] sm:$0xff] %v11345_v57  ;;  %8534 = vmatmul.mubr.msk.f32.gmra.mxu1 %vm719_vm1, %v11307_v63  ;;  %v11362_v54 = vmul.f32 %v13309_v44, %v3795_v15  ;;  %v3674_v61 = vsel %vm514_vm3, %v3638_v45, %v3620_v11  ;;  %v3621_v15 = vrot.slane %v10932_v19, 7  ;;  %v3524_v24 = vpop.f32.mrf.mxu0 }
 0x234   : > { %13462 = vst [vmem:[#allocation76_spill] sm:$0xff] %v11341_v42  ;;  %8631 = vmatmul.mubr.msk.f32.gmra.mxu0 %vm719_vm1, %v11339_v52  ;;  %8536 = vmatprep.mubr.msk.f32.mxu1 %vm719_vm1, %v11341_v42  ;;  %v3742_v50 = vrot.slane %v11341_v42, 1 }
 0x235   : > { %8633 = vmatprep.mubr.msk.f32.mxu0 %vm719_vm1, %v11345_v57  ;;  %13464 = vst [vmem:[#allocation72_spill] sm:$0xff] %v11362_v54  ;;  %v3639_v57 = vrot.slane %v10911_v53, 7 }
 0x236   : > { %v11368_v14 = vsel %vm635_vm4, %v3742_v50, %v3760_v43  ;;  %v3796_v13 = vsel %vm635_vm4, %v3760_v43, %v3742_v50  ;;  %v11392_v50 = vld [vmem:[%s12902_s4 + $0x14] sm:$0xf] }
 0x237   : > { %13466 = vst [vmem:[#allocation71_spill] sm:$0xff] %v11368_v14  ;;  %8537 = vmatmul.mubr.msk.f32.gmra.mxu1 %vm719_vm1, %v11330_v17  ;;  %v11383_v32 = vmul.f32 %v13309_v44, %v3796_v13  ;;  %v3675_v43 = vsel %vm514_vm3, %v3639_v57, %v3621_v15  ;;  %v3640_v13 = vrot.slane %v10954_v27, 7  ;;  %v11427_v44 = vld [vmem:[%s12902_s4 + $0x20] sm:$0xf] }
 0x238   : > { %8634 = vmatmul.mubr.msk.f32.gmra.mxu0 %vm719_vm1, %v11362_v54  ;;  %8541 = vmatprep.mubr.msk.f32.mxu1 %vm719_vm1, %v3691_v26  ;;  %v11387_v54 = vmul.f32 %v13465_v20, %v3674_v61  ;;  %v3622_v26 = vrot.slane %v10973_v25, 7  ;;  %v11415_v61 = vmul.f32 %v13465_v20, %v3675_v43 }
 0x239   : > { %8636 = vmatprep.mubr.msk.f32.mxu0 %vm719_vm1, %v11368_v14  ;;  %13467 = vst [vmem:[#allocation12_spill] sm:$0xff] %v11383_v32 }
 0x23b   : > { %8542 = vmatmul.mubr.msk.f32.vlgmr.msra.gmra.mxu1 %vm719_vm1, %v10947_v6  ;;  %v11412_v6 = vsel %vm514_vm3, %v3620_v11, %v3638_v45  ;;  %v3641_v11 = vrot.slane %v10991_v60, 7 }
 0x23c   : > { %8637 = vmatmul.mubr.msk.f32.gmra.mxu0 %vm719_vm1, %v11383_v32  ;;  %8640 = vmatpush3.msk.msra.mxu1 %vm828_vm0, %v10907_v59  ;;  %v3623_v59 = vrot.slane %v11008_v41, 7  ;;  %v13469_v32 = vld [vmem:[#allocation21_spill] sm:$0xff] }
 0x23d   : > { %8544 = vmatprep.mubr.msk.f32.mxu1 %vm719_vm1, %v11387_v54  ;;  %8691 = vmatprep.mubr.msk.f32.mxu0 %vm719_vm1, %v10901_v38  ;;  %v3676_v38 = vsel %vm514_vm3, %v3640_v13, %v3622_v26 }
 0x23e   : > { %8739 = vmatprep.subr.msk.mxu1 %vm828_vm0, %v11392_v50  ;;  %v11441_v45 = vmul.f32 %v13465_v20, %v3676_v38  ;;  %v3677_v43 = vsel %vm514_vm3, %v3641_v11, %v3623_v59 }
 0x23f   : > { %8545 = vmatmul.mubr.msk.f32.gmra.mxu1 %vm719_vm1, %v11412_v6  ;;  %v11462_v38 = vmul.f32 %v13465_v20, %v3677_v43 }
 0x240   : > { %8692 = vmatmul.mubr.msk.f32.vlgmr.msra.gmra.mxu0 %vm719_vm1, %v10893_v10  ;;  %8547 = vmatprep.mubr.msk.f32.mxu1 %vm719_vm1, %v11415_v61  ;;  %v11438_v10 = vsel %vm514_vm3, %v3621_v15, %v3639_v57  ;;  %v3642_v57 = vrot.slane %v11024_v22, 7  ;;  %v11459_v15 = vsel %vm514_vm3, %v3622_v26, %v3640_v13  ;;  %v3643_v26 = vrot.slane %v11057_v37, 7 }
 0x241   : > { %8694 = vmatprep.mubr.msk.f32.mxu0 %vm719_vm1, %v10932_v19  ;;  %8790 = vmatpush3.msk.msra.mxu0 %vm828_vm0, %v10952_v30  ;;  %v3624_v30 = vrot.slane %v11041_v62, 7  ;;  %v11478_v13 = vsel %vm514_vm3, %v3623_v59, %v3641_v11  ;;  %v13468_v19 = vld [vmem:[#allocation7_spill] sm:$0xff] }
 0x242   : > { %8889 = vmatprep.subr.msk.mxu0 %vm828_vm0, %v11427_v44  ;;  %v1415_v14 = vadd.f32 %v13469_v32, %v13468_v19  ;;  %v3633_v32 = vrot.slane %v11318_v5, 7 }
 0x243   : > { %8548 = vmatmul.mubr.msk.f32.gmra.mxu1 %vm719_vm1, %v11438_v10  ;;  %v11497_v59 = vsel %vm514_vm3, %v3624_v30, %v3642_v57 }
 0x244   : > { %8695 = vmatmul.mubr.msk.f32.gmra.mxu0 %vm719_vm1, %v10911_v53  ;;  %8550 = vmatprep.mubr.msk.f32.mxu1 %vm719_vm1, %v11441_v45  ;;  %v3678_v53 = vsel %vm514_vm3, %v3642_v57, %v3624_v30 }
 0x245   : > { %8697 = vmatprep.mubr.msk.f32.mxu0 %vm719_vm1, %v10973_v25  ;;  %v3625_v25 = vrot.slane %v11074_v58, 7  ;;  %v11481_v43 = vmul.f32 %v13465_v20, %v3678_v53  ;;  %v3644_v53 = vrot.slane %v11090_v16, 7 }
 0x247   : > { %8551 = vmatmul.mubr.msk.f32.gmra.mxu1 %vm719_vm1, %v11459_v15  ;;  %v11516_v30 = vsel %vm514_vm3, %v3625_v25, %v3643_v26 }
 0x248   : > { %8698 = vmatmul.mubr.msk.f32.gmra.mxu0 %vm719_vm1, %v10954_v27  ;;  %8553 = vmatprep.mubr.msk.f32.mxu1 %vm719_vm1, %v11462_v38  ;;  %v3679_v27 = vsel %vm514_vm3, %v3643_v26, %v3625_v25  ;;  %v3646_v25 = vrot.slane %v11156_v40, 7 }
 0x249   : > { %8700 = vmatprep.mubr.msk.f32.mxu0 %vm719_vm1, %v11008_v41  ;;  %v3626_v41 = vrot.slane %v11107_v48, 7  ;;  %v11500_v11 = vmul.f32 %v13465_v20, %v3679_v27  ;;  %v3645_v27 = vrot.slane %v11123_v34, 7 }
 0x24b   : > { %8554 = vmatmul.mubr.msk.f32.gmra.mxu1 %vm719_vm1, %v11478_v13 }
 0x24c   : > { %8701 = vmatmul.mubr.msk.f32.gmra.mxu0 %vm719_vm1, %v10991_v60  ;;  %8556 = vmatprep.mubr.msk.f32.mxu1 %vm719_vm1, %v11481_v43  ;;  %v3680_v60 = vsel %vm514_vm3, %v3644_v53, %v3626_v41 }
 0x24d   : > { %8703 = vmatprep.mubr.msk.f32.mxu0 %vm719_vm1, %v11041_v62  ;;  %v3627_v62 = vrot.slane %v11140_v0, 7  ;;  %v11519_v57 = vmul.f32 %v13465_v20, %v3680_v60  ;;  %v11535_v60 = vsel %vm514_vm3, %v3626_v41, %v3644_v53  ;;  %v3647_v41 = vrot.slane %v11189_v18, 7 }
 0x24f   : > { %8557 = vmatmul.mubr.msk.f32.gmra.mxu1 %vm719_vm1, %v11497_v59 }
 0x250   : > { %8704 = vmatmul.mubr.msk.f32.gmra.mxu0 %vm719_vm1, %v11024_v22  ;;  %8559 = vmatprep.mubr.msk.f32.mxu1 %vm719_vm1, %v11500_v11  ;;  %v3681_v22 = vsel %vm514_vm3, %v3645_v27, %v3627_v62 }
 0x251   : > { %8706 = vmatprep.mubr.msk.f32.mxu0 %vm719_vm1, %v11074_v58  ;;  %v3628_v58 = vrot.slane %v11173_v31, 7  ;;  %v11538_v26 = vmul.f32 %v13465_v20, %v3681_v22  ;;  %v11554_v22 = vsel %vm514_vm3, %v3627_v62, %v3645_v27  ;;  %v3648_v62 = vrot.slane %v11220_v28, 7 }
 0x253   : > { %8560 = vmatmul.mubr.msk.f32.gmra.mxu1 %vm719_vm1, %v11516_v30 }
 0x254   : > { %8707 = vmatmul.mubr.msk.f32.gmra.mxu0 %vm719_vm1, %v11057_v37  ;;  %8562 = vmatprep.mubr.msk.f32.mxu1 %vm719_vm1, %v11519_v57  ;;  %v3682_v37 = vsel %vm514_vm3, %v3646_v25, %v3628_v58 }
 0x255   : > { %8709 = vmatprep.mubr.msk.f32.mxu0 %vm719_vm1, %v11107_v48  ;;  %v3629_v48 = vrot.slane %v11204_v9, 7  ;;  %v11557_v53 = vmul.f32 %v13465_v20, %v3682_v37  ;;  %v11573_v37 = vsel %vm514_vm3, %v3628_v58, %v3646_v25  ;;  %v3649_v58 = vrot.slane %v11251_v3, 7 }
 0x257   : > { %8563 = vmatmul.mubr.msk.f32.gmra.mxu1 %vm719_vm1, %v11535_v60 }
 0x258   : > { %8710 = vmatmul.mubr.msk.f32.gmra.mxu0 %vm719_vm1, %v11090_v16  ;;  %8565 = vmatprep.mubr.msk.f32.mxu1 %vm719_vm1, %v11538_v26  ;;  %v3683_v16 = vsel %vm514_vm3, %v3647_v41, %v3629_v48 }
 0x259   : > { %8712 = vmatprep.mubr.msk.f32.mxu0 %vm719_vm1, %v11140_v0  ;;  %v3630_v0 = vrot.slane %v11235_v8, 7  ;;  %v11576_v27 = vmul.f32 %v13465_v20, %v3683_v16  ;;  %v11592_v16 = vsel %vm514_vm3, %v3629_v48, %v3647_v41  ;;  %v3650_v48 = vrot.slane %v11281_v56, 7 }
 0x25b   : > { %8566 = vmatmul.mubr.msk.f32.gmra.mxu1 %vm719_vm1, %v11554_v22 }
 0x25c   : > { %8713 = vmatmul.mubr.msk.f32.gmra.mxu0 %vm719_vm1, %v11123_v34  ;;  %8568 = vmatprep.mubr.msk.f32.mxu1 %vm719_vm1, %v11557_v53  ;;  %v3684_v34 = vsel %vm514_vm3, %v3648_v62, %v3630_v0 }
 0x25d   : > { %8715 = vmatprep.mubr.msk.f32.mxu0 %vm719_vm1, %v11173_v31  ;;  %v3631_v31 = vrot.slane %v11266_v35, 7  ;;  %v11595_v25 = vmul.f32 %v13465_v20, %v3684_v34  ;;  %v13470_v34 = vld [vmem:[#allocation18_spill] sm:$0xff] }
 0x25e   : > { %v1823_v41 = vadd.f32 %v13470_v34, %v1415_v14 }
 0x25f   : > { %8569 = vmatmul.mubr.msk.f32.gmra.mxu1 %vm719_vm1, %v11573_v37 }
 0x260   : > { %8716 = vmatmul.mubr.msk.f32.gmra.mxu0 %vm719_vm1, %v11156_v40  ;;  %8571 = vmatprep.mubr.msk.f32.mxu1 %vm719_vm1, %v11576_v27  ;;  %v3685_v40 = vsel %vm514_vm3, %v3649_v58, %v3631_v31 }
 0x261   : > { %8718 = vmatprep.mubr.msk.f32.mxu0 %vm719_vm1, %v11204_v9  ;;  %v3632_v9 = vrot.slane %v11293_v39, 7  ;;  %v11617_v52 = vmul.f32 %v13465_v20, %v3685_v40  ;;  %v3651_v40 = vrot.slane %v11307_v63, 7 }
 0x263   : > { %8572 = vmatmul.mubr.msk.f32.gmra.mxu1 %vm719_vm1, %v11592_v16  ;;  %v3686_v19 = vsel %vm514_vm3, %v3650_v48, %v3632_v9 }
 0x264   : > { %8719 = vmatmul.mubr.msk.f32.gmra.mxu0 %vm719_vm1, %v11189_v18  ;;  %8574 = vmatprep.mubr.msk.f32.mxu1 %vm719_vm1, %v11595_v25  ;;  %v11614_v18 = vsel %vm514_vm3, %v3630_v0, %v3648_v62  ;;  %v8429_v0 = vpop.f32.mrf.mxu1  ;;  %v13472_v62 = vld [vmem:[#allocation53_spill] sm:$0xff]  ;;  %v11638_v49 = vmul.f32 %v13465_v20, %v3686_v19 }
 0x265   : > { %8721 = vmatprep.mubr.msk.f32.mxu0 %vm719_vm1, %v11235_v8  ;;  %v13471_v8 = vld [vmem:[#allocation24_spill] sm:$0xff] }
 0x266   : > { %v2115_v14 = vadd.f32 %v13471_v8, %v1823_v41  ;;  %v3687_v8 = vsel %vm514_vm3, %v3651_v40, %v3633_v32  ;;  %v3634_v41 = vrot.slane %v11341_v42, 7 }
 0x267   : > { %8575 = vmatmul.mubr.msk.f32.gmra.mxu1 %vm719_vm1, %v11614_v18 }
 0x268   : > { %8722 = vmatmul.mubr.msk.f32.gmra.mxu0 %vm719_vm1, %v11220_v28  ;;  %8577 = vmatprep.mubr.msk.f32.mxu1 %vm719_vm1, %v11617_v52  ;;  %v2407_v34 = vadd.f32 %v13472_v62, %v2115_v14  ;;  %v11635_v28 = vsel %vm514_vm3, %v3631_v31, %v3649_v58  ;;  %v13473_v14 = vld [vmem:[#allocation57_spill] sm:$0xff]  ;;  %v3232_v31 = vpop.f32.mrf.mxu1  ;;  %v3652_v58 = vrot.slane %v11330_v17, 7 }
 0x269   : > { %8724 = vmatprep.mubr.msk.f32.mxu0 %vm719_vm1, %v11266_v35  ;;  %v11659_v35 = vmul.f32 %v13465_v20, %v3687_v8  ;;  %v3284_v8 = vadd.f32 %v8429_v0, %v10844_v47 }
 0x26a   : > { %v2699_v62 = vadd.f32 %v13473_v14, %v2407_v34  ;;  %v3688_v34 = vsel %vm514_vm3, %v3652_v58, %v3634_v41 }
 0x26b   : > { %8578 = vmatmul.mubr.msk.f32.gmra.mxu1 %vm719_vm1, %v11635_v28 }
 0x26c   : > { %8725 = vmatmul.mubr.msk.f32.gmra.mxu0 %vm719_vm1, %v11251_v3  ;;  %8580 = vmatprep.mubr.msk.f32.mxu1 %vm719_vm1, %v11638_v49  ;;  %v2991_v19 = vadd.f32 %v10846_v29, %v2699_v62  ;;  %v11656_v3 = vsel %vm514_vm3, %v3632_v9, %v3650_v48  ;;  %v11673_v9 = vsel %vm514_vm3, %v3633_v32, %v3651_v40 }
 0x26d   : > { %8727 = vmatprep.mubr.msk.f32.mxu0 %vm719_vm1, %v11293_v39  ;;  %v11676_v48 = vmul.f32 %v13465_v20, %v3688_v34  ;;  %v11691_v40 = vsel %vm514_vm3, %v3634_v41, %v3652_v58 }
 0x26e   : > { %v3283_v14 = vadd.f32 %v3232_v31, %v2991_v19 }
 0x26f   : > { %8581 = vmatmul.mubr.msk.f32.gmra.mxu1 %vm719_vm1, %v11656_v3 }
 0x270   : > { %8728 = vmatmul.mubr.msk.f32.gmra.mxu0 %vm719_vm1, %v11281_v56  ;;  %8583 = vmatprep.mubr.msk.f32.mxu1 %vm719_vm1, %v11659_v35  ;;  %v3575_v29 = vadd.f32 %v3524_v24, %v3283_v14  ;;  %v3576_v24 = vadd.f32 %v8485_v36, %v3284_v8  ;;  %v11706_v36 = vld [vmem:[%s12902_s4 + $0x1c] sm:$0xf]  ;;  %v13484_v14 = vld [vmem:[#allocation28_spill] sm:$0xff] }
 0x271   : > { %8730 = vmatprep.mubr.msk.f32.mxu0 %vm719_vm1, %v11318_v5  ;;  %v13486_v8 = vld [vmem:[#allocation37_spill] sm:$0xff] }
 0x272   : > { %v11687_v32 = vmax.f32 %v3575_v29, 0.0  ;;  %v11701_v47 = vmax.f32 %v3576_v24, 0.0  ;;  %v13487_v24 = vld [vmem:[#allocation31_spill] sm:$0xff] }
 0x273   : > { %8584 = vmatmul.mubr.msk.f32.gmra.mxu1 %vm719_vm1, %v11673_v9 }
 0x274   : > { %8731 = vmatmul.mubr.msk.f32.gmra.mxu0 %vm719_vm1, %v11307_v63  ;;  %8586 = vmatprep.mubr.msk.f32.mxu1 %vm719_vm1, %v11676_v48  ;;  %13474 = vst [vmem:[#allocation17_spill] sm:$0xff] %v11687_v32  ;;  %13475 = vst [vmem:[#allocation50_spill] sm:$0xff] %v11701_v47  ;;  %v13515_v63 = vld [vmem:[#allocation12_spill] sm:$0xff] }
 0x275   : > { %8733 = vmatprep.mubr.msk.f32.mxu0 %vm719_vm1, %v11341_v42 }
 0x277   : > { %8587 = vmatmul.mubr.msk.f32.gmra.mxu1 %vm719_vm1, %v11691_v40 }
 0x278   : > { %8734 = vmatmul.mubr.msk.f32.gmra.mxu0 %vm719_vm1, %v11330_v17  ;;  %8641 = vmatprep.mubr.msk.f32.mxu1 %vm719_vm1, %v11387_v54  ;;  %v13477_v54 = vld [vmem:[#allocation22_spill] sm:$0xff] }
 0x279   : > { %8736 = vmatprep.mubr.msk.f32.mxu0 %vm719_vm1, %v11687_v32 }
 0x27b   : > { %8642 = vmatmul.mubr.msk.f32.vlgmr.msra.gmra.mxu1 %vm719_vm1, %v11412_v6  ;;  %v13478_v6 = vld [vmem:[#allocation20_spill] sm:$0xff] }
 0x27c   : > { %8737 = vmatmul.mubr.msk.f32.gmra.mxu0 %vm719_vm1, %v11701_v47  ;;  %8740 = vmatpush3.msk.msra.mxu1 %vm828_vm0, %v11392_v50 }
 0x27d   : > { %8644 = vmatprep.mubr.msk.f32.mxu1 %vm719_vm1, %v11415_v61  ;;  %8791 = vmatprep.mubr.msk.f32.mxu0 %vm719_vm1, %v11415_v61 }
 0x27e   : > { %8839 = vmatprep.subr.msk.mxu1 %vm828_vm0, %v11706_v36 }
 0x27f   : > { %8645 = vmatmul.mubr.msk.f32.gmra.mxu1 %vm719_vm1, %v11438_v10 }
 0x280   : > { %8792 = vmatmul.mubr.msk.f32.vlgmr.msra.gmra.mxu0 %vm719_vm1, %v11438_v10  ;;  %8647 = vmatprep.mubr.msk.f32.mxu1 %vm719_vm1, %v11441_v45  ;;  %v13479_v10 = vld [vmem:[#allocation27_spill] sm:$0xff] }
 0x281   : > { %8794 = vmatprep.mubr.msk.f32.mxu0 %vm719_vm1, %v11441_v45  ;;  %8890 = vmatpush3.msk.msra.mxu0 %vm828_vm0, %v11427_v44  ;;  %v13476_v44 = vld [vmem:[#allocation4_spill] sm:$0xff] }
 0x282   : > { %v1425_v50 = vadd.f32 %v13477_v54, %v13476_v44 }
 0x283   : > { %8648 = vmatmul.mubr.msk.f32.gmra.mxu1 %vm719_vm1, %v11459_v15 }
 0x284   : > { %8795 = vmatmul.mubr.msk.f32.gmra.mxu0 %vm719_vm1, %v11459_v15  ;;  %8650 = vmatprep.mubr.msk.f32.mxu1 %vm719_vm1, %v11462_v38  ;;  %v1825_v61 = vadd.f32 %v13478_v6, %v1425_v50  ;;  %v8432_v15 = vpop.f32.mrf.mxu1  ;;  %v13488_v50 = vld [vmem:[#allocation63_spill] sm:$0xff]  ;;  %v13489_v6 = vld [vmem:[#allocation2_spill] sm:$0xff] }
 0x285   : > { %8797 = vmatprep.mubr.msk.f32.mxu0 %vm719_vm1, %v11462_v38  ;;  %v13480_v38 = vld [vmem:[#allocation55_spill] sm:$0xff] }
 0x286   : > { %v2117_v45 = vadd.f32 %v13479_v10, %v1825_v61 }
 0x287   : > { %8651 = vmatmul.mubr.msk.f32.gmra.mxu1 %vm719_vm1, %v11478_v13 }
 0x288   : > { %8798 = vmatmul.mubr.msk.f32.gmra.mxu0 %vm719_vm1, %v11478_v13  ;;  %8653 = vmatprep.mubr.msk.f32.mxu1 %vm719_vm1, %v11481_v43  ;;  %v2409_v13 = vadd.f32 %v13480_v38, %v2117_v45  ;;  %v13490_v38 = vld [vmem:[#allocation35_spill] sm:$0xff] }
 0x289   : > { %8800 = vmatprep.mubr.msk.f32.mxu0 %vm719_vm1, %v11481_v43  ;;  %v8488_v43 = vpop.f32.mrf.mxu0 }
 0x28b   : > { %8654 = vmatmul.mubr.msk.f32.gmra.mxu1 %vm719_vm1, %v11497_v59 }
 0x28c   : > { %8801 = vmatmul.mubr.msk.f32.gmra.mxu0 %vm719_vm1, %v11497_v59  ;;  %8656 = vmatprep.mubr.msk.f32.mxu1 %vm719_vm1, %v11500_v11  ;;  %v13481_v59 = vld [vmem:[#allocation58_spill] sm:$0xff] }
 0x28d   : > { %8803 = vmatprep.mubr.msk.f32.mxu0 %vm719_vm1, %v11500_v11  ;;  %v2701_v11 = vadd.f32 %v13481_v59, %v2409_v13  ;;  %v13491_v13 = vld [vmem:[#allocation65_spill] sm:$0xff] }
 0x28f   : > { %8657 = vmatmul.mubr.msk.f32.gmra.mxu1 %vm719_vm1, %v11516_v30 }
 0x290   : > { %8804 = vmatmul.mubr.msk.f32.gmra.mxu0 %vm719_vm1, %v11516_v30  ;;  %8659 = vmatprep.mubr.msk.f32.mxu1 %vm719_vm1, %v11519_v57  ;;  %v3242_v30 = vpop.f32.mrf.mxu1 }
 0x291   : > { %8806 = vmatprep.mubr.msk.f32.mxu0 %vm719_vm1, %v11519_v57  ;;  %v2993_v57 = vadd.f32 %v10857_v1, %v2701_v11 }
 0x293   : > { %8660 = vmatmul.mubr.msk.f32.gmra.mxu1 %vm719_vm1, %v11535_v60 }
 0x294   : > { %8807 = vmatmul.mubr.msk.f32.gmra.mxu0 %vm719_vm1, %v11535_v60  ;;  %8662 = vmatprep.mubr.msk.f32.mxu1 %vm719_vm1, %v11538_v26  ;;  %v3534_v60 = vpop.f32.mrf.mxu0 }
 0x295   : > { %8809 = vmatprep.mubr.msk.f32.mxu0 %vm719_vm1, %v11538_v26  ;;  %v3285_v26 = vadd.f32 %v3242_v30, %v2993_v57  ;;  %v13492_v57 = vld [vmem:[#allocation9_spill] sm:$0xff] }
 0x297   : > { %8663 = vmatmul.mubr.msk.f32.gmra.mxu1 %vm719_vm1, %v11554_v22 }
 0x298   : > { %8810 = vmatmul.mubr.msk.f32.gmra.mxu0 %vm719_vm1, %v11554_v22  ;;  %8665 = vmatprep.mubr.msk.f32.mxu1 %vm719_vm1, %v11557_v53  ;;  %v3286_v22 = vadd.f32 %v8432_v15, %v10853_v23 }
 0x299   : > { %8812 = vmatprep.mubr.msk.f32.mxu0 %vm719_vm1, %v11557_v53  ;;  %v3577_v53 = vadd.f32 %v3534_v60, %v3285_v26  ;;  %v13493_v60 = vld [vmem:[#allocation39_spill] sm:$0xff] }
 0x29a   : > { %v3578_v1 = vadd.f32 %v8488_v43, %v3286_v22 }
 0x29b   : > { %8666 = vmatmul.mubr.msk.f32.gmra.mxu1 %vm719_vm1, %v11573_v37 }
 0x29c   : > { %8813 = vmatmul.mubr.msk.f32.gmra.mxu0 %vm719_vm1, %v11573_v37  ;;  %8668 = vmatprep.mubr.msk.f32.mxu1 %vm719_vm1, %v11576_v27  ;;  %v3613_v37 = vmax.f32 %v3577_v53, 0.0  ;;  %v3614_v23 = vmax.f32 %v3578_v1, 0.0 }
 0x29d   : > { %8815 = vmatprep.mubr.msk.f32.mxu0 %vm719_vm1, %v11576_v27 }
 0x29e   : > { %v11819_v27 = vmul.f32 0.0, %v3613_v37  ;;  %v13494_v37 = vld [vmem:[#allocation29_spill] sm:$0xff] }
 0x29f   : > { %8669 = vmatmul.mubr.msk.f32.gmra.mxu1 %vm719_vm1, %v11592_v16 }
 0x2a0   : > { %8816 = vmatmul.mubr.msk.f32.gmra.mxu0 %vm719_vm1, %v11592_v16  ;;  %8671 = vmatprep.mubr.msk.f32.mxu1 %vm719_vm1, %v11595_v25  ;;  %13482 = vst [vmem:[#allocation48_spill] sm:$0xff] %v11819_v27 }
 0x2a1   : > { %8818 = vmatprep.mubr.msk.f32.mxu0 %vm719_vm1, %v11595_v25 }
 0x2a3   : > { %8672 = vmatmul.mubr.msk.f32.gmra.mxu1 %vm719_vm1, %v11614_v18 }
 0x2a4   : > { %8819 = vmatmul.mubr.msk.f32.gmra.mxu0 %vm719_vm1, %v11614_v18  ;;  %8674 = vmatprep.mubr.msk.f32.mxu1 %vm719_vm1, %v11617_v52  ;;  %v3635_v18 = vrot.slane %v11687_v32, 7 }
 0x2a5   : > { %8821 = vmatprep.mubr.msk.f32.mxu0 %vm719_vm1, %v11617_v52  ;;  %v3636_v52 = vrot.slane %v11819_v27, 7 }
 0x2a7   : > { %8675 = vmatmul.mubr.msk.f32.gmra.mxu1 %vm719_vm1, %v11635_v28 }
 0x2a8   : > { %8822 = vmatmul.mubr.msk.f32.gmra.mxu0 %vm719_vm1, %v11635_v28  ;;  %8677 = vmatprep.mubr.msk.f32.mxu1 %vm719_vm1, %v11638_v49  ;;  %v3653_v28 = vrot.slane %v11701_v47, 7 }
 0x2a9   : > { %8824 = vmatprep.mubr.msk.f32.mxu0 %vm719_vm1, %v11638_v49  ;;  %v11830_v49 = vmul.f32 0.0, %v3614_v23  ;;  %v13495_v23 = vld [vmem:[#allocation11_spill] sm:$0xff] }
 0x2aa   : > { %v3671_v0 = vsel %vm514_vm3, %v3635_v18, %v3653_v28 }
 0x2ab   : > { %8678 = vmatmul.mubr.msk.f32.gmra.mxu1 %vm719_vm1, %v11656_v3  ;;  %13483 = vst [vmem:[#allocation74_spill] sm:$0xff] %v11830_v49 }
 0x2ac   : > { %8825 = vmatmul.mubr.msk.f32.gmra.mxu0 %vm719_vm1, %v11656_v3  ;;  %8680 = vmatprep.mubr.msk.f32.mxu1 %vm719_vm1, %v11659_v35  ;;  %v3689_v3 = vsel %vm514_vm3, %v3653_v28, %v3635_v18 }
 0x2ad   : > { %8827 = vmatprep.mubr.msk.f32.mxu0 %vm719_vm1, %v11659_v35  ;;  %v3654_v35 = vrot.slane %v11830_v49, 7  ;;  %v3723_v16 = vmul.f32 %v13465_v20, %v3689_v3 }
 0x2af   : > { %8681 = vmatmul.mubr.msk.f32.gmra.mxu1 %vm719_vm1, %v11673_v9  ;;  %v3690_v25 = vsel %vm514_vm3, %v3654_v35, %v3636_v52  ;;  %v3672_v62 = vsel %vm514_vm3, %v3636_v52, %v3654_v35  ;;  %v13496_v35 = vld [vmem:[#allocation42_spill] sm:$0xff] }
 0x2b0   : > { %8828 = vmatmul.mubr.msk.f32.gmra.mxu0 %vm719_vm1, %v11673_v9  ;;  %8683 = vmatprep.mubr.msk.f32.mxu1 %vm719_vm1, %v11676_v48  ;;  %v3725_v41 = vmul.f32 %v13465_v20, %v3690_v25 }
 0x2b1   : > { %8830 = vmatprep.mubr.msk.f32.mxu0 %vm719_vm1, %v11676_v48 }
 0x2b3   : > { %8684 = vmatmul.mubr.msk.f32.gmra.mxu1 %vm719_vm1, %v11691_v40 }
 0x2b4   : > { %8831 = vmatmul.mubr.msk.f32.gmra.mxu0 %vm719_vm1, %v11691_v40  ;;  %8686 = vmatprep.mubr.msk.f32.mxu1 %vm719_vm1, %v3723_v16 }
 0x2b5   : > { %8833 = vmatprep.mubr.msk.f32.mxu0 %vm719_vm1, %v3723_v16  ;;  %v13497_v16 = vld [vmem:[#allocation68_spill] sm:$0xff] }
 0x2b7   : > { %8687 = vmatmul.mubr.msk.f32.gmra.mxu1 %vm719_vm1, %v3671_v0 }
 0x2b8   : > { %8834 = vmatmul.mubr.msk.f32.gmra.mxu0 %vm719_vm1, %v3671_v0  ;;  %8741 = vmatprep.mubr.msk.f32.mxu1 %vm719_vm1, %v10941_v2 }
 0x2b9   : > { %8836 = vmatprep.mubr.msk.f32.mxu0 %vm719_vm1, %v3725_v41 }
 0x2bb   : > { %v11863_v31 = vpop.f32.mrf.mxu1  ;;  %8742 = vmatmul.mubr.msk.f32.vlgmr.msra.gmra.mxu1 %vm719_vm1, %v10967_v55 }
 0x2bc   : > { %8837 = vmatmul.mubr.msk.f32.gmra.mxu0 %vm719_vm1, %v3672_v62  ;;  %8840 = vmatpush3.msk.msra.mxu1 %vm828_vm0, %v11706_v36 }
 0x2bd   : > { %8744 = vmatprep.mubr.msk.f32.mxu1 %vm719_vm1, %v10977_v12  ;;  %8891 = vmatprep.mubr.msk.f32.mxu0 %vm719_vm1, %v10977_v12  ;;  %v11874_v2 = vpop.f32.mrf.mxu1 }
 0x2bf   : > { %v11876_v20 = vpop.f32.mrf.mxu1  ;;  %v11878_v58 = vpop.f32.mrf.mxu0  ;;  %8745 = vmatmul.mubr.msk.f32.gmra.mxu1 %vm719_vm1, %v11004_v7 }
 0x2c0   : > { %8892 = vmatmul.mubr.msk.f32.vlgmr.msra.gmra.mxu0 %vm719_vm1, %v11004_v7  ;;  %8747 = vmatprep.mubr.msk.f32.mxu1 %vm719_vm1, %v11012_v46  ;;  %v13485_v7 = vld [vmem:[#allocation60_spill] sm:$0xff] }
 0x2c1   : > { %8894 = vmatprep.mubr.msk.f32.mxu0 %vm719_vm1, %v11012_v46  ;;  %v11888_v55 = vpop.f32.mrf.mxu1  ;;  %v11890_v12 = vpop.f32.mrf.mxu0 }
 0x2c3   : > { %v11892_v19 = vpop.f32.mrf.mxu1  ;;  %v11894_v34 = vpop.f32.mrf.mxu0  ;;  %8748 = vmatmul.mubr.msk.f32.gmra.mxu1 %vm719_vm1, %v13484_v14 }
 0x2c4   : > { %8895 = vmatmul.mubr.msk.f32.gmra.mxu0 %vm719_vm1, %v13484_v14  ;;  %8750 = vmatprep.mubr.msk.f32.mxu1 %vm719_vm1, %v13485_v7 }
 0x2c5   : > { %8897 = vmatprep.mubr.msk.f32.mxu0 %vm719_vm1, %v13485_v7  ;;  %v11904_v46 = vpop.f32.mrf.mxu1  ;;  %v11906_v29 = vpop.f32.mrf.mxu0 }
 0x2c7   : > { %v11908_v9 = vpop.f32.mrf.mxu1  ;;  %v11910_v48 = vpop.f32.mrf.mxu0  ;;  %8751 = vmatmul.mubr.msk.f32.gmra.mxu1 %vm719_vm1, %v13486_v8 }
 0x2c8   : > { %8898 = vmatmul.mubr.msk.f32.gmra.mxu0 %vm719_vm1, %v13486_v8  ;;  %8753 = vmatprep.mubr.msk.f32.mxu1 %vm719_vm1, %v13487_v24 }
 0x2c9   : > { %8900 = vmatprep.mubr.msk.f32.mxu0 %vm719_vm1, %v13487_v24  ;;  %v11920_v40 = vpop.f32.mrf.mxu1  ;;  %v11922_v36 = vpop.f32.mrf.mxu0 }
 0x2cb   : > { %v11924_v44 = vpop.f32.mrf.mxu1  ;;  %v11926_v54 = vpop.f32.mrf.mxu0  ;;  %8754 = vmatmul.mubr.msk.f32.gmra.mxu1 %vm719_vm1, %v13488_v50 }
 0x2cc   : > { %8901 = vmatmul.mubr.msk.f32.gmra.mxu0 %vm719_vm1, %v13488_v50  ;;  %8756 = vmatprep.mubr.msk.f32.mxu1 %vm719_vm1, %v13489_v6 }
 0x2cd   : > { %8903 = vmatprep.mubr.msk.f32.mxu0 %vm719_vm1, %v13489_v6  ;;  %v11936_v61 = vpop.f32.mrf.mxu1  ;;  %v11938_v10 = vpop.f32.mrf.mxu0 }
 0x2cf   : > { %v11940_v45 = vpop.f32.mrf.mxu1  ;;  %v11942_v15 = vpop.f32.mrf.mxu0  ;;  %8757 = vmatmul.mubr.msk.f32.gmra.mxu1 %vm719_vm1, %v13490_v38 }
 0x2d0   : > { %8904 = vmatmul.mubr.msk.f32.gmra.mxu0 %vm719_vm1, %v13490_v38  ;;  %8759 = vmatprep.mubr.msk.f32.mxu1 %vm719_vm1, %v13491_v13 }
 0x2d1   : > { %8906 = vmatprep.mubr.msk.f32.mxu0 %vm719_vm1, %v13491_v13  ;;  %v11952_v43 = vpop.f32.mrf.mxu1  ;;  %v11954_v59 = vpop.f32.mrf.mxu0  ;;  %v13499_v13 = vld [vmem:[#allocation70_spill] sm:$0xff] }
 0x2d3   : > { %v11956_v11 = vpop.f32.mrf.mxu1  ;;  %v11958_v30 = vpop.f32.mrf.mxu0  ;;  %8760 = vmatmul.mubr.msk.f32.gmra.mxu1 %vm719_vm1, %v13492_v57 }
 0x2d4   : > { %8907 = vmatmul.mubr.msk.f32.gmra.mxu0 %vm719_vm1, %v13492_v57  ;;  %8762 = vmatprep.mubr.msk.f32.mxu1 %vm719_vm1, %v13493_v60 }
 0x2d5   : > { %8909 = vmatprep.mubr.msk.f32.mxu0 %vm719_vm1, %v13493_v60  ;;  %v11968_v26 = vpop.f32.mrf.mxu1  ;;  %v11970_v22 = vpop.f32.mrf.mxu0 }
 0x2d7   : > { %v11972_v53 = vpop.f32.mrf.mxu1  ;;  %8763 = vmatmul.mubr.msk.f32.gmra.mxu1 %vm719_vm1, %v13494_v37 }
 0x2d8   : > { %v11974_v1 = vpop.f32.mrf.mxu0  ;;  %8910 = vmatmul.mubr.msk.f32.gmra.mxu0 %vm719_vm1, %v13494_v37  ;;  %8765 = vmatprep.mubr.msk.f32.mxu1 %vm719_vm1, %v13495_v23 }
 0x2d9   : > { %8912 = vmatprep.mubr.msk.f32.mxu0 %vm719_vm1, %v13495_v23  ;;  %v11984_v18 = vpop.f32.mrf.mxu1 }
 0x2da   : > { %v11986_v28 = vpop.f32.mrf.mxu0 }
 0x2db   : > { %v11988_v52 = vpop.f32.mrf.mxu1  ;;  %8766 = vmatmul.mubr.msk.f32.gmra.mxu1 %vm719_vm1, %v13496_v35 }
 0x2dc   : > { %v11990_v3 = vpop.f32.mrf.mxu0  ;;  %8913 = vmatmul.mubr.msk.f32.gmra.mxu0 %vm719_vm1, %v13496_v35  ;;  %8768 = vmatprep.mubr.msk.f32.mxu1 %vm719_vm1, %v13497_v16  ;;  %v13503_v35 = vld [vmem:[#allocation15_spill] sm:$0xff] }
 0x2dd   : > { %8915 = vmatprep.mubr.msk.f32.mxu0 %vm719_vm1, %v13497_v16  ;;  %v12000_v25 = vpop.f32.mrf.mxu1  ;;  %v13504_v16 = vld [vmem:[#allocation47_spill] sm:$0xff] }
 0x2de   : > { %v12002_v0 = vpop.f32.mrf.mxu0 }
 0x2df   : > { %v12004_v41 = vpop.f32.mrf.mxu1  ;;  %8769 = vmatmul.mubr.msk.f32.gmra.mxu1 %vm719_vm1, %v11264_v21 }
 0x2e0   : > { %v12006_v62 = vpop.f32.mrf.mxu0  ;;  %8916 = vmatmul.mubr.msk.f32.gmra.mxu0 %vm719_vm1, %v11264_v21  ;;  %8771 = vmatprep.mubr.msk.f32.mxu1 %vm719_vm1, %v11270_v33  ;;  %v13498_v21 = vld [vmem:[#allocation75_spill] sm:$0xff] }
 0x2e1   : > { %8918 = vmatprep.mubr.msk.f32.mxu0 %vm719_vm1, %v11270_v33  ;;  %v12016_v14 = vpop.f32.mrf.mxu1 }
 0x2e2   : > { %v12018_v7 = vpop.f32.mrf.mxu0 }
 0x2e3   : > { %v12020_v8 = vpop.f32.mrf.mxu1  ;;  %8772 = vmatmul.mubr.msk.f32.gmra.mxu1 %vm719_vm1, %v11291_v51 }
 0x2e4   : > { %v12022_v24 = vpop.f32.mrf.mxu0  ;;  %8919 = vmatmul.mubr.msk.f32.gmra.mxu0 %vm719_vm1, %v11291_v51  ;;  %8774 = vmatprep.mubr.msk.f32.mxu1 %vm719_vm1, %v13498_v21  ;;  %v13500_v51 = vld [vmem:[#allocation69_spill] sm:$0xff] }
 0x2e5   : > { %8921 = vmatprep.mubr.msk.f32.mxu0 %vm719_vm1, %v13498_v21  ;;  %v12032_v33 = vpop.f32.mrf.mxu1 }
 0x2e6   : > { %v12034_v50 = vpop.f32.mrf.mxu0 }
 0x2e7   : > { %v12036_v6 = vpop.f32.mrf.mxu1  ;;  %8775 = vmatmul.mubr.msk.f32.gmra.mxu1 %vm719_vm1, %v13499_v13 }
 0x2e8   : > { %v12038_v38 = vpop.f32.mrf.mxu0  ;;  %8922 = vmatmul.mubr.msk.f32.gmra.mxu0 %vm719_vm1, %v13499_v13  ;;  %8777 = vmatprep.mubr.msk.f32.mxu1 %vm719_vm1, %v13500_v51 }
 0x2e9   : > { %8924 = vmatprep.mubr.msk.f32.mxu0 %vm719_vm1, %v13500_v51  ;;  %v12048_v57 = vpop.f32.mrf.mxu1  ;;  %v3743_v51 = vrot.slane %v11687_v32, 1 }
 0x2ea   : > { %v12050_v60 = vpop.f32.mrf.mxu0 }
 0x2eb   : > { %v12052_v37 = vpop.f32.mrf.mxu1  ;;  %8778 = vmatmul.mubr.msk.f32.gmra.mxu1 %vm719_vm1, %v13503_v35 }
 0x2ec   : > { %13501 = vst [vmem:[#allocation73_spill] sm:$0xff] %v12052_v37  ;;  %v12054_v23 = vpop.f32.mrf.mxu0  ;;  %8925 = vmatmul.mubr.msk.f32.gmra.mxu0 %vm719_vm1, %v13503_v35  ;;  %8780 = vmatprep.mubr.msk.f32.mxu1 %vm719_vm1, %v13504_v16  ;;  %v13509_v37 = vld [vmem:[#allocation72_spill] sm:$0xff]  ;;  %v13510_v35 = vld [vmem:[#allocation71_spill] sm:$0xff] }
 0x2ed   : > { %13502 = vst [vmem:[#allocation14_spill] sm:$0xff] %v12054_v23  ;;  %8927 = vmatprep.mubr.msk.f32.mxu0 %vm719_vm1, %v13504_v16  ;;  %v12064_v21 = vpop.f32.mrf.mxu1  ;;  %v3761_v16 = vrot.slane %v11701_v47, 1  ;;  %v3762_v47 = vrot.slane %v11830_v49, 1 }
 0x2ee   : > { %13505 = vst [vmem:[#allocation19_spill] sm:$0xff] %v12064_v21  ;;  %v12066_v13 = vpop.f32.mrf.mxu0 }
 0x2ef   : > { %13506 = vst [vmem:[#allocation52_spill] sm:$0xff] %v12066_v13  ;;  %v12069_v17 = vpop.f32.mrf.mxu1  ;;  %8781 = vmatmul.mubr.msk.f32.gmra.mxu1 %vm719_vm1, %v13509_v37 }
 0x2f0   : > { %13507 = vst [vmem:[#allocation49_spill] sm:$0xff] %v12069_v17  ;;  %v12071_v42 = vpop.f32.mrf.mxu0  ;;  %8928 = vmatmul.mubr.msk.f32.gmra.mxu0 %vm719_vm1, %v13509_v37  ;;  %8783 = vmatprep.mubr.msk.f32.mxu1 %vm719_vm1, %v13510_v35  ;;  %v3744_v17 = vrot.slane %v11819_v27, 1 }
 0x2f1   : > { %13508 = vst [vmem:[#allocation43_spill] sm:$0xff] %v12071_v42  ;;  %8930 = vmatprep.mubr.msk.f32.mxu0 %vm719_vm1, %v13510_v35  ;;  %v12082_v21 = vpop.f32.mrf.mxu1  ;;  %v3797_v42 = vsel %vm635_vm4, %v3761_v16, %v3743_v51  ;;  %v3779_v35 = vsel %vm635_vm4, %v3743_v51, %v3761_v16  ;;  %v13520_v16 = vld [vmem:[#allocation59_spill] sm:$0xff] }
 0x2f2   : > { %13511 = vst [vmem:[#allocation77_spill] sm:$0xff] %v12082_v21  ;;  %v12084_v32 = vpop.f32.mrf.mxu0  ;;  %v3780_v51 = vsel %vm635_vm4, %v3744_v17, %v3762_v47 }
 0x2f3   : > { %13512 = vst [vmem:[#allocation16_spill] sm:$0xff] %v12084_v32  ;;  %v12089_v13 = vpop.f32.mrf.mxu1  ;;  %8784 = vmatmul.mubr.msk.f32.gmra.mxu1 %vm719_vm1, %v13515_v63  ;;  %v3798_v32 = vsel %vm635_vm4, %v3762_v47, %v3744_v17  ;;  %v13523_v17 = vld [vmem:[#allocation25_spill] sm:$0xff] }
 0x2f4   : > { %13513 = vst [vmem:[#allocation23_spill] sm:$0xff] %v12089_v13  ;;  %v12091_v37 = vpop.f32.mrf.mxu0  ;;  %8931 = vmatmul.mubr.msk.f32.gmra.mxu0 %vm719_vm1, %v13515_v63  ;;  %8786 = vmatprep.mubr.msk.f32.mxu1 %vm719_vm1, %v3779_v35 }
 0x2f5   : > { %13514 = vst [vmem:[#allocation54_spill] sm:$0xff] %v12091_v37  ;;  %8933 = vmatprep.mubr.msk.f32.mxu0 %vm719_vm1, %v3779_v35  ;;  %v12102_v27 = vpop.f32.mrf.mxu1  ;;  %v13517_v37 = vld [vmem:[#allocation44_spill] sm:$0xff] }
 0x2f6   : > { %13516 = vst [vmem:[#allocation51_spill] sm:$0xff] %v12102_v27  ;;  %v12104_v13 = vpop.f32.mrf.mxu0  ;;  %v3832_v21 = vmul.f32 %v13517_v37, %v3797_v42  ;;  %v13522_v27 = vld [vmem:[#allocation79_spill] sm:$0xff] }
 0x2f7   : > { %v12109_v23 = vpop.f32.mrf.mxu1 }
 0x2f8   : > { %13518 = vst [vmem:[#allocation78_spill] sm:$0xff] %v12109_v23  ;;  %v12111_v63 = vpop.f32.mrf.mxu0  ;;  %8787 = vmatmul.mubr.msk.f32.gmra.mxu1 %vm719_vm1, %v3832_v21  ;;  %8934 = vmatmul.mubr.msk.f32.gmra.mxu0 %vm719_vm1, %v3832_v21  ;;  %v3834_v23 = vmul.f32 %v13517_v37, %v3798_v32 }
 0x2f9   : > { %13519 = vst [vmem:[#allocation5_spill] sm:$0xff] %v12111_v63  ;;  %8841 = vmatprep.mubr.msk.f32.mxu1 %vm719_vm1, %v13520_v16  ;;  %8936 = vmatprep.mubr.msk.f32.mxu0 %vm719_vm1, %v3780_v51  ;;  %v12120_v42 = vpop.f32.mrf.mxu1 }
 0x2fa   : > { %v12122_v35 = vpop.f32.mrf.mxu0 }
 0x2fb   : > { %v8543_v49 = vpop.f32.mrf.mxu1 }
 0x2fc   : > { %v12125_v63 = vpop.f32.mrf.mxu0  ;;  %8842 = vmatmul.mubr.msk.f32.vlgmr.msra.gmra.mxu1 %vm719_vm1, %v13522_v27  ;;  %8937 = vmatmul.mubr.msk.f32.gmra.mxu0 %vm719_vm1, %v3834_v23  ;;  %v4333_v4 = vadd.f32 %v8543_v49, %v11863_v31  ;;  %v13525_v49 = vld [vmem:[#allocation32_spill] sm:$0xff] }
 0x2fd   : > { %13521 = vst [vmem:[#allocation56_spill] sm:$0xff] %v12125_v63  ;;  %8844 = vmatprep.mubr.msk.f32.mxu1 %vm719_vm1, %v13523_v17  ;;  %v4327_v47 = vpop.f32.mrf.mxu1  ;;  %v13524_v63 = vld [vmem:[#allocation80_spill] sm:$0xff] }
 0x2fe   : > { %v12133_v21 = vpop.f32.mrf.mxu0  ;;  %v4328_v51 = vadd.f32 %v4327_v47, %v11874_v2  ;;  %v12137_v32 = vadd.f32 %v11878_v58, %v4333_v4 }
 0x2ff   : > { %v8546_v37 = vpop.f32.mrf.mxu1 }
 0x300   : > { %v12139_v16 = vpop.f32.mrf.mxu0  ;;  %8845 = vmatmul.mubr.msk.f32.gmra.mxu1 %vm719_vm1, %v13524_v63  ;;  %v4343_v27 = vadd.f32 %v8546_v37, %v11876_v20  ;;  %v12147_v31 = vadd.f32 %v11890_v12, %v4328_v51  ;;  %v13526_v63 = vld [vmem:[#allocation33_spill] sm:$0xff] }
 0x301   : > { %8847 = vmatprep.mubr.msk.f32.mxu1 %vm719_vm1, %v13525_v49  ;;  %v4337_v23 = vpop.f32.mrf.mxu1  ;;  %v13527_v37 = vld [vmem:[#allocation61_spill] sm:$0xff] }
 0x302   : > { %v12149_v17 = vpop.f32.mrf.mxu0  ;;  %v4338_v2 = vadd.f32 %v4337_v23, %v11888_v55  ;;  %v12153_v58 = vadd.f32 %v11894_v34, %v4343_v27 }
 0x303   : > { %v8549_v4 = vpop.f32.mrf.mxu1 }
 0x304   : > { %v12155_v47 = vpop.f32.mrf.mxu0  ;;  %8848 = vmatmul.mubr.msk.f32.gmra.mxu1 %vm719_vm1, %v13526_v63  ;;  %v4353_v20 = vadd.f32 %v8549_v4, %v11892_v19  ;;  %v12163_v12 = vadd.f32 %v11906_v29, %v4338_v2  ;;  %v13528_v63 = vld [vmem:[#allocation62_spill] sm:$0xff]  ;;  %v13529_v4 = vld [vmem:[#allocation36_spill] sm:$0xff] }
 0x305   : > { %8850 = vmatprep.mubr.msk.f32.mxu1 %vm719_vm1, %v13527_v37  ;;  %v4347_v51 = vpop.f32.mrf.mxu1 }
 0x306   : > { %v12165_v49 = vpop.f32.mrf.mxu0  ;;  %v4348_v55 = vadd.f32 %v4347_v51, %v11904_v46  ;;  %v12169_v34 = vadd.f32 %v11910_v48, %v4353_v20 }
 0x307   : > { %v8552_v27 = vpop.f32.mrf.mxu1 }
 0x308   : > { %v12171_v23 = vpop.f32.mrf.mxu0  ;;  %8851 = vmatmul.mubr.msk.f32.gmra.mxu1 %vm719_vm1, %v13528_v63  ;;  %v4363_v19 = vadd.f32 %v8552_v27, %v11908_v9  ;;  %v12179_v29 = vadd.f32 %v11922_v36, %v4348_v55  ;;  %v13530_v63 = vld [vmem:[#allocation26_spill] sm:$0xff] }
 0x309   : > { %8853 = vmatprep.mubr.msk.f32.mxu1 %vm719_vm1, %v13529_v4  ;;  %v4357_v2 = vpop.f32.mrf.mxu1  ;;  %v13531_v27 = vld [vmem:[#allocation30_spill] sm:$0xff] }
 0x30a   : > { %v12181_v37 = vpop.f32.mrf.mxu0  ;;  %v4358_v46 = vadd.f32 %v4357_v2, %v11920_v40  ;;  %v12185_v48 = vadd.f32 %v11926_v54, %v4363_v19 }
 0x30b   : > { %v8555_v20 = vpop.f32.mrf.mxu1 }
 0x30c   : > { %v12187_v51 = vpop.f32.mrf.mxu0  ;;  %8854 = vmatmul.mubr.msk.f32.gmra.mxu1 %vm719_vm1, %v13530_v63  ;;  %v4373_v9 = vadd.f32 %v8555_v20, %v11924_v44  ;;  %v12195_v36 = vadd.f32 %v11938_v10, %v4358_v46  ;;  %v13532_v63 = vld [vmem:[#allocation64_spill] sm:$0xff]  ;;  %v13533_v20 = vld [vmem:[#allocation66_spill] sm:$0xff] }
 0x30d   : > { %8856 = vmatprep.mubr.msk.f32.mxu1 %vm719_vm1, %v13531_v27  ;;  %v4367_v55 = vpop.f32.mrf.mxu1 }
 0x30e   : > { %v12197_v4 = vpop.f32.mrf.mxu0  ;;  %v4368_v40 = vadd.f32 %v4367_v55, %v11936_v61  ;;  %v12201_v54 = vadd.f32 %v11942_v15, %v4373_v9 }
 0x30f   : > { %v8558_v19 = vpop.f32.mrf.mxu1 }
 0x310   : > { %v12203_v2 = vpop.f32.mrf.mxu0  ;;  %8857 = vmatmul.mubr.msk.f32.gmra.mxu1 %vm719_vm1, %v13532_v63  ;;  %v4383_v44 = vadd.f32 %v8558_v19, %v11940_v45  ;;  %v12211_v10 = vadd.f32 %v11954_v59, %v4368_v40  ;;  %v13534_v63 = vld [vmem:[#allocation40_spill] sm:$0xff]  ;;  %v13535_v19 = vld [vmem:[#allocation45_spill] sm:$0xff] }
 0x311   : > { %8859 = vmatprep.mubr.msk.f32.mxu1 %vm719_vm1, %v13533_v20  ;;  %v4377_v46 = vpop.f32.mrf.mxu1 }
 0x312   : > { %v12213_v27 = vpop.f32.mrf.mxu0  ;;  %v4378_v61 = vadd.f32 %v4377_v46, %v11952_v43  ;;  %v12217_v15 = vadd.f32 %v11958_v30, %v4383_v44 }
 0x313   : > { %v8561_v9 = vpop.f32.mrf.mxu1 }
 0x314   : > { %v12219_v55 = vpop.f32.mrf.mxu0  ;;  %8860 = vmatmul.mubr.msk.f32.gmra.mxu1 %vm719_vm1, %v13534_v63  ;;  %v4393_v45 = vadd.f32 %v8561_v9, %v11956_v11  ;;  %v12227_v59 = vadd.f32 %v11970_v22, %v4378_v61  ;;  %v13536_v63 = vld [vmem:[#allocation34_spill] sm:$0xff] }
 0x315   : > { %8862 = vmatprep.mubr.msk.f32.mxu1 %vm719_vm1, %v13535_v19  ;;  %v4387_v40 = vpop.f32.mrf.mxu1  ;;  %v13537_v9 = vld [vmem:[#allocation38_spill] sm:$0xff] }
 0x316   : > { %v12229_v20 = vpop.f32.mrf.mxu0  ;;  %v4388_v43 = vadd.f32 %v4387_v40, %v11968_v26  ;;  %v12233_v30 = vadd.f32 %v11974_v1, %v4393_v45 }
 0x317   : > { %v8564_v44 = vpop.f32.mrf.mxu1 }
 0x318   : > { %v12235_v46 = vpop.f32.mrf.mxu0  ;;  %8863 = vmatmul.mubr.msk.f32.gmra.mxu1 %vm719_vm1, %v13536_v63  ;;  %v4403_v11 = vadd.f32 %v8564_v44, %v11972_v53  ;;  %v12243_v22 = vadd.f32 %v11986_v28, %v4388_v43  ;;  %v13538_v63 = vld [vmem:[#allocation67_spill] sm:$0xff] }
 0x319   : > { %8865 = vmatprep.mubr.msk.f32.mxu1 %vm719_vm1, %v13537_v9  ;;  %v4397_v61 = vpop.f32.mrf.mxu1  ;;  %v13539_v44 = vld [vmem:[#allocation3_spill] sm:$0xff] }
 0x31a   : > { %v12245_v19 = vpop.f32.mrf.mxu0  ;;  %v4398_v26 = vadd.f32 %v4397_v61, %v11984_v18  ;;  %v12249_v1 = vadd.f32 %v11990_v3, %v4403_v11 }
 0x31b   : > { %v8567_v45 = vpop.f32.mrf.mxu1 }
 0x31c   : > { %v12251_v40 = vpop.f32.mrf.mxu0  ;;  %8866 = vmatmul.mubr.msk.f32.gmra.mxu1 %vm719_vm1, %v13538_v63  ;;  %v4413_v53 = vadd.f32 %v8567_v45, %v11988_v52  ;;  %v12259_v28 = vadd.f32 %v12002_v0, %v4398_v26  ;;  %v13540_v63 = vld [vmem:[#allocation41_spill] sm:$0xff] }
 0x31d   : > { %8868 = vmatprep.mubr.msk.f32.mxu1 %vm719_vm1, %v13539_v44  ;;  %v4407_v43 = vpop.f32.mrf.mxu1  ;;  %v13541_v45 = vld [vmem:[#allocation13_spill] sm:$0xff] }
 0x31e   : > { %v12261_v9 = vpop.f32.mrf.mxu0  ;;  %v4408_v18 = vadd.f32 %v4407_v43, %v12000_v25  ;;  %v12265_v3 = vadd.f32 %v12006_v62, %v4413_v53 }
 0x31f   : > { %v8570_v11 = vpop.f32.mrf.mxu1 }
 0x320   : > { %v12267_v61 = vpop.f32.mrf.mxu0  ;;  %8869 = vmatmul.mubr.msk.f32.gmra.mxu1 %vm719_vm1, %v13540_v63  ;;  %v4423_v52 = vadd.f32 %v8570_v11, %v12004_v41  ;;  %v12275_v0 = vadd.f32 %v12018_v7, %v4408_v18  ;;  %v13542_v63 = vld [vmem:[#allocation8_spill] sm:$0xff] }
 0x321   : > { %8871 = vmatprep.mubr.msk.f32.mxu1 %vm719_vm1, %v13541_v45  ;;  %v4417_v26 = vpop.f32.mrf.mxu1 }
 0x322   : > { %v12277_v44 = vpop.f32.mrf.mxu0  ;;  %v4418_v25 = vadd.f32 %v4417_v26, %v12016_v14  ;;  %v12281_v62 = vadd.f32 %v12022_v24, %v4423_v52 }
 0x323   : > { %v8573_v53 = vpop.f32.mrf.mxu1 }
 0x324   : > { %v12283_v43 = vpop.f32.mrf.mxu0  ;;  %8872 = vmatmul.mubr.msk.f32.gmra.mxu1 %vm719_vm1, %v13542_v63  ;;  %v4433_v41 = vadd.f32 %v8573_v53, %v12020_v8  ;;  %v12291_v7 = vadd.f32 %v12034_v50, %v4418_v25 }
 0x325   : > { %8874 = vmatprep.mubr.msk.f32.mxu1 %vm719_vm1, %v11293_v39  ;;  %v4427_v18 = vpop.f32.mrf.mxu1 }
 0x326   : > { %v12293_v11 = vpop.f32.mrf.mxu0  ;;  %v4428_v14 = vadd.f32 %v4427_v18, %v12032_v33  ;;  %v12297_v24 = vadd.f32 %v12038_v38, %v4433_v41  ;;  %v13544_v38 = vld [vmem:[#allocation14_spill] sm:$0xff] }
 0x327   : > { %v8576_v52 = vpop.f32.mrf.mxu1 }
 0x328   : > { %v12299_v45 = vpop.f32.mrf.mxu0  ;;  %8875 = vmatmul.mubr.msk.f32.gmra.mxu1 %vm719_vm1, %v11281_v56  ;;  %v4443_v8 = vadd.f32 %v8576_v52, %v12036_v6  ;;  %v12307_v39 = vadd.f32 %v12050_v60, %v4428_v14  ;;  %v13546_v56 = vld [vmem:[#allocation46_spill] sm:$0xff]  ;;  %v13547_v6 = vld [vmem:[#allocation73_spill] sm:$0xff]  ;;  %v13549_v60 = vld [vmem:[#allocation52_spill] sm:$0xff] }
 0x329   : > { %8877 = vmatprep.mubr.msk.f32.mxu1 %vm719_vm1, %v11318_v5  ;;  %v4437_v50 = vpop.f32.mrf.mxu1  ;;  %v13548_v5 = vld [vmem:[#allocation76_spill] sm:$0xff] }
 0x32a   : > { %v12309_v26 = vpop.f32.mrf.mxu0  ;;  %v4438_v33 = vadd.f32 %v4437_v50, %v12048_v57  ;;  %v12313_v25 = vadd.f32 %v13544_v38, %v4443_v8  ;;  %v13552_v57 = vld [vmem:[#allocation19_spill] sm:$0xff] }
 0x32b   : > { %13543 = vst [vmem:[#allocation6_spill] sm:$0xff] %v12309_v26  ;;  %v8579_v53 = vpop.f32.mrf.mxu1  ;;  %v13553_v50 = vld [vmem:[#allocation43_spill] sm:$0xff] }
 0x32c   : > { %v12315_v63 = vpop.f32.mrf.mxu0  ;;  %8878 = vmatmul.mubr.msk.f32.gmra.mxu1 %vm719_vm1, %v13546_v56  ;;  %v4453_v41 = vadd.f32 %v8579_v53, %v13547_v6  ;;  %v12323_v18 = vadd.f32 %v13549_v60, %v4438_v33  ;;  %v13556_v56 = vld [vmem:[#allocation10_spill] sm:$0xff]  ;;  %v13557_v53 = vld [vmem:[#allocation49_spill] sm:$0xff]  ;;  %v13559_v33 = vld [vmem:[#allocation16_spill] sm:$0xff] }
 0x32d   : > { %13545 = vst [vmem:[#allocation7_spill] sm:$0xff] %v12315_v63  ;;  %8880 = vmatprep.mubr.msk.f32.mxu1 %vm719_vm1, %v13548_v5  ;;  %v4447_v14 = vpop.f32.mrf.mxu1  ;;  %v13558_v5 = vld [vmem:[#allocation17_spill] sm:$0xff] }
 0x32e   : > { %13550 = vst [vmem:[#allocation21_spill] sm:$0xff] %v12323_v18  ;;  %v12325_v52 = vpop.f32.mrf.mxu0  ;;  %v4448_v8 = vadd.f32 %v4447_v14, %v13552_v57  ;;  %v12329_v38 = vadd.f32 %v13553_v50, %v4453_v41  ;;  %v13561_v14 = vld [vmem:[#allocation77_spill] sm:$0xff]  ;;  %v13562_v57 = vld [vmem:[#allocation54_spill] sm:$0xff] }
 0x32f   : > { %13551 = vst [vmem:[#allocation18_spill] sm:$0xff] %v12325_v52  ;;  %v8582_v63 = vpop.f32.mrf.mxu1 }
 0x330   : > { %13554 = vst [vmem:[#allocation24_spill] sm:$0xff] %v12329_v38  ;;  %v12331_v26 = vpop.f32.mrf.mxu0  ;;  %8881 = vmatmul.mubr.msk.f32.gmra.mxu1 %vm719_vm1, %v13556_v56  ;;  %v4463_v6 = vadd.f32 %v8582_v63, %v13557_v53  ;;  %v12339_v60 = vadd.f32 %v13559_v33, %v4448_v8  ;;  %v13565_v56 = vld [vmem:[#allocation50_spill] sm:$0xff]  ;;  %v13566_v63 = vld [vmem:[#allocation23_spill] sm:$0xff] }
 0x331   : > { %13555 = vst [vmem:[#allocation53_spill] sm:$0xff] %v12331_v26  ;;  %8883 = vmatprep.mubr.msk.f32.mxu1 %vm719_vm1, %v13558_v5  ;;  %v4457_v52 = vpop.f32.mrf.mxu1  ;;  %v13567_v5 = vld [vmem:[#allocation48_spill] sm:$0xff] }
 0x332   : > { %v12341_v18 = vpop.f32.mrf.mxu0  ;;  %v4458_v41 = vadd.f32 %v4457_v52, %v13561_v14  ;;  %v12345_v50 = vadd.f32 %v13562_v57, %v4463_v6  ;;  %v13569_v52 = vld [vmem:[#allocation51_spill] sm:$0xff]  ;;  %v13570_v14 = vld [vmem:[#allocation5_spill] sm:$0xff] }
 0x333   : > { %13560 = vst [vmem:[#allocation57_spill] sm:$0xff] %v12341_v18  ;;  %v8585_v26 = vpop.f32.mrf.mxu1 }
 0x334   : > { %13563 = vst [vmem:[#allocation4_spill] sm:$0xff] %v12345_v50  ;;  %v12347_v38 = vpop.f32.mrf.mxu0  ;;  %8884 = vmatmul.mubr.msk.f32.gmra.mxu1 %vm719_vm1, %v13565_v56  ;;  %v4473_v53 = vadd.f32 %v8585_v26, %v13566_v63  ;;  %v12355_v8 = vadd.f32 %v12104_v13, %v4458_v41  ;;  %v13572_v56 = vld [vmem:[#allocation74_spill] sm:$0xff] }
 0x335   : > { %13564 = vst [vmem:[#allocation22_spill] sm:$0xff] %v12347_v38  ;;  %8886 = vmatprep.mubr.msk.f32.mxu1 %vm719_vm1, %v13567_v5  ;;  %v4467_v33 = vpop.f32.mrf.mxu1  ;;  %v13573_v26 = vld [vmem:[#allocation78_spill] sm:$0xff] }
 0x336   : > { %v12357_v18 = vpop.f32.mrf.mxu0  ;;  %v4468_v6 = vadd.f32 %v4467_v33, %v13569_v52  ;;  %v12361_v57 = vadd.f32 %v13570_v14, %v4473_v53  ;;  %v13574_v33 = vld [vmem:[#allocation56_spill] sm:$0xff] }
 0x337   : > { %13568 = vst [vmem:[#allocation20_spill] sm:$0xff] %v12357_v18  ;;  %v8588_v38 = vpop.f32.mrf.mxu1 }
 0x338   : > { %v12363_v50 = vpop.f32.mrf.mxu0  ;;  %8887 = vmatmul.mubr.msk.f32.gmra.mxu1 %vm719_vm1, %v13572_v56  ;;  %v4483_v63 = vadd.f32 %v8588_v38, %v13573_v26  ;;  %v12369_v5 = vadd.f32 %v12122_v35, %v4468_v6 }
 0x339   : > { %13571 = vst [vmem:[#allocation27_spill] sm:$0xff] %v12363_v50  ;;  %v4477_v13 = vpop.f32.mrf.mxu1 }
 0x33a   : > { %v12371_v41 = vpop.f32.mrf.mxu0  ;;  %v4478_v18 = vadd.f32 %v4477_v13, %v12120_v42  ;;  %v12375_v52 = vadd.f32 %v13574_v33, %v4483_v63 }
 0x33b   : > { %v8643_v53 = vpop.f32.mrf.mxu1 }
 0x33c   : > { %v12377_v14 = vpop.f32.mrf.mxu0  ;;  %v5081_v50 = vadd.f32 %v8643_v53, %v12137_v32  ;;  %v12381_v56 = vadd.f32 %v12133_v21, %v4478_v18 }
 0x33d   : > { %v4921_v38 = vpop.f32.mrf.mxu1 }
 0x33e   : > { %v12383_v26 = vpop.f32.mrf.mxu0  ;;  %v5080_v35 = vadd.f32 %v4921_v38, %v12147_v31  ;;  %v12387_v6 = vadd.f32 %v12139_v16, %v5081_v50 }
 0x33f   : > { %v8646_v42 = vpop.f32.mrf.mxu1 }
 0x340   : > { %v12389_v13 = vpop.f32.mrf.mxu0  ;;  %v5083_v63 = vadd.f32 %v8646_v42, %v12153_v58  ;;  %v12393_v33 = vadd.f32 %v12149_v17, %v5080_v35 }
 0x341   : > { %v4931_v32 = vpop.f32.mrf.mxu1 }
 0x342   : > { %v12395_v53 = vpop.f32.mrf.mxu0  ;;  %v5082_v21 = vadd.f32 %v4931_v32, %v12163_v12  ;;  %v12399_v18 = vadd.f32 %v12155_v47, %v5083_v63 }
 0x343   : > { %v8649_v31 = vpop.f32.mrf.mxu1 }
 0x344   : > { %v12401_v38 = vpop.f32.mrf.mxu0  ;;  %v5085_v16 = vadd.f32 %v8649_v31, %v12169_v34  ;;  %v12405_v50 = vadd.f32 %v12165_v49, %v5082_v21 }
 0x345   : > { %v4941_v58 = vpop.f32.mrf.mxu1 }
 0x346   : > { %v12407_v42 = vpop.f32.mrf.mxu0  ;;  %v5084_v17 = vadd.f32 %v4941_v58, %v12179_v29  ;;  %v12411_v35 = vadd.f32 %v12171_v23, %v5085_v16 }
 0x347   : > { %v8652_v12 = vpop.f32.mrf.mxu1 }
 0x348   : > { %v12413_v32 = vpop.f32.mrf.mxu0  ;;  %v5087_v47 = vadd.f32 %v8652_v12, %v12185_v48  ;;  %v12417_v63 = vadd.f32 %v12181_v37, %v5084_v17 }
 0x349   : > { %v4951_v34 = vpop.f32.mrf.mxu1 }
 0x34a   : > { %v12419_v31 = vpop.f32.mrf.mxu0  ;;  %v5086_v49 = vadd.f32 %v4951_v34, %v12195_v36  ;;  %v12423_v21 = vadd.f32 %v12187_v51, %v5087_v47 }
 0x34b   : > { %v8655_v29 = vpop.f32.mrf.mxu1 }
 0x34c   : > { %v12425_v58 = vpop.f32.mrf.mxu0  ;;  %v5089_v23 = vadd.f32 %v8655_v29, %v12201_v54  ;;  %v12429_v16 = vadd.f32 %v12197_v4, %v5086_v49 }
 0x34d   : > { %v4961_v48 = vpop.f32.mrf.mxu1 }
 0x34e   : > { %v12431_v12 = vpop.f32.mrf.mxu0  ;;  %v5088_v37 = vadd.f32 %v4961_v48, %v12211_v10  ;;  %v12435_v17 = vadd.f32 %v12203_v2, %v5089_v23 }
 0x34f   : > { %v8658_v36 = vpop.f32.mrf.mxu1 }
 0x350   : > { %v12437_v34 = vpop.f32.mrf.mxu0  ;;  %v5091_v51 = vadd.f32 %v8658_v36, %v12217_v15  ;;  %v12441_v47 = vadd.f32 %v12213_v27, %v5088_v37 }
 0x351   : > { %v4971_v54 = vpop.f32.mrf.mxu1 }
 0x352   : > { %v12443_v29 = vpop.f32.mrf.mxu0  ;;  %v5090_v4 = vadd.f32 %v4971_v54, %v12227_v59  ;;  %v12447_v49 = vadd.f32 %v12219_v55, %v5091_v51 }
 0x353   : > { %v8661_v10 = vpop.f32.mrf.mxu1 }
 0x354   : > { %v12449_v48 = vpop.f32.mrf.mxu0  ;;  %v5093_v2 = vadd.f32 %v8661_v10, %v12233_v30  ;;  %v12453_v23 = vadd.f32 %v12229_v20, %v5090_v4 }
 0x355   : > { %v4981_v15 = vpop.f32.mrf.mxu1 }
 0x356   : > { %v12455_v36 = vpop.f32.mrf.mxu0  ;;  %v5092_v27 = vadd.f32 %v4981_v15, %v12243_v22  ;;  %v12459_v37 = vadd.f32 %v12235_v46, %v5093_v2 }
 0x357   : > { %v8664_v59 = vpop.f32.mrf.mxu1 }
 0x358   : > { %v12461_v54 = vpop.f32.mrf.mxu0  ;;  %v5095_v55 = vadd.f32 %v8664_v59, %v12249_v1  ;;  %v12465_v51 = vadd.f32 %v12245_v19, %v5092_v27 }
 0x359   : > { %v4991_v30 = vpop.f32.mrf.mxu1 }
 0x35a   : > { %v12467_v10 = vpop.f32.mrf.mxu0  ;;  %v5094_v20 = vadd.f32 %v4991_v30, %v12259_v28  ;;  %v12471_v4 = vadd.f32 %v12251_v40, %v5095_v55 }
 0x35b   : > { %13575 = vst [vmem:[#allocation55_spill] sm:$0xff] %v12467_v10  ;;  %v8667_v22 = vpop.f32.mrf.mxu1 }
 0x35c   : > { %v12473_v15 = vpop.f32.mrf.mxu0  ;;  %v5097_v46 = vadd.f32 %v8667_v22, %v12265_v3  ;;  %v12477_v2 = vadd.f32 %v12261_v9, %v5094_v20 }
 0x35d   : > { %13576 = vst [vmem:[#allocation58_spill] sm:$0xff] %v12473_v15  ;;  %v5001_v1 = vpop.f32.mrf.mxu1 }
 0x35e   : > { %13577 = vst [vmem:[#allocation28_spill] sm:$0xff] %v12477_v2  ;;  %v12479_v59 = vpop.f32.mrf.mxu0  ;;  %v5096_v19 = vadd.f32 %v5001_v1, %v12275_v0  ;;  %v12483_v27 = vadd.f32 %v12267_v61, %v5097_v46 }
 0x35f   : > { %13578 = vst [vmem:[#allocation60_spill] sm:$0xff] %v12479_v59  ;;  %v8670_v28 = vpop.f32.mrf.mxu1 }
 0x360   : > { %13579 = vst [vmem:[#allocation37_spill] sm:$0xff] %v12483_v27  ;;  %v12485_v30 = vpop.f32.mrf.mxu0  ;;  %v5099_v40 = vadd.f32 %v8670_v28, %v12281_v62  ;;  %v12489_v55 = vadd.f32 %v12277_v44, %v5096_v19 }
 0x361   : > { %13580 = vst [vmem:[#allocation31_spill] sm:$0xff] %v12485_v30  ;;  %v5011_v3 = vpop.f32.mrf.mxu1 }
 0x362   : > { %13581 = vst [vmem:[#allocation63_spill] sm:$0xff] %v12489_v55  ;;  %v12491_v22 = vpop.f32.mrf.mxu0  ;;  %v5098_v9 = vadd.f32 %v5011_v3, %v12291_v7  ;;  %v12495_v20 = vadd.f32 %v12283_v43, %v5099_v40  ;;  %v13589_v40 = vld [vmem:[#allocation6_spill] sm:$0xff] }
 0x363   : > { %13582 = vst [vmem:[#allocation2_spill] sm:$0xff] %v12491_v22  ;;  %v8673_v0 = vpop.f32.mrf.mxu1  ;;  %v13593_v22 = vld [vmem:[#allocation7_spill] sm:$0xff] }
 0x364   : > { %13583 = vst [vmem:[#allocation35_spill] sm:$0xff] %v12495_v20  ;;  %v12497_v1 = vpop.f32.mrf.mxu0  ;;  %v5101_v61 = vadd.f32 %v8673_v0, %v12297_v24  ;;  %v12501_v46 = vadd.f32 %v12293_v11, %v5098_v9  ;;  %v13592_v11 = vld [vmem:[#allocation21_spill] sm:$0xff] }
 0x365   : > { %13584 = vst [vmem:[#allocation65_spill] sm:$0xff] %v12497_v1  ;;  %v5021_v62 = vpop.f32.mrf.mxu1 }
 0x366   : > { %13585 = vst [vmem:[#allocation9_spill] sm:$0xff] %v12501_v46  ;;  %v12503_v28 = vpop.f32.mrf.mxu0  ;;  %v5100_v44 = vadd.f32 %v5021_v62, %v12307_v39  ;;  %v12507_v19 = vadd.f32 %v12299_v45, %v5101_v61  ;;  %v13596_v45 = vld [vmem:[#allocation24_spill] sm:$0xff] }
 0x367   : > { %13586 = vst [vmem:[#allocation39_spill] sm:$0xff] %v12503_v28  ;;  %v8676_v7 = vpop.f32.mrf.mxu1 }
 0x368   : > { %13587 = vst [vmem:[#allocation29_spill] sm:$0xff] %v12507_v19  ;;  %v12509_v3 = vpop.f32.mrf.mxu0  ;;  %v5103_v43 = vadd.f32 %v8676_v7, %v12313_v25  ;;  %v12513_v1 = vadd.f32 %v13589_v40, %v5100_v44  ;;  %v13597_v19 = vld [vmem:[#allocation18_spill] sm:$0xff]  ;;  %v13600_v40 = vld [vmem:[#allocation53_spill] sm:$0xff] }
 0x369   : > { %13588 = vst [vmem:[#allocation11_spill] sm:$0xff] %v12509_v3  ;;  %v5031_v24 = vpop.f32.mrf.mxu1 }
 0x36a   : > { %13590 = vst [vmem:[#allocation42_spill] sm:$0xff] %v12513_v1  ;;  %v12515_v0 = vpop.f32.mrf.mxu0  ;;  %v5102_v9 = vadd.f32 %v5031_v24, %v13592_v11  ;;  %v12519_v28 = vadd.f32 %v13593_v22, %v5103_v43  ;;  %v13603_v22 = vld [vmem:[#allocation4_spill] sm:$0xff] }
 0x36b   : > { %13591 = vst [vmem:[#allocation68_spill] sm:$0xff] %v12515_v0  ;;  %v8679_v39 = vpop.f32.mrf.mxu1 }
 0x36c   : > { %13594 = vst [vmem:[#allocation75_spill] sm:$0xff] %v12519_v28  ;;  %v12521_v62 = vpop.f32.mrf.mxu0  ;;  %v5105_v61 = vadd.f32 %v8679_v39, %v13596_v45  ;;  %v12525_v3 = vadd.f32 %v13597_v19, %v5102_v9  ;;  %v13604_v28 = vld [vmem:[#allocation57_spill] sm:$0xff]  ;;  %v13607_v9 = vld [vmem:[#allocation22_spill] sm:$0xff] }
 0x36d   : > { %13595 = vst [vmem:[#allocation70_spill] sm:$0xff] %v12521_v62  ;;  %v5041_v25 = vpop.f32.mrf.mxu1 }
 0x36e   : > { %13598 = vst [vmem:[#allocation69_spill] sm:$0xff] %v12525_v3  ;;  %v12527_v7 = vpop.f32.mrf.mxu0  ;;  %v5104_v44 = vadd.f32 %v5041_v25, %v12339_v60  ;;  %v12531_v0 = vadd.f32 %v13600_v40, %v5105_v61  ;;  %v13610_v40 = vld [vmem:[#allocation20_spill] sm:$0xff] }
 0x36f   : > { %13599 = vst [vmem:[#allocation15_spill] sm:$0xff] %v12527_v7  ;;  %v8682_v24 = vpop.f32.mrf.mxu1 }
 0x370   : > { %13601 = vst [vmem:[#allocation47_spill] sm:$0xff] %v12531_v0  ;;  %v12533_v11 = vpop.f32.mrf.mxu0  ;;  %v5107_v43 = vadd.f32 %v8682_v24, %v13603_v22  ;;  %v12537_v62 = vadd.f32 %v13604_v28, %v5104_v44  ;;  %v13613_v44 = vld [vmem:[#allocation27_spill] sm:$0xff] }
 0x371   : > { %13602 = vst [vmem:[#allocation72_spill] sm:$0xff] %v12533_v11  ;;  %v5051_v39 = vpop.f32.mrf.mxu1 }
 0x372   : > { %13605 = vst [vmem:[#allocation71_spill] sm:$0xff] %v12537_v62  ;;  %v12539_v45 = vpop.f32.mrf.mxu0  ;;  %v5106_v19 = vadd.f32 %v5051_v39, %v12355_v8  ;;  %v12543_v7 = vadd.f32 %v13607_v9, %v5107_v43 }
 0x373   : > { %13606 = vst [vmem:[#allocation12_spill] sm:$0xff] %v12539_v45  ;;  %v8685_v60 = vpop.f32.mrf.mxu1 }
 0x374   : > { %13608 = vst [vmem:[#allocation44_spill] sm:$0xff] %v12543_v7  ;;  %v12545_v25 = vpop.f32.mrf.mxu0  ;;  %v5109_v61 = vadd.f32 %v8685_v60, %v12361_v57  ;;  %v12549_v11 = vadd.f32 %v13610_v40, %v5106_v19 }
 0x375   : > { %13609 = vst [vmem:[#allocation59_spill] sm:$0xff] %v12545_v25  ;;  %v5061_v24 = vpop.f32.mrf.mxu1 }
 0x376   : > { %13611 = vst [vmem:[#allocation79_spill] sm:$0xff] %v12549_v11  ;;  %v12551_v22 = vpop.f32.mrf.mxu0  ;;  %v5108_v28 = vadd.f32 %v5061_v24, %v12369_v5  ;;  %v12555_v45 = vadd.f32 %v13613_v44, %v5109_v61 }
 0x377   : > { %13612 = vst [vmem:[#allocation25_spill] sm:$0xff] %v12551_v22  ;;  %v8688_v8 = vpop.f32.mrf.mxu1 }
 0x378   : > { %13614 = vst [vmem:[#allocation80_spill] sm:$0xff] %v12555_v45  ;;  %v12557_v39 = vpop.f32.mrf.mxu0  ;;  %v5111_v43 = vadd.f32 %v8688_v8, %v12375_v52  ;;  %v12561_v9 = vadd.f32 %v12371_v41, %v5108_v28 }
 0x379   : > { %13615 = vst [vmem:[#allocation32_spill] sm:$0xff] %v12557_v39  ;;  %v5071_v57 = vpop.f32.mrf.mxu1 }
 0x37a   : > { %13616 = vst [vmem:[#allocation33_spill] sm:$0xff] %v12561_v9  ;;  %v12563_v60 = vpop.f32.mrf.mxu0  ;;  %v5110_v19 = vadd.f32 %v5071_v57, %v12381_v56  ;;  %v12567_v40 = vadd.f32 %v12377_v14, %v5111_v43 }
 0x37b   : > { %13617 = vst [vmem:[#allocation61_spill] sm:$0xff] %v12563_v60  ;;  %v8743_v5 = vpop.f32.mrf.mxu1 }
 0x37c   : > { %13618 = vst [vmem:[#allocation62_spill] sm:$0xff] %v12567_v40  ;;  %v12569_v24 = vpop.f32.mrf.mxu0  ;;  %v12572_v61 = vadd.f32 %v12383_v26, %v5110_v19 }
 0x37d   : > { %13619 = vst [vmem:[#allocation36_spill] sm:$0xff] %v12569_v24  ;;  %v5457_v44 = vpop.f32.mrf.mxu1 }
 0x37e   : > { %13620 = vst [vmem:[#allocation26_spill] sm:$0xff] %v12572_v61  ;;  %v12574_v39 = vpop.f32.mrf.mxu0 }
 0x37f   : > { %13621 = vst [vmem:[#allocation30_spill] sm:$0xff] %v12574_v39  ;;  %v8746_v52 = vpop.f32.mrf.mxu1 }
 0x380   : > { %v8893_v41 = vpop.f32.mrf.mxu0 }
 0x381   : > { %v5467_v28 = vpop.f32.mrf.mxu1 }
 0x382   : > { %v6261_v8 = vpop.f32.mrf.mxu0 }
 0x383   : > { %v8749_v22 = vpop.f32.mrf.mxu1 }
 0x384   : > { %v12576_v9 = vpop.f32.mrf.mxu0 }
 0x385   : > { %v5477_v60 = vpop.f32.mrf.mxu1 }
 0x386   : > { %v12580_v43 = vpop.f32.mrf.mxu0 }
 0x387   : > { %v8752_v56 = vpop.f32.mrf.mxu1 }
 0x388   : > { %v12586_v19 = vpop.f32.mrf.mxu0 }
 0x389   : > { %v12578_v14 = vpop.f32.mrf.mxu1 }
 0x38a   : > { %v12592_v61 = vpop.f32.mrf.mxu0 }
 0x38b   : > { %v12582_v57 = vpop.f32.mrf.mxu1 }
 0x38c   : > { %v12598_v45 = vpop.f32.mrf.mxu0 }
 0x38d   : > { %v12584_v26 = vpop.f32.mrf.mxu1 }
 0x38e   : > { %v12604_v62 = vpop.f32.mrf.mxu0 }
 0x38f   : > { %v12588_v39 = vpop.f32.mrf.mxu1 }
 0x390   : > { %v12610_v1 = vpop.f32.mrf.mxu0 }
 0x391   : > { %v12590_v24 = vpop.f32.mrf.mxu1 }
 0x392   : > { %v12616_v20 = vpop.f32.mrf.mxu0 }
 0x393   : > { %v12594_v40 = vpop.f32.mrf.mxu1 }
 0x394   : > { %v12622_v15 = vpop.f32.mrf.mxu0 }
 0x395   : > { %v12596_v25 = vpop.f32.mrf.mxu1  ;;  %13629 = vst [vmem:[#allocation3_spill] sm:$0xff] %v12622_v15 }
 0x397   : > { %v12600_v11 = vpop.f32.mrf.mxu1 }
 0x399   : > { %v12602_v7 = vpop.f32.mrf.mxu1 }
 0x39a   : > { %13622 = vst [vmem:[#allocation64_spill] sm:$0xff] %v12602_v7 }
 0x39b   : > { %v12606_v0 = vpop.f32.mrf.mxu1 }
 0x39c   : > { %13623 = vst [vmem:[#allocation66_spill] sm:$0xff] %v12606_v0  ;;  %v12628_v0 = vpop.f32.mrf.mxu0 }
 0x39d   : > { %v12608_v3 = vpop.f32.mrf.mxu1  ;;  %13632 = vst [vmem:[#allocation8_spill] sm:$0xff] %v12628_v0 }
 0x39e   : > { %13624 = vst [vmem:[#allocation40_spill] sm:$0xff] %v12608_v3 }
 0x39f   : > { %v12612_v46 = vpop.f32.mrf.mxu1 }
 0x3a0   : > { %13625 = vst [vmem:[#allocation45_spill] sm:$0xff] %v12612_v46  ;;  %v12634_v46 = vpop.f32.mrf.mxu0 }
 0x3a1   : > { %v12614_v30 = vpop.f32.mrf.mxu1 }
 0x3a2   : > { %13626 = vst [vmem:[#allocation34_spill] sm:$0xff] %v12614_v30 }
 0x3a3   : > { %v12618_v59 = vpop.f32.mrf.mxu1 }
 0x3a4   : > { %13627 = vst [vmem:[#allocation38_spill] sm:$0xff] %v12618_v59  ;;  %v12640_v59 = vpop.f32.mrf.mxu0 }
 0x3a5   : > { %v12620_v55 = vpop.f32.mrf.mxu1  ;;  %13637 = vst [vmem:[#allocation52_spill] sm:$0xff] %v12640_v59 }
 0x3a6   : > { %13628 = vst [vmem:[#allocation67_spill] sm:$0xff] %v12620_v55 }
 0x3a7   : > { %v12624_v27 = vpop.f32.mrf.mxu1 }
 0x3a8   : > { %13630 = vst [vmem:[#allocation41_spill] sm:$0xff] %v12624_v27  ;;  %v12647_v27 = vpop.f32.mrf.mxu0 }
 0x3a9   : > { %v12626_v10 = vpop.f32.mrf.mxu1  ;;  %13640 = vst [vmem:[#allocation10_spill] sm:$0xff] %v12647_v27 }
 0x3aa   : > { %13631 = vst [vmem:[#allocation13_spill] sm:$0xff] %v12626_v10  ;;  %v5617_v10 = vadd.f32 %v8743_v5, %v12387_v6  ;;  %v12656_v59 = vpop.f32.mrf.mxu0 }
 0x3ab   : > { %v12630_v3 = vpop.f32.mrf.mxu1  ;;  %13643 = vst [vmem:[#allocation16_spill] sm:$0xff] %v12656_v59 }
 0x3ac   : > { %13633 = vst [vmem:[#allocation14_spill] sm:$0xff] %v12630_v3 }
 0x3ad   : > { %v12632_v7 = vpop.f32.mrf.mxu1 }
 0x3ae   : > { %13634 = vst [vmem:[#allocation46_spill] sm:$0xff] %v12632_v7  ;;  %v5616_v7 = vadd.f32 %v5457_v44, %v12393_v33 }
 0x3af   : > { %v12636_v30 = vpop.f32.mrf.mxu1 }
 0x3b0   : > { %13635 = vst [vmem:[#allocation73_spill] sm:$0xff] %v12636_v30  ;;  %v5619_v30 = vadd.f32 %v8746_v52, %v12399_v18  ;;  %v5884_v5 = vadd.f32 %v12395_v53, %v5616_v7  ;;  %v5620_v18 = vadd.f32 %v5477_v60, %v12417_v63  ;;  %v8968_v52 = vld [vmem:[%s9096_s6 + $0x8] sm:$0xff]  ;;  %v5623_v53 = vadd.f32 %v8752_v56, %v12423_v21 }
 0x3b1   : > { %v12638_v2 = vpop.f32.mrf.mxu1 }
 0x3b2   : > { %13636 = vst [vmem:[#allocation76_spill] sm:$0xff] %v12638_v2  ;;  %v5885_v2 = vadd.f32 %v12389_v13, %v5617_v10  ;;  %v12663_v13 = vpop.f32.mrf.mxu0 }
 0x3b3   : > { %v12642_v55 = vpop.f32.mrf.mxu1 }
 0x3b4   : > { %13638 = vst [vmem:[#allocation19_spill] sm:$0xff] %v12642_v55 }
 0x3b5   : > { %v12644_v15 = vpop.f32.mrf.mxu1 }
 0x3b6   : > { %13639 = vst [vmem:[#allocation43_spill] sm:$0xff] %v12644_v15  ;;  %v5618_v15 = vadd.f32 %v5467_v28, %v12405_v50 }
 0x3b8   : > { %v12649_v0 = vpop.f32.mrf.mxu1 }
 0x3b9   : > { %13641 = vst [vmem:[#allocation49_spill] sm:$0xff] %v12649_v0  ;;  %v5621_v0 = vadd.f32 %v8749_v22, %v12411_v35  ;;  %v5888_v22 = vadd.f32 %v12419_v31, %v5620_v18  ;;  %v8971_v31 = vld [vmem:[%s9096_s6 + $0x10] sm:$0xff] }
 0x3ba   : > { %v12652_v3 = vpop.f32.mrf.mxu1 }
 0x3bb   : > { %13642 = vst [vmem:[#allocation17_spill] sm:$0xff] %v12652_v3  ;;  %v5887_v3 = vadd.f32 %v12401_v38, %v5619_v30  ;;  %v5889_v35 = vadd.f32 %v12413_v32, %v5621_v0  ;;  %v8970_v32 = vld [vmem:[%s9096_s6 + $0x18] sm:$0xff] }
 0x3bc   : > { %v8843_v55 = vpop.f32.mrf.mxu1 }
 0x3bd   : > { %v6153_v6 = vadd.f32 %v8843_v55, %v5885_v2  ;;  %v5886_v2 = vadd.f32 %v12407_v42, %v5618_v15  ;;  %v5622_v42 = vadd.f32 %v12578_v14, %v12429_v16  ;;  %v12679_v15 = vpop.f32.mrf.mxu0  ;;  %v5891_v16 = vadd.f32 %v12425_v58, %v5623_v53 }
 0x3be   : > { %v5993_v27 = vpop.f32.mrf.mxu1 }
 0x3bf   : > { %v6421_v33 = vadd.f32 %v8893_v41, %v6153_v6  ;;  %v6152_v44 = vadd.f32 %v5993_v27, %v5884_v5  ;;  %v8969_v27 = vld [vmem:[%s9096_s6] sm:$0xff]  ;;  %v12695_v5 = vpop.f32.mrf.mxu0 }
 0x3c0   : > { %v8846_v10 = vpop.f32.mrf.mxu1 }
 0x3c1   : > { %v6453_v59 = vadd.f32 %v8968_v52, %v6421_v33  ;;  %v6420_v50 = vadd.f32 %v6261_v8, %v6152_v44  ;;  %v6155_v28 = vadd.f32 %v8846_v10, %v5887_v3  ;;  %v12711_v53 = vpop.f32.mrf.mxu0 }
 0x3c2   : > { %v6003_v38 = vpop.f32.mrf.mxu1 }
 0x3c3   : > { %v6485_v63 = vmax.f32 %v6453_v59, 0.0  ;;  %v6452_v30 = vadd.f32 %v8969_v27, %v6420_v50  ;;  %v6423_v55 = vadd.f32 %v12576_v9, %v6155_v28  ;;  %v6154_v3 = vadd.f32 %v6003_v38, %v5886_v2 }
 0x3c4   : > { %v8849_v7 = vpop.f32.mrf.mxu1  ;;  %v5625_v9 = vadd.f32 %v12582_v57, %v12435_v17  ;;  %v5890_v17 = vadd.f32 %v12431_v12, %v5622_v42  ;;  %v8972_v57 = vld [vmem:[%s9096_s6 + $0x28] sm:$0xff]  ;;  %v8973_v12 = vld [vmem:[%s9096_s6 + $0x20] sm:$0xff] }
 0x3c5   : > { %6517 = vst.msk [vmem:[%s12671_s30 + $0x8] sm:$0xff] %vm719_vm1, %v6485_v63  ;;  %v6484_v21 = vmax.f32 %v6452_v30, 0.0  ;;  %v6455_v59 = vadd.f32 %v8970_v32, %v6423_v55  ;;  %v6422_v0 = vadd.f32 %v12580_v43, %v6154_v3  ;;  %v6157_v60 = vadd.f32 %v8849_v7, %v5889_v35  ;;  %v12727_v7 = vpop.f32.mrf.mxu0 }
 0x3c6   : > { %v6013_v41 = vpop.f32.mrf.mxu1  ;;  %v5624_v43 = vadd.f32 %v12584_v26, %v12441_v47  ;;  %v5893_v47 = vadd.f32 %v12437_v34, %v5625_v9  ;;  %v13644_v9 = vld [vmem:[#allocation3_spill] sm:$0xff] }
 0x3c7   : > { %6516 = vst.msk [vmem:[%s12671_s30] sm:$0xff] %vm719_vm1, %v6484_v21  ;;  %v6487_v8 = vmax.f32 %v6455_v59, 0.0  ;;  %v6454_v56 = vadd.f32 %v8971_v31, %v6422_v0  ;;  %v6425_v14 = vadd.f32 %v12586_v19, %v6157_v60  ;;  %v6156_v6 = vadd.f32 %v6013_v41, %v5888_v22  ;;  %v13646_v31 = vld [vmem:[#allocation64_spill] sm:$0xff] }
 0x3c8   : > { %v8852_v33 = vpop.f32.mrf.mxu1  ;;  %v5627_v19 = vadd.f32 %v12588_v39, %v12447_v49  ;;  %v5892_v49 = vadd.f32 %v12443_v29, %v5624_v43  ;;  %v8974_v39 = vld [vmem:[%s9096_s6 + $0x38] sm:$0xff]  ;;  %v8975_v29 = vld [vmem:[%s9096_s6 + $0x30] sm:$0xff] }
 0x3c9   : > { %6519 = vst.msk [vmem:[%s12671_s30 + $0x18] sm:$0xff] %vm719_vm1, %v6487_v8  ;;  %v6486_v58 = vmax.f32 %v6454_v56, 0.0  ;;  %v6457_v44 = vadd.f32 %v8972_v57, %v6425_v14  ;;  %v6424_v18 = vadd.f32 %v12592_v61, %v6156_v6  ;;  %v6159_v10 = vadd.f32 %v8852_v33, %v5891_v16  ;;  %v13645_v8 = vld [vmem:[#allocation28_spill] sm:$0xff]  ;;  %v12743_v56 = vpop.f32.mrf.mxu0  ;;  %v8978_v6 = vld [vmem:[%s9096_s6 + $0x58] sm:$0xff] }
 0x3ca   : > { %v6023_v52 = vpop.f32.mrf.mxu1  ;;  %v5626_v61 = vadd.f32 %v12590_v24, %v12453_v23  ;;  %v5895_v23 = vadd.f32 %v12449_v48, %v5627_v19  ;;  %v13648_v33 = vld [vmem:[#allocation8_spill] sm:$0xff]  ;;  %v13649_v57 = vld [vmem:[#allocation37_spill] sm:$0xff]  ;;  %v13651_v19 = vld [vmem:[#allocation58_spill] sm:$0xff] }
 0x3cb   : > { %6518 = vst.msk [vmem:[%s12671_s30 + $0x10] sm:$0xff] %vm719_vm1, %v6486_v58  ;;  %v6489_v26 = vmax.f32 %v6457_v44, 0.0  ;;  %v6456_v50 = vadd.f32 %v8973_v12, %v6424_v18  ;;  %v6427_v28 = vadd.f32 %v12598_v45, %v6159_v10  ;;  %v6158_v2 = vadd.f32 %v6023_v52, %v5890_v17  ;;  %v13650_v44 = vld [vmem:[#allocation66_spill] sm:$0xff] }
 0x3cc   : > { %v8855_v38 = vpop.f32.mrf.mxu1  ;;  %v5629_v45 = vadd.f32 %v12594_v40, %v12459_v37  ;;  %v5894_v37 = vadd.f32 %v12455_v36, %v5626_v61  ;;  %v8976_v40 = vld [vmem:[%s9096_s6 + $0x48] sm:$0xff]  ;;  %v8977_v36 = vld [vmem:[%s9096_s6 + $0x40] sm:$0xff]  ;;  %v5633_v18 = vadd.f32 %v13650_v44, %v13649_v57  ;;  %v13653_v61 = vld [vmem:[#allocation40_spill] sm:$0xff] }
 0x3cd   : > { %6521 = vst.msk [vmem:[%s12671_s30 + $0x28] sm:$0xff] %vm719_vm1, %v6489_v26  ;;  %v6488_v34 = vmax.f32 %v6456_v50, 0.0  ;;  %v6459_v35 = vadd.f32 %v8974_v39, %v6427_v28  ;;  %v6426_v63 = vadd.f32 %v12604_v62, %v6158_v2  ;;  %v6161_v27 = vadd.f32 %v8855_v38, %v5893_v47  ;;  %v8979_v26 = vld [vmem:[%s9096_s6 + $0x50] sm:$0xff]  ;;  %v13652_v2 = vld [vmem:[#allocation63_spill] sm:$0xff] }
 0x3ce   : > { %v6033_v30 = vpop.f32.mrf.mxu1  ;;  %v5628_v62 = vadd.f32 %v12596_v25, %v12465_v51  ;;  %v5897_v51 = vadd.f32 %v12461_v54, %v5629_v45  ;;  %v5632_v38 = vadd.f32 %v13653_v61, %v13652_v2  ;;  %v13654_v39 = vld [vmem:[#allocation60_spill] sm:$0xff] }
 0x3cf   : > { %6520 = vst.msk [vmem:[%s12671_s30 + $0x20] sm:$0xff] %vm719_vm1, %v6488_v34  ;;  %v6491_v24 = vmax.f32 %v6459_v35, 0.0  ;;  %v6458_v55 = vadd.f32 %v8975_v29, %v6426_v63  ;;  %v6429_v3 = vadd.f32 %v12610_v1, %v6161_v27  ;;  %v6160_v42 = vadd.f32 %v6033_v30, %v5892_v49  ;;  %v12759_v49 = vpop.f32.mrf.mxu0  ;;  %v8980_v27 = vld [vmem:[%s9096_s6 + $0x68] sm:$0xff]  ;;  %v13655_v30 = vld [vmem:[#allocation52_spill] sm:$0xff]  ;;  %v13657_v29 = vld [vmem:[#allocation45_spill] sm:$0xff] }
 0x3d0   : > { %v8858_v22 = vpop.f32.mrf.mxu1  ;;  %v5631_v1 = vadd.f32 %v12600_v11, %v12471_v4  ;;  %v13647_v4 = vld [vmem:[#allocation55_spill] sm:$0xff] }
 0x3d1   : > { %6523 = vst.msk [vmem:[%s12671_s30 + $0x38] sm:$0xff] %vm719_vm1, %v6491_v24  ;;  %v6490_v48 = vmax.f32 %v6458_v55, 0.0  ;;  %v6461_v21 = vadd.f32 %v8976_v40, %v6429_v3  ;;  %v6428_v32 = vadd.f32 %v12616_v20, %v6160_v42  ;;  %v6163_v59 = vadd.f32 %v8858_v22, %v5895_v23  ;;  %v13658_v42 = vld [vmem:[#allocation31_spill] sm:$0xff]  ;;  %v13659_v40 = vld [vmem:[#allocation10_spill] sm:$0xff] }
 0x3d2   : > { %v6043_v0 = vpop.f32.mrf.mxu1  ;;  %v5630_v20 = vadd.f32 %v13646_v31, %v13645_v8  ;;  %v5896_v11 = vadd.f32 %v13647_v4, %v5628_v62  ;;  %v5899_v52 = vadd.f32 %v13651_v19, %v5631_v1  ;;  %v5901_v62 = vadd.f32 %v13658_v42, %v5633_v18  ;;  %v13661_v1 = vld [vmem:[#allocation34_spill] sm:$0xff]  ;;  %v13663_v8 = vld [vmem:[#allocation16_spill] sm:$0xff] }
 0x3d3   : > { %6522 = vst.msk [vmem:[%s12671_s30 + $0x30] sm:$0xff] %vm719_vm1, %v6490_v48  ;;  %v6493_v25 = vmax.f32 %v6461_v21, 0.0  ;;  %v6460_v60 = vadd.f32 %v8977_v36, %v6428_v32  ;;  %v6431_v41 = vadd.f32 %v13644_v9, %v6163_v59  ;;  %v6162_v16 = vadd.f32 %v6043_v0, %v5894_v37  ;;  %v8981_v37 = vld [vmem:[%s9096_s6 + $0x60] sm:$0xff]  ;;  %v13660_v59 = vld [vmem:[#allocation9_spill] sm:$0xff] }
 0x3d4   : > { %v8861_v14 = vpop.f32.mrf.mxu1  ;;  %v5898_v35 = vadd.f32 %v13654_v39, %v5630_v20  ;;  %v5634_v0 = vadd.f32 %v13661_v1, %v13660_v59  ;;  %v13662_v36 = vld [vmem:[#allocation2_spill] sm:$0xff] }
 0x3d5   : > { %6525 = vst.msk [vmem:[%s12671_s30 + $0x48] sm:$0xff] %vm719_vm1, %v6493_v25  ;;  %v6492_v54 = vmax.f32 %v6460_v60, 0.0  ;;  %v6463_v43 = vadd.f32 %v8978_v6, %v6431_v41  ;;  %v6430_v17 = vadd.f32 %v13648_v33, %v6162_v16  ;;  %v6165_v58 = vadd.f32 %v8861_v14, %v5897_v51  ;;  %v12775_v51 = vpop.f32.mrf.mxu0  ;;  %v8982_v41 = vld [vmem:[%s9096_s6 + $0x78] sm:$0xff]  ;;  %v13665_v4 = vld [vmem:[#allocation38_spill] sm:$0xff] }
 0x3d6   : > { %v6053_v10 = vpop.f32.mrf.mxu1  ;;  %v5900_v60 = vadd.f32 %v13662_v36, %v5632_v38  ;;  %v13664_v14 = vld [vmem:[#allocation29_spill] sm:$0xff]  ;;  %v13667_v18 = vld [vmem:[#allocation42_spill] sm:$0xff] }
 0x3d7   : > { %6524 = vst.msk [vmem:[%s12671_s30 + $0x40] sm:$0xff] %vm719_vm1, %v6492_v54  ;;  %v6495_v47 = vmax.f32 %v6463_v43, 0.0  ;;  %v6462_v12 = vadd.f32 %v8979_v26, %v6430_v17  ;;  %v6433_v50 = vadd.f32 %v12634_v46, %v6165_v58  ;;  %v6164_v28 = vadd.f32 %v6053_v10, %v5896_v11  ;;  %v13656_v46 = vld [vmem:[#allocation35_spill] sm:$0xff]  ;;  %v13666_v6 = vld [vmem:[#allocation65_spill] sm:$0xff]  ;;  %v8983_v17 = vld [vmem:[%s9096_s6 + $0x70] sm:$0xff] }
 0x3d8   : > { %v8864_v34 = vpop.f32.mrf.mxu1  ;;  %v5635_v55 = vadd.f32 %v13657_v29, %v13656_v46  ;;  %v5637_v11 = vadd.f32 %v13665_v4, %v13664_v14  ;;  %v13668_v10 = vld [vmem:[#allocation67_spill] sm:$0xff]  ;;  %v13673_v29 = vld [vmem:[#allocation69_spill] sm:$0xff]  ;;  %v13677_v59 = vld [vmem:[#allocation14_spill] sm:$0xff] }
 0x3d9   : > { %6527 = vst.msk [vmem:[%s12671_s30 + $0x58] sm:$0xff] %vm719_vm1, %v6495_v47  ;;  %v6494_v63 = vmax.f32 %v6462_v12, 0.0  ;;  %v6465_v45 = vadd.f32 %v8980_v27, %v6433_v50  ;;  %v6432_v23 = vadd.f32 %v13655_v30, %v6164_v28  ;;  %v6167_v24 = vadd.f32 %v8864_v34, %v5899_v52  ;;  %v12791_v52 = vpop.f32.mrf.mxu0  ;;  %v13669_v26 = vld [vmem:[#allocation39_spill] sm:$0xff]  ;;  %v13671_v34 = vld [vmem:[#allocation41_spill] sm:$0xff]  ;;  %v8985_v30 = vld [vmem:[%s9096_s6 + $0x80] sm:$0xff] }
 0x3da   : > { %v6063_v3 = vpop.f32.mrf.mxu1  ;;  %v5903_v43 = vadd.f32 %v13666_v6, %v5635_v55  ;;  %v5636_v19 = vadd.f32 %v13668_v10, %v13667_v18  ;;  %v5902_v12 = vadd.f32 %v13669_v26, %v5634_v0  ;;  %v8984_v28 = vld [vmem:[%s9096_s6 + $0x88] sm:$0xff]  ;;  %v13674_v55 = vld [vmem:[#allocation13_spill] sm:$0xff]  ;;  %v13684_v10 = vld [vmem:[#allocation72_spill] sm:$0xff] }
 0x3db   : > { %6526 = vst.msk [vmem:[%s12671_s30 + $0x50] sm:$0xff] %vm719_vm1, %v6494_v63  ;;  %v6497_v22 = vmax.f32 %v6465_v45, 0.0  ;;  %v6464_v48 = vadd.f32 %v8981_v37, %v6432_v23  ;;  %v6435_v21 = vadd.f32 %v13659_v40, %v6167_v24  ;;  %v6166_v32 = vadd.f32 %v6063_v3, %v5898_v35  ;;  %v13672_v63 = vld [vmem:[#allocation11_spill] sm:$0xff]  ;;  %v12807_v3 = vpop.f32.mrf.mxu0  ;;  %v8989_v26 = vld [vmem:[%s9096_s6 + $0xa0] sm:$0xff] }
 0x3dc   : > { %v8867_v25 = vpop.f32.mrf.mxu1  ;;  %v5905_v27 = vadd.f32 %v13672_v63, %v5637_v11  ;;  %v13681_v11 = vld [vmem:[#allocation15_spill] sm:$0xff]  ;;  %v8990_v63 = vld [vmem:[%s9096_s6 + $0xb8] sm:$0xff] }
 0x3dd   : > { %6529 = vst.msk [vmem:[%s12671_s30 + $0x68] sm:$0xff] %vm719_vm1, %v6497_v22  ;;  %v6496_v9 = vmax.f32 %v6464_v48, 0.0  ;;  %v6467_v16 = vadd.f32 %v8982_v41, %v6435_v21  ;;  %v6434_v31 = vadd.f32 %v13663_v8, %v6166_v32  ;;  %v6169_v20 = vadd.f32 %v8867_v25, %v5901_v62  ;;  %v13675_v62 = vld [vmem:[#allocation68_spill] sm:$0xff]  ;;  %v8986_v48 = vld [vmem:[%s9096_s6 + $0x98] sm:$0xff]  ;;  %v13678_v25 = vld [vmem:[#allocation70_spill] sm:$0xff]  ;;  %v8932_v14 = vpop.f32.mrf.mxu0 }
 0x3de   : > { %v6073_v54 = vpop.f32.mrf.mxu1  ;;  %v5904_v22 = vadd.f32 %v13675_v62, %v5636_v19 }
 0x3df   : > { %6528 = vst.msk [vmem:[%s12671_s30 + $0x60] sm:$0xff] %vm719_vm1, %v6496_v9  ;;  %v6499_v33 = vmax.f32 %v6467_v16, 0.0  ;;  %v6466_v58 = vadd.f32 %v8983_v17, %v6434_v31  ;;  %v6437_v57 = vadd.f32 %v12663_v13, %v6169_v20  ;;  %v6168_v44 = vadd.f32 %v6073_v54, %v5900_v60  ;;  %v13670_v13 = vld [vmem:[#allocation75_spill] sm:$0xff]  ;;  %v8987_v9 = vld [vmem:[%s9096_s6 + $0x90] sm:$0xff]  ;;  %v13680_v20 = vld [vmem:[#allocation46_spill] sm:$0xff] }
 0x3e0   : > { %v8870_v47 = vpop.f32.mrf.mxu1  ;;  %v5639_v39 = vadd.f32 %v13671_v34, %v13670_v13  ;;  %v13679_v31 = vld [vmem:[#allocation71_spill] sm:$0xff]  ;;  %v13687_v34 = vld [vmem:[#allocation12_spill] sm:$0xff] }
 0x3e1   : > { %6531 = vst.msk [vmem:[%s12671_s30 + $0x78] sm:$0xff] %vm719_vm1, %v6499_v33  ;;  %v6498_v50 = vmax.f32 %v6466_v58, 0.0  ;;  %v6469_v2 = vadd.f32 %v8984_v28, %v6437_v57  ;;  %v6436_v61 = vadd.f32 %v12679_v15, %v6168_v44  ;;  %v6171_v38 = vadd.f32 %v8870_v47, %v5903_v43  ;;  %v8988_v43 = vld [vmem:[%s9096_s6 + $0xa8] sm:$0xff]  ;;  %v13682_v57 = vld [vmem:[#allocation44_spill] sm:$0xff] }
 0x3e2   : > { %v6083_v35 = vpop.f32.mrf.mxu1  ;;  %v5638_v15 = vadd.f32 %v13674_v55, %v13673_v29  ;;  %v5907_v36 = vadd.f32 %v13678_v25, %v5639_v39  ;;  %v13690_v29 = vld [vmem:[#allocation59_spill] sm:$0xff] }
 0x3e3   : > { %6530 = vst.msk [vmem:[%s12671_s30 + $0x70] sm:$0xff] %vm719_vm1, %v6498_v50  ;;  %v6501_v45 = vmax.f32 %v6469_v2, 0.0  ;;  %v6468_v23 = vadd.f32 %v8985_v30, %v6436_v61  ;;  %v6439_v24 = vadd.f32 %v12695_v5, %v6171_v38  ;;  %v6170_v46 = vadd.f32 %v6083_v35, %v5902_v12  ;;  %v13676_v5 = vld [vmem:[#allocation47_spill] sm:$0xff]  ;;  %v13686_v61 = vld [vmem:[#allocation76_spill] sm:$0xff]  ;;  %v6391_v38 = vpop.f32.mrf.mxu0 }
 0x3e4   : > { %v8873_v42 = vpop.f32.mrf.mxu1  ;;  %v5641_v1 = vadd.f32 %v13677_v59, %v13676_v5  ;;  %v5906_v54 = vadd.f32 %v13681_v11, %v5638_v15  ;;  %v13685_v2 = vld [vmem:[#allocation79_spill] sm:$0xff]  ;;  %v13693_v5 = vld [vmem:[#allocation25_spill] sm:$0xff] }
 0x3e5   : > { %6533 = vst.msk [vmem:[%s12671_s30 + $0x88] sm:$0xff] %vm719_vm1, %v6501_v45  ;;  %v6500_v37 = vmax.f32 %v6468_v23, 0.0  ;;  %v6471_v40 = vadd.f32 %v8986_v48, %v6439_v24  ;;  %v6438_v21 = vadd.f32 %v12711_v53, %v6170_v46  ;;  %v6173_v32 = vadd.f32 %v8873_v42, %v5905_v27  ;;  %v13688_v23 = vld [vmem:[#allocation80_spill] sm:$0xff]  ;;  %v13691_v48 = vld [vmem:[#allocation33_spill] sm:$0xff] }
 0x3e6   : > { %v6093_v0 = vpop.f32.mrf.mxu1  ;;  %v5640_v53 = vadd.f32 %v13680_v20, %v13679_v31  ;;  %v5909_v19 = vadd.f32 %v13684_v10, %v5641_v1  ;;  %v8991_v42 = vld [vmem:[%s9096_s6 + $0xb0] sm:$0xff] }
 0x3e7   : > { %6532 = vst.msk [vmem:[%s12671_s30 + $0x80] sm:$0xff] %vm719_vm1, %v6500_v37  ;;  %v6503_v60 = vmax.f32 %v6471_v40, 0.0  ;;  %v6470_v41 = vadd.f32 %v8987_v9, %v6438_v21  ;;  %v6441_v16 = vadd.f32 %v12727_v7, %v6173_v32  ;;  %v6172_v8 = vadd.f32 %v6093_v0, %v5904_v22  ;;  %v13683_v7 = vld [vmem:[#allocation73_spill] sm:$0xff]  ;;  %v13692_v40 = vld [vmem:[#allocation43_spill] sm:$0xff]  ;;  %v8935_v21 = vpop.f32.mrf.mxu0  ;;  %v13694_v9 = vld [vmem:[#allocation62_spill] sm:$0xff] }
 0x3e8   : > { %v8876_v4 = vpop.f32.mrf.mxu1  ;;  %v5643_v44 = vadd.f32 %v13683_v7, %v13682_v57  ;;  %v5908_v39 = vadd.f32 %v13687_v34, %v5640_v53  ;;  %v8992_v0 = vld [vmem:[%s9096_s6 + $0xc8] sm:$0xff]  ;;  %v8993_v53 = vld [vmem:[%s9096_s6 + $0xc0] sm:$0xff] }
 0x3e9   : > { %6535 = vst.msk [vmem:[%s12671_s30 + $0x98] sm:$0xff] %vm719_vm1, %v6503_v60  ;;  %v6502_v6 = vmax.f32 %v6470_v41, 0.0  ;;  %v6473_v33 = vadd.f32 %v8988_v43, %v6441_v16  ;;  %v6440_v17 = vadd.f32 %v12743_v56, %v6172_v8  ;;  %v6175_v58 = vadd.f32 %v8876_v4, %v5907_v36  ;;  %v13696_v8 = vld [vmem:[#allocation32_spill] sm:$0xff]  ;;  %v13698_v43 = vld [vmem:[#allocation17_spill] sm:$0xff]  ;;  %v13701_v34 = vld [vmem:[#allocation30_spill] sm:$0xff] }
 0x3ea   : > { %v6103_v18 = vpop.f32.mrf.mxu1  ;;  %v5642_v56 = vadd.f32 %v13686_v61, %v13685_v2  ;;  %v5911_v55 = vadd.f32 %v13690_v29, %v5643_v44  ;;  %v8994_v44 = vld [vmem:[%s9096_s6 + $0xd8] sm:$0xff] }
 0x3eb   : > { %6534 = vst.msk [vmem:[%s12671_s30 + $0x90] sm:$0xff] %vm719_vm1, %v6502_v6  ;;  %v6505_v47 = vmax.f32 %v6473_v33, 0.0  ;;  %v6472_v12 = vadd.f32 %v8989_v26, %v6440_v17  ;;  %v6443_v50 = vadd.f32 %v12759_v49, %v6175_v58  ;;  %v6174_v28 = vadd.f32 %v6103_v18, %v5906_v54  ;;  %v13689_v49 = vld [vmem:[#allocation19_spill] sm:$0xff]  ;;  %v13697_v6 = vld [vmem:[#allocation26_spill] sm:$0xff]  ;;  %v6401_v33 = vpop.f32.mrf.mxu0  ;;  %v13699_v58 = vld [vmem:[#allocation61_spill] sm:$0xff] }
 0x3ec   : > { %v8879_v13 = vpop.f32.mrf.mxu1  ;;  %v5645_v24 = vadd.f32 %v13689_v49, %v13688_v23  ;;  %v5910_v59 = vadd.f32 %v13693_v5, %v5642_v56  ;;  %v8997_v49 = vld [vmem:[%s9096_s6 + $0xe0] sm:$0xff] }
 0x3ed   : > { %6537 = vst.msk [vmem:[%s12671_s30 + $0xa8] sm:$0xff] %vm719_vm1, %v6505_v47  ;;  %v6504_v35 = vmax.f32 %v6472_v12, 0.0  ;;  %v6475_v27 = vadd.f32 %v8990_v63, %v6443_v50  ;;  %v6442_v45 = vadd.f32 %v12775_v51, %v6174_v28  ;;  %v6177_v30 = vadd.f32 %v8879_v13, %v5909_v19  ;;  %v8995_v50 = vld [vmem:[%s9096_s6 + $0xd0] sm:$0xff]  ;;  %v8938_v56 = vpop.f32.mrf.mxu0 }
 0x3ee   : > { %v6113_v46 = vpop.f32.mrf.mxu1  ;;  %v5644_v51 = vadd.f32 %v13692_v40, %v13691_v48  ;;  %v5913_v31 = vadd.f32 %v13696_v8, %v5645_v24  ;;  %v8999_v48 = vld [vmem:[%s9096_s6 + $0xf0] sm:$0xff] }
 0x3ef   : > { %6536 = vst.msk [vmem:[%s12671_s30 + $0xa0] sm:$0xff] %vm719_vm1, %v6504_v35  ;;  %v6507_v15 = vmax.f32 %v6475_v27, 0.0  ;;  %v6474_v62 = vadd.f32 %v8991_v42, %v6442_v45  ;;  %v6445_v22 = vadd.f32 %v12791_v52, %v6177_v30  ;;  %v6176_v37 = vadd.f32 %v6113_v46, %v5908_v39  ;;  %v13695_v52 = vld [vmem:[#allocation49_spill] sm:$0xff]  ;;  %v8996_v35 = vld [vmem:[%s9096_s6 + $0xe8] sm:$0xff] }
 0x3f0   : > { %v8882_v32 = vpop.f32.mrf.mxu1  ;;  %v5647_v41 = vadd.f32 %v13695_v52, %v13694_v9  ;;  %v5912_v57 = vadd.f32 %v13699_v58, %v5644_v51  ;;  %v8998_v42 = vld [vmem:[%s9096_s6 + $0xf8] sm:$0xff] }
 0x3f1   : > { %6539 = vst.msk [vmem:[%s12671_s30 + $0xb8] sm:$0xff] %vm719_vm1, %v6507_v15  ;;  %v6506_v1 = vmax.f32 %v6474_v62, 0.0  ;;  %v6477_v25 = vadd.f32 %v8992_v0, %v6445_v22  ;;  %v6444_v36 = vadd.f32 %v12807_v3, %v6176_v37  ;;  %v6179_v60 = vadd.f32 %v8882_v32, %v5911_v55  ;;  %v6411_v55 = vpop.f32.mrf.mxu0 }
 0x3f2   : > { %v6123_v16 = vpop.f32.mrf.mxu1  ;;  %v5646_v3 = vadd.f32 %v13698_v43, %v13697_v6 }
 0x3f3   : > { %6538 = vst.msk [vmem:[%s12671_s30 + $0xb0] sm:$0xff] %vm719_vm1, %v6506_v1  ;;  %v6509_v20 = vmax.f32 %v6477_v25, 0.0  ;;  %v6476_v4 = vadd.f32 %v8993_v53, %v6444_v36  ;;  %v6447_v11 = vadd.f32 %v8932_v14, %v6179_v60  ;;  %v6178_v54 = vadd.f32 %v6123_v16, %v5910_v59  ;;  %v13700_v14 = vld [vmem:[#allocation36_spill] sm:$0xff] }
 0x3f4   : > { %v8885_v17 = vpop.f32.mrf.mxu1  ;;  %v5915_v26 = vadd.f32 %v13700_v14, %v5647_v41  ;;  %v5914_v39 = vadd.f32 %v13701_v34, %v5646_v3 }
 0x3f5   : > { %6541 = vst.msk [vmem:[%s12671_s30 + $0xc8] sm:$0xff] %vm719_vm1, %v6509_v20  ;;  %v6508_v7 = vmax.f32 %v6476_v4, 0.0  ;;  %v6479_v18 = vadd.f32 %v8994_v44, %v6447_v11  ;;  %v6446_v10 = vadd.f32 %v6391_v38, %v6178_v54  ;;  %v6181_v19 = vadd.f32 %v8885_v17, %v5913_v31 }
 0x3f6   : > { %v6133_v47 = vpop.f32.mrf.mxu1 }
 0x3f7   : > { %6540 = vst.msk [vmem:[%s12671_s30 + $0xc0] sm:$0xff] %vm719_vm1, %v6508_v7  ;;  %v6511_v12 = vmax.f32 %v6479_v18, 0.0  ;;  %v6478_v28 = vadd.f32 %v8995_v50, %v6446_v10  ;;  %v6449_v2 = vadd.f32 %v8935_v21, %v6181_v19  ;;  %v6180_v61 = vadd.f32 %v6133_v47, %v5912_v57 }
 0x3f8   : > { %v8888_v13 = vpop.f32.mrf.mxu1 }
 0x3f9   : > { %6543 = vst.msk [vmem:[%s12671_s30 + $0xd8] sm:$0xff] %vm719_vm1, %v6511_v12  ;;  %v6510_v38 = vmax.f32 %v6478_v28, 0.0  ;;  %v6481_v63 = vadd.f32 %v8996_v35, %v6449_v2  ;;  %v6448_v27 = vadd.f32 %v6401_v33, %v6180_v61  ;;  %v6183_v45 = vadd.f32 %v8888_v13, %v5915_v26 }
 0x3fa   : > { %v6143_v30 = vpop.f32.mrf.mxu1 }
 0x3fb   : > { %6542 = vst.msk [vmem:[%s12671_s30 + $0xd0] sm:$0xff] %vm719_vm1, %v6510_v38  ;;  %v6513_v23 = vmax.f32 %v6481_v63, 0.0  ;;  %v6480_v24 = vadd.f32 %v8997_v49, %v6448_v27  ;;  %v6451_v46 = vadd.f32 %v8938_v56, %v6183_v45  ;;  %v6182_v29 = vadd.f32 %v6143_v30, %v5914_v39 }
 0x3fd   : > { %6545 = vst.msk [vmem:[%s12671_s30 + $0xe8] sm:$0xff] %vm719_vm1, %v6513_v23  ;;  %v6512_v15 = vmax.f32 %v6480_v24, 0.0  ;;  %v6483_v62 = vadd.f32 %v8998_v42, %v6451_v46  ;;  %v6450_v22 = vadd.f32 %v6411_v55, %v6182_v29 }
 0x3ff   : > { %6544 = vst.msk [vmem:[%s12671_s30 + $0xe0] sm:$0xff] %vm719_vm1, %v6512_v15  ;;  %v6515_v37 = vmax.f32 %v6483_v62, 0.0  ;;  %v6482_v40 = vadd.f32 %v8999_v48, %v6450_v22 }
 0x401   : > { %6547 = vst.msk [vmem:[%s12671_s30 + $0xf8] sm:$0xff] %vm719_vm1, %v6515_v37  ;;  %v6514_v51 = vmax.f32 %v6482_v40, 0.0 }
 0x403   : > { %6546 = vst.msk [vmem:[%s12671_s30 + $0xf0] sm:$0xff] %vm719_vm1, %v6514_v51 }
 0x404 PF: > { %s15_s20 = sadd.s32 1, %s9022_s20   ;;  %s13702_s18 = smov %s9018_s19 }
 0x405   : > { %p12_p5 = scmp.ge.s32.totalorder %s15_s20, 4   ;;  %s13703_s19 = smov %s13705_s21 }
 0x407   :  { %14 = sbr.rel (!%p12_p5) target bundleno = 2 (0x2), region = 92 }

</bundles_post_ra>
